<compile_context>
chip_gen: v6e
topology: v6e:2x2x1
jax: 0.10.0
libtpu: 0.0.40
codegen_flags: <defaults>
</compile_context>

<pallas_src>
import functools

import jax
import jax.numpy as jnp
from jax.experimental import pallas as pl
from jax.experimental.pallas import tpu as pltpu

IN_EPS = 1e-5  # PyTorch InstanceNorm2d default eps


def _dtbe_kernel(x_ref, w_ref, o_ref, *, C_out, H, W, mp):
    """IN(affine=False) + ReLU + 1x1 conv + MaxPool2d(mp) for one batch item.

    x_ref : (1, C_in, H*W)        channel-major, flat spatial s = h*W + w on lanes
    w_ref : (C_out, C_in)         1x1 conv weight
    o_ref : (1, 1, C_out*Ho*Wo)   pooled output, flat NCHW (c, ho, wo) order
    """
    Ho, Wo = H // mp, W // mp

    x = x_ref[0]                                              # (C_in, HW) f32

    # ---- InstanceNorm2d(affine=False): per-channel stats over spatial lanes --
    mean = jnp.mean(x, axis=1, keepdims=True)                 # (C_in, 1)
    var = jnp.mean((x - mean) ** 2, axis=1, keepdims=True)    # biased (PyTorch)
    xn = (x - mean) * jax.lax.rsqrt(var + IN_EPS)

    # ---- ReLU ----------------------------------------------------------------
    xn = jnp.maximum(xn, 0.0)

    # ---- 1x1 Conv2d (bias=False) == channel matmul; lane-dense (C_out, HW) ----
    y = jnp.dot(w_ref[...], xn, preferred_element_type=jnp.float32)

    # ---- MaxPool2d(mp) on values (no scratch, no strided reloads) ------------
    # Lane index is s = h*W + w, so s // mp = h*Wo + wo and s % mp = dw.
    y = jnp.max(y.reshape(C_out, H * Wo, mp), axis=2)         # pool along W
    # Remaining lane index r = h*Wo + wo = (ho*mp + dh)*Wo + wo.
    y = jnp.max(y.reshape(C_out, Ho, mp, Wo), axis=2)         # pool along H -> (C_out, Ho, Wo)

    # ---- Single bulk lane-dense store; (c, ho, wo) row-major == flat NCHW ----
    o_ref[...] = y.reshape(1, 1, C_out * Ho * Wo)


def dense_transition_block_encoder(x, w, mp):
    """x: (N, C_in, H, W) NCHW; w: (C_out, C_in, 1, 1).  Returns NCHW output."""
    N, C_in, H, W = x.shape
    C_out = w.shape[0]
    # TODO(synk): MaxPool2d floor mode (H or W not divisible by mp) is not
    # implemented; the kernel requires exact tiling like the typical config.
    assert H % mp == 0 and W % mp == 0
    Ho, Wo = H // mp, W // mp
    HW = H * W

    # Only free reshapes in the wrapper -- no transposes on either side.
    x_flat = x.astype(jnp.float32).reshape(N, C_in, HW)        # NCHW -> (N, C, HW)
    w2 = w.reshape(C_out, C_in).astype(jnp.float32)            # (C_out, C_in)

    out_flat = pl.pallas_call(
        functools.partial(_dtbe_kernel, C_out=C_out, H=H, W=W, mp=mp),
        out_shape=jax.ShapeDtypeStruct((N, 1, C_out * Ho * Wo), jnp.float32),
        grid=(N,),
        in_specs=[
            pl.BlockSpec((1, C_in, HW), lambda n: (n, 0, 0)),
            pl.BlockSpec((C_out, C_in), lambda n: (0, 0)),
        ],
        out_specs=pl.BlockSpec((1, 1, C_out * Ho * Wo), lambda n: (n, 0, 0)),
        compiler_params=pltpu.CompilerParams(
            dimension_semantics=("parallel",),
        ),
    )(x_flat, w2)

    # The flat slab is already (c, ho, wo) ordered -> free reshape back to NCHW.
    return out_flat.reshape(N, C_out, Ho, Wo)


# ----------------------------------------------------------------------------
# Pure-JAX reference mirroring the PyTorch module exactly.
# ----------------------------------------------------------------------------
def reference_forward(x, w, mp):
    x = x.astype(jnp.float32)
    m = jnp.mean(x, axis=(2, 3), keepdims=True)
    v = jnp.mean((x - m) ** 2, axis=(2, 3), keepdims=True)
    a = jnp.maximum((x - m) * jax.lax.rsqrt(v + IN_EPS), 0.0)
    w2 = w.reshape(w.shape[0], w.shape[1]).astype(jnp.float32)
    y = jnp.einsum("oc,nchw->nohw", w2, a,
                   precision=jax.lax.Precision.HIGHEST)
    N, Co, H, W = y.shape
    y = y.reshape(N, Co, H // mp, mp, W // mp, mp)
    return jnp.max(y, axis=(3, 5))


# ----------------------------------------------------------------------------
if __name__ == "__main__":
    # Small config consistent with the module:
    # n_channels_in=4, n_channels_out=8, mp=2, input (2, 4, 16, 16).
    batch, c_in, c_out, hw, mp = 2, 4, 8, 16, 2

    key = jax.random.PRNGKey(0)
    kx, kw = jax.random.split(key)
    x = jax.random.normal(kx, (batch, c_in, hw, hw), dtype=jnp.float32)
    w = 0.1 * jax.random.normal(kw, (c_out, c_in, 1, 1), dtype=jnp.float32)

    fwd = jax.jit(functools.partial(dense_transition_block_encoder, mp=mp))
    out = jax.block_until_ready(fwd(x, w))
    assert out.shape == (batch, c_out, hw // mp, hw // mp), out.shape

    ref = jax.block_until_ready(reference_forward(x, w, mp))
    max_err = float(jnp.max(jnp.abs(out - ref)))
    assert jnp.allclose(out, ref, rtol=1e-3, atol=1e-3), max_err

    print("KERNEL_OK")
</pallas_src>

<mosaic_0001>
module attributes {stable_mosaic.version = 11 : i64} {
  func.func @_dtbe_kernel(%arg0: i32, %arg1: memref<1x4x256xf32, #tpu.memory_space<vmem>>, %arg2: memref<8x4xf32, #tpu.memory_space<vmem>>, %arg3: memref<1x1x512xf32, #tpu.memory_space<vmem>>) attributes {dimension_semantics = [#tpu.dimension_semantics<parallel>], iteration_bounds = array<i64: 2>, scalar_prefetch = 0 : i64, scratch_operands = 0 : i64, tpu.core_type = #tpu.core_type<tc>, window_params = [{transform_indices = @transform_0, window_bounds = array<i64: 1, 4, 256>}, {pipeline_mode = #tpu.pipeline_mode<synchronous>, transform_indices = @transform_1, window_bounds = array<i64: 8, 4>}, {transform_indices = @transform_2, window_bounds = array<i64: 1, 1, 512>}]} {
    %c0 = arith.constant 0 : index
    %c0_0 = arith.constant 0 : index
    %c0_1 = arith.constant 0 : index
    %0 = vector.load %arg1[%c0, %c0_0, %c0_1] : memref<1x4x256xf32, #tpu.memory_space<vmem>>, vector<1x4x256xf32>
    %1 = vector.shape_cast %0 : vector<1x4x256xf32> to vector<4x256xf32>
    %cst = arith.constant dense<0.000000e+00> : vector<4xf32>
    %2 = vector.multi_reduction <add>, %1, %cst [1] : vector<4x256xf32> to vector<4xf32>
    %3 = vector.shape_cast %2 : vector<4xf32> to vector<4x1xf32>
    %cst_2 = arith.constant 2.560000e+02 : f32
    %4 = vector.broadcast %cst_2 : f32 to vector<4x1xf32>
    %5 = arith.divf %3, %4 : vector<4x1xf32>
    %6 = vector.broadcast %5 : vector<4x1xf32> to vector<4x256xf32>
    %7 = arith.subf %1, %6 : vector<4x256xf32>
    %8 = arith.mulf %7, %7 : vector<4x256xf32>
    %cst_3 = arith.constant dense<0.000000e+00> : vector<4xf32>
    %9 = vector.multi_reduction <add>, %8, %cst_3 [1] : vector<4x256xf32> to vector<4xf32>
    %10 = vector.shape_cast %9 : vector<4xf32> to vector<4x1xf32>
    %cst_4 = arith.constant 2.560000e+02 : f32
    %11 = vector.broadcast %cst_4 : f32 to vector<4x1xf32>
    %12 = arith.divf %10, %11 : vector<4x1xf32>
    %13 = vector.broadcast %5 : vector<4x1xf32> to vector<4x256xf32>
    %14 = arith.subf %1, %13 : vector<4x256xf32>
    %cst_5 = arith.constant 9.99999974E-6 : f32
    %15 = vector.broadcast %cst_5 : f32 to vector<4x1xf32>
    %16 = arith.addf %12, %15 : vector<4x1xf32>
    %17 = math.rsqrt %16 : vector<4x1xf32>
    %18 = vector.broadcast %17 : vector<4x1xf32> to vector<4x256xf32>
    %19 = arith.mulf %14, %18 : vector<4x256xf32>
    %cst_6 = arith.constant 0.000000e+00 : f32
    %20 = vector.broadcast %cst_6 : f32 to vector<4x256xf32>
    %21 = arith.maximumf %19, %20 : vector<4x256xf32>
    %c0_7 = arith.constant 0 : index
    %c0_8 = arith.constant 0 : index
    %22 = vector.load %arg2[%c0_7, %c0_8] : memref<8x4xf32, #tpu.memory_space<vmem>>, vector<8x4xf32>
    %cst_9 = arith.constant dense<0.000000e+00> : vector<8x256xf32>
    %23 = tpu.matmul %22, %21, %cst_9 {dimension_numbers = #tpu.dot_dimension_numbers<[1], [0], [0], [1], [0, 0, 1, 1], [], []>} : vector<8x4xf32>, vector<4x256xf32>, vector<8x256xf32> -> vector<8x256xf32>
    %24 = vector.shape_cast %23 : vector<8x256xf32> to vector<8x128x2xf32>
    %cst_10 = arith.constant dense<0xFF800000> : vector<8x128xf32>
    %25 = vector.multi_reduction <maximumf>, %24, %cst_10 [2] : vector<8x128x2xf32> to vector<8x128xf32>
    %26 = vector.shape_cast %25 : vector<8x128xf32> to vector<8x8x2x8xf32>
    %cst_11 = arith.constant dense<0xFF800000> : vector<8x8x8xf32>
    %27 = vector.multi_reduction <maximumf>, %26, %cst_11 [2] : vector<8x8x2x8xf32> to vector<8x8x8xf32>
    %28 = vector.shape_cast %27 : vector<8x8x8xf32> to vector<1x1x512xf32>
    %c0_12 = arith.constant 0 : index
    %c0_13 = arith.constant 0 : index
    %c0_14 = arith.constant 0 : index
    %29 = vector.load %arg3[%c0_12, %c0_13, %c0_14] : memref<1x1x512xf32, #tpu.memory_space<vmem>>, vector<1x1x512xf32>
    tpu.vector_store %arg3[%c0_12, %c0_13, %c0_14], %28 {strides = array<i32>} : memref<1x1x512xf32, #tpu.memory_space<vmem>>, vector<1x1x512xf32>,
    return
  }
  func.func @transform_0(%arg0: i32) -> (i32, i32, i32) {
    %c0_i32 = arith.constant 0 : i32
    %c0_i32_0 = arith.constant 0 : i32
    %c0_i32_1 = arith.constant 0 : i32
    return %arg0, %c0_i32, %c0_i32_0 : i32, i32, i32
  }
  func.func @transform_1(%arg0: i32) -> (i32, i32) {
    %c0_i32 = arith.constant 0 : i32
    %c0_i32_0 = arith.constant 0 : i32
    %c0_i32_1 = arith.constant 0 : i32
    return %c0_i32, %c0_i32_0 : i32, i32
  }
  func.func @transform_2(%arg0: i32) -> (i32, i32, i32) {
    %c0_i32 = arith.constant 0 : i32
    %c0_i32_0 = arith.constant 0 : i32
    %c0_i32_1 = arith.constant 0 : i32
    return %arg0, %c0_i32, %c0_i32_0 : i32, i32, i32
  }
}

</mosaic_0001>

<bundles_post_ra>
// kernel: dense_transition_block_encoder.1
= control target key start
LH: loop header
LB: loop body
LE: loop exit
PB: predicated region body
PF: predicated region fallthrough
CT: control target
= control target key end

     0   :  { %s9333_s9 = smov 0   ;;  %s13392_s0 = inlined_call_operand.vmem [shape: f32[2,4,256], index: 0, kind: input, shape index: {}]   ;;  %s13393_s1 = inlined_call_operand.vmem [shape: f32[8,4], index: 1, kind: input, shape index: {}]   ;;  %s13394_s2 = inlined_call_operand.vmem [shape: f32[2,1,512], index: 2, kind: output, shape index: {}]  }
   0x1 LB: > { %s9145_s10 = sadd.s32 4294967295, %s9247_s9   ;;  %p9149_p0 = scmp.ge.s32.totalorder %s9247_s9, 1  ;;  %s9247_s9 = sphi %s9333_s9, %s12_s9  }
   0x2   : > { %p112_p1 = scmp.lt.s32.totalorder %s9247_s9, 3 }
   0x4   : > { %p113_p2 = pnand %p9149_p0, %p112_p1 }
   0x6   : > { %116 = sbr.rel (%p113_p2) target bundleno = 1469 (0x5bd), region = 28 }
   0xb   : > { %p133_p3 = scmp.lt.s32.totalorder %s9145_s10, 1  ;;  %vm146_vm0 = vcmask 1043456   ;;  %v9249_v5 = vmov 839922192   ;;  %v13428_v7 = vlaneseq  ;;  %v9250_v20 = vmov 0.0   ;;  %v187_v29 = vld [vmem:[%s13393_s1] sm:$0xff] }
   0xc   : > { %v156_v6 = vunpack.c.l.s4 %v9249_v5  ;;  %262 = vmatprep.mubr.f32.mxu0 %v9250_v20  ;;  %vm190_vm1 = vcmask 31744   ;;  %s9251_s17 = smov 122   ;;  %s9252_s18 = smov 126   ;;  %vm2825_vm2 = vcmask 15360   ;;  %vm8725_vm3 = vcmask 130112  }
   0xd   : > { %s13855_s10 = smov (!%p133_p3, %s9145_s10), 1  ;;  %v9350_v9 = vshrl.u32 %v13428_v7, 7  ;;  %s9253_s19 = smov 108   ;;  %vm8732_vm4 = vcmask 195712   ;;  %vm8739_vm5 = vcmask 261312   ;;  %vm8753_vm6 = vcmask 392512  }
   0xe   : > { %s9158_s11 = sshll.u32 %s13855_s10, 3  ;;  %v157_v8 = vunpack.c.0.s8 %v156_v6  ;;  %s9254_s20 = smov 124   ;;  %vm8746_vm7 = vcmask 326912   ;;  %vm8760_vm8 = vcmask 458112   ;;  %vm8767_vm9 = vcmask 523712  }
   0xf   : > { %s137_s14 = scalar_lea.vmem %s13392_s0, %s9158_s11  ;;  %13514 = vst [vmem:[#allocation2_spill] sm:$0xff] %v9350_v9  ;;  %s9255_s21 = smov 104   ;;  %vm8774_vm10 = vcmask 589312   ;;  %vm8781_vm11 = vcmask 654912   ;;  %vm8788_vm12 = vcmask 720512   ;;  %vm8795_vm13 = vcmask 786112  }
  0x10   : > { %v142_v0 = vld [vmem:[%s137_s14] sm:$0xff]  ;;  %v160_v10 = vsub.s32 %v157_v8, %v9350_v9  ;;  %s9256_s22 = smov 120   ;;  %s9257_s23 = smov 100   ;;  %vm8802_vm14 = vcmask 851712   ;;  %vm8809_vm15 = vcmask 917312  }
  0x11   : > { %v144_v1 = vcombine.high %v142_v0, %v142_v0  ;;  %v147_v2 = vsel %vm146_vm0, %v142_v0, 0.0  ;;  %s9258_s24 = smov 118   ;;  %s13406_s25 = smov 96  }
  0x12   : > { %s9260_s26 = smov 116   ;;  %s13404_s27 = smov 92  }
  0x13   : > { %v148_v3 = vsel %vm146_vm0, %v144_v1, 0.0  ;;  %s9262_s28 = smov 114   ;;  %s13402_s29 = smov 88  }
  0x14   : > { %v149_v4 = vadd.f32 %v148_v3, %v147_v2  ;;  %s9264_s30 = smov 112   ;;  %s13400_s3 = smov 84  }
  0x15   : > { %s9266_s4 = smov 110   ;;  %s13398_s5 = smov 80  }
  0x16   : > { %150 = vadd.xlane.f32.xlu0 %v149_v4  ;;  %s9268_s6 = smov 106   ;;  %s13396_s7 = smov 76  }
  0x17   : > { %s9270_s8 = smov 102   ;;  %s13395_s11 = smov 72  }
  0x18   : > { %s9272_s12 = smov 98   ;;  %s13397_s13 = smov 68  }
  0x19   : > { %s9274_s14 = smov 94   ;;  %s13399_s15 = smov 64  }
  0x1a   : > { %s9276_s16 = smov 90  }
  0x9f   : > { %v151_v11 = vpop.xlane.xlu0 %150 }
  0xa0   : > { %v153_v12 = vmul.f32 0.00390625, %v151_v11 }
  0xa2   : > { %v161_v13 = vrot.slane %v153_v12, %v160_v10 }
  0xa4   : > { %v163_v14 = vsub.f32 %v142_v0, %v161_v13 }
  0xa6   : > { %v164_v15 = vmul.f32 %v163_v14, %v163_v14 }
  0xa8   : > { %v166_v16 = vcombine.high %v164_v15, %v164_v15  ;;  %v168_v17 = vsel %vm146_vm0, %v164_v15, 0.0 }
  0xaa   : > { %v169_v18 = vsel %vm146_vm0, %v166_v16, 0.0 }
  0xab   : > { %v170_v19 = vadd.f32 %v169_v18, %v168_v17 }
  0xad   : > { %171 = vadd.xlane.f32.xlu0 %v170_v19 }
 0x136   : > { %v172_v21 = vpop.xlane.xlu0 %171 }
 0x137   : > { %v173_v22 = vmul.f32 0.00390625, %v172_v21 }
 0x139   : > { %v174_v23 = vadd.f32 1e-05, %v173_v22 }
 0x13b   : > { %9239 = vrsqrt.f32 %v174_v23 }
 0x148   : > { %v9240_v24 = vpop.eup %9239 }
 0x149   : > { %v183_v25 = vrot.slane %v9240_v24, %v160_v10 }
 0x14b   : > { %v185_v26 = vmul.f32 %v183_v25, %v163_v14 }
 0x14d   : > { %v186_v27 = vmax.f32 %v185_v26, 0.0 }
 0x14f   : > { %v189_v28 = vcombine.high %v186_v27, %v186_v27 }
 0x151   : > { %9153 = vmatprep.subr.msk.mxu0 %vm146_vm0, %v189_v28  ;;  %v9314_v28 = vmov 1983009808  }
 0x152   : > { %9154 = vmatpush1.msk.msra.mxu0 %vm146_vm0, %v186_v27  ;;  %vm8816_vm0 = vcmask 982912  }
 0x153   : > { %9155 = vmatmul.mubr.msk.f32.vlgmr.msra.gmra.mxu0 %vm190_vm1, %v187_v29  ;;  %v652_v29 = vunpack.c.l.s4 %v9314_v28  ;;  %v9315_v28 = vmov 1934713408   ;;  %vm8823_vm1 = vcmask 1048512  }
 0x213   : > { %v9360_v30 = vpop.f32.mrf.mxu0 }
 0x214   : > { %276 = vrot.lane.b32.xlu0 %v9360_v30, %s9251_s17  ;;  %270 = vrot.lane.b32.xlu1 %v9360_v30, %s9252_s18 }
 0x215   : > { %v9474_v31 = vpop.f32.mrf.mxu0 }
 0x216   : > { %13515 = vst [vmem:[#allocation3_spill] sm:$0xff] %v9474_v31 }
 0x218   : > { %297 = vrot.lane.b32.xlu0 %v9360_v30, %s9253_s19  ;;  %273 = vrot.lane.b32.xlu1 %v9360_v30, %s9254_s20 }
 0x21c   : > { %303 = vrot.lane.b32.xlu0 %v9360_v30, %s9255_s21  ;;  %279 = vrot.lane.b32.xlu1 %v9360_v30, %s9256_s22 }
 0x220   : > { %309 = vrot.lane.b32.xlu0 %v9360_v30, %s9257_s23  ;;  %282 = vrot.lane.b32.xlu1 %v9360_v30, %s9258_s24 }
 0x224   : > { %315 = vrot.lane.b32.xlu0 %v9360_v30, %s13406_s25  ;;  %285 = vrot.lane.b32.xlu1 %v9360_v30, %s9260_s26  ;;  %s13412_s25 = smov 66  }
 0x228   : > { %321 = vrot.lane.b32.xlu0 %v9360_v30, %s13404_s27  ;;  %288 = vrot.lane.b32.xlu1 %v9360_v30, %s9262_s28  ;;  %s13410_s27 = smov 70  }
 0x22c   : > { %327 = vrot.lane.b32.xlu0 %v9360_v30, %s13402_s29  ;;  %291 = vrot.lane.b32.xlu1 %v9360_v30, %s9264_s30  ;;  %s13408_s29 = smov 74  }
 0x230   : > { %333 = vrot.lane.b32.xlu0 %v9360_v30, %s13400_s3  ;;  %294 = vrot.lane.b32.xlu1 %v9360_v30, %s9266_s4  ;;  %s9282_s3 = smov 78  }
 0x234   : > { %339 = vrot.lane.b32.xlu0 %v9360_v30, %s13398_s5  ;;  %300 = vrot.lane.b32.xlu1 %v9360_v30, %s9268_s6  ;;  %s9280_s5 = smov 82  }
 0x238   : > { %345 = vrot.lane.b32.xlu0 %v9360_v30, %s13396_s7  ;;  %306 = vrot.lane.b32.xlu1 %v9360_v30, %s9270_s8  ;;  %s9278_s7 = smov 86  }
 0x23c   : > { %351 = vrot.lane.b32.xlu0 %v9360_v30, %s13395_s11  ;;  %312 = vrot.lane.b32.xlu1 %v9360_v30, %s9272_s12  ;;  %s13401_s11 = smov 60  }
 0x240   : > { %357 = vrot.lane.b32.xlu0 %v9360_v30, %s13397_s13  ;;  %318 = vrot.lane.b32.xlu1 %v9360_v30, %s9274_s14  ;;  %s13403_s13 = smov 56  }
 0x244   : > { %363 = vrot.lane.b32.xlu0 %v9360_v30, %s13399_s15  ;;  %324 = vrot.lane.b32.xlu1 %v9360_v30, %s9276_s16  ;;  %s13405_s15 = smov 52  }
 0x248   : > { %369 = vrot.lane.b32.xlu0 %v9360_v30, %s13401_s11  ;;  %330 = vrot.lane.b32.xlu1 %v9360_v30, %s9278_s7  ;;  %s13407_s11 = smov 48  }
 0x24c   : > { %375 = vrot.lane.b32.xlu0 %v9360_v30, %s13403_s13  ;;  %336 = vrot.lane.b32.xlu1 %v9360_v30, %s9280_s5  ;;  %s13409_s13 = smov 44  }
 0x250   : > { %381 = vrot.lane.b32.xlu0 %v9360_v30, %s13405_s15  ;;  %342 = vrot.lane.b32.xlu1 %v9360_v30, %s9282_s3  ;;  %s13411_s15 = smov 40  }
 0x254   : > { %387 = vrot.lane.b32.xlu0 %v9360_v30, %s13407_s11  ;;  %348 = vrot.lane.b32.xlu1 %v9360_v30, %s13408_s29  ;;  %s13413_s11 = smov 36   ;;  %s13414_s29 = smov 62  }
 0x258   : > { %393 = vrot.lane.b32.xlu0 %v9360_v30, %s13409_s13  ;;  %354 = vrot.lane.b32.xlu1 %v9360_v30, %s13410_s27  ;;  %s13415_s13 = smov 32   ;;  %s13416_s27 = smov 58  }
 0x25c   : > { %399 = vrot.lane.b32.xlu0 %v9360_v30, %s13411_s15  ;;  %360 = vrot.lane.b32.xlu1 %v9360_v30, %s13412_s25  ;;  %s13417_s15 = smov 28   ;;  %s13418_s25 = smov 54  }
 0x260   : > { %405 = vrot.lane.b32.xlu0 %v9360_v30, %s13413_s11  ;;  %366 = vrot.lane.b32.xlu1 %v9360_v30, %s13414_s29  ;;  %s13419_s11 = smov 24   ;;  %s13420_s29 = smov 50  }
 0x264   : > { %411 = vrot.lane.b32.xlu0 %v9360_v30, %s13415_s13  ;;  %372 = vrot.lane.b32.xlu1 %v9360_v30, %s13416_s27  ;;  %s13421_s13 = smov 20   ;;  %s13422_s27 = smov 46  }
 0x268   : > { %417 = vrot.lane.b32.xlu0 %v9360_v30, %s13417_s15  ;;  %378 = vrot.lane.b32.xlu1 %v9360_v30, %s13418_s25  ;;  %s13423_s15 = smov 16   ;;  %s13424_s25 = smov 42  }
 0x26c   : > { %423 = vrot.lane.b32.xlu0 %v9360_v30, %s13419_s11  ;;  %384 = vrot.lane.b32.xlu1 %v9360_v30, %s13420_s29  ;;  %s13425_s11 = smov 12   ;;  %s9302_s29 = smov 38  }
 0x270   : > { %429 = vrot.lane.b32.xlu0 %v9360_v30, %s13421_s13  ;;  %390 = vrot.lane.b32.xlu1 %v9360_v30, %s13422_s27  ;;  %s13426_s13 = smov 8   ;;  %s9304_s27 = smov 34  }
 0x274   : > { %435 = vrot.lane.b32.xlu0 %v9360_v30, %s13423_s15  ;;  %396 = vrot.lane.b32.xlu1 %v9360_v30, %s13424_s25  ;;  %s13427_s15 = smov 4   ;;  %s9306_s25 = smov 30  }
 0x278   : > { %441 = vrot.lane.b32.xlu0 %v9360_v30, %s13425_s11  ;;  %402 = vrot.lane.b32.xlu1 %v9360_v30, %s9302_s29  ;;  %s9307_s11 = smov 26  }
 0x27c   : > { %447 = vrot.lane.b32.xlu0 %v9360_v30, %s13426_s13  ;;  %408 = vrot.lane.b32.xlu1 %v9360_v30, %s9304_s27  ;;  %s9308_s13 = smov 22  }
 0x280   : > { %453 = vrot.lane.b32.xlu0 %v9360_v30, %s13427_s15  ;;  %414 = vrot.lane.b32.xlu1 %v9360_v30, %s9306_s25  ;;  %s9309_s15 = smov 18  }
 0x284   : > { %420 = vrot.lane.b32.xlu1 %v9360_v30, %s9307_s11  ;;  %460 = vrot.lane.b32.xlu0 %v9474_v31, %s9252_s18  ;;  %s9310_s18 = smov 14  }
 0x286   : > { %v9480_v32 = vpop.permute.xlu0 %276  ;;  %v9482_v33 = vpop.permute.xlu1 %270 }
 0x288   : > { %426 = vrot.lane.b32.xlu1 %v9360_v30, %s9308_s13  ;;  %466 = vrot.lane.b32.xlu0 %v9474_v31, %s9251_s17  ;;  %s9311_s17 = smov 10  }
 0x28a   : > { %v9488_v34 = vpop.permute.xlu0 %297  ;;  %v9490_v35 = vpop.permute.xlu1 %273 }
 0x28c   : > { %432 = vrot.lane.b32.xlu1 %v9360_v30, %s9309_s15  ;;  %472 = vrot.lane.b32.xlu0 %v9474_v31, %s9258_s24  ;;  %s9312_s24 = smov 6  }
 0x28e   : > { %v9496_v36 = vpop.permute.xlu0 %303  ;;  %v9498_v37 = vpop.permute.xlu1 %279 }
 0x290   : > { %438 = vrot.lane.b32.xlu1 %v9360_v30, %s9310_s18  ;;  %478 = vrot.lane.b32.xlu0 %v9474_v31, %s9262_s28  ;;  %s9313_s28 = smov 2  }
 0x292   : > { %v9504_v38 = vpop.permute.xlu0 %309  ;;  %v9506_v39 = vpop.permute.xlu1 %282 }
 0x294   : > { %444 = vrot.lane.b32.xlu1 %v9360_v30, %s9311_s17  ;;  %484 = vrot.lane.b32.xlu0 %v9474_v31, %s9266_s4  ;;  %s13527_s4 = smov 58  }
 0x296   : > { %v9512_v40 = vpop.permute.xlu0 %315  ;;  %v9514_v41 = vpop.permute.xlu1 %285 }
 0x298   : > { %450 = vrot.lane.b32.xlu1 %v9360_v30, %s9312_s24  ;;  %490 = vrot.lane.b32.xlu0 %v9474_v31, %s9268_s6  ;;  %s13531_s6 = smov 54  }
 0x29a   : > { %v9520_v42 = vpop.permute.xlu0 %321  ;;  %v9522_v43 = vpop.permute.xlu1 %288 }
 0x29c   : > { %456 = vrot.lane.b32.xlu1 %v9360_v30, %s9313_s28  ;;  %496 = vrot.lane.b32.xlu0 %v9474_v31, %s9270_s8  ;;  %s13534_s8 = smov 50  }
 0x29e   : > { %v9528_v44 = vpop.permute.xlu0 %327  ;;  %v9530_v45 = vpop.permute.xlu1 %291 }
 0x2a0   : > { %463 = vrot.lane.b32.xlu1 %v9474_v31, %s9254_s20  ;;  %502 = vrot.lane.b32.xlu0 %v9474_v31, %s9272_s12  ;;  %s13517_s20 = smov 96   ;;  %s13537_s12 = smov 72  }
 0x2a2   : > { %v9536_v46 = vpop.permute.xlu0 %333  ;;  %v9538_v47 = vpop.permute.xlu1 %294 }
 0x2a4   : > { %469 = vrot.lane.b32.xlu1 %v9474_v31, %s9256_s22  ;;  %508 = vrot.lane.b32.xlu0 %v9474_v31, %s9274_s14  ;;  %s13519_s22 = smov 92   ;;  %s13538_s14 = smov 46  }
 0x2a6   : > { %v9544_v48 = vpop.permute.xlu0 %339  ;;  %v9546_v49 = vpop.permute.xlu1 %300 }
 0x2a8   : > { %475 = vrot.lane.b32.xlu1 %v9474_v31, %s9260_s26  ;;  %514 = vrot.lane.b32.xlu0 %v9474_v31, %s9276_s16  ;;  %s13522_s26 = smov 88   ;;  %s13541_s16 = smov 68  }
 0x2aa   : > { %v9552_v50 = vpop.permute.xlu0 %345  ;;  %v9554_v51 = vpop.permute.xlu1 %306 }
 0x2ac   : > { %481 = vrot.lane.b32.xlu1 %v9474_v31, %s9264_s30  ;;  %520 = vrot.lane.b32.xlu0 %v9474_v31, %s9278_s7  ;;  %s13523_s30 = smov 62   ;;  %s13533_s7 = smov 76  }
 0x2ae   : > { %v9560_v52 = vpop.permute.xlu0 %351  ;;  %v9562_v53 = vpop.permute.xlu1 %312 }
 0x2b0   : > { %487 = vrot.lane.b32.xlu1 %v9474_v31, %s9253_s19  ;;  %526 = vrot.lane.b32.xlu0 %v9474_v31, %s9280_s5  ;;  %s13516_s19 = smov 74   ;;  %s13530_s5 = smov 80  }
 0x2b2   : > { %v9568_v54 = vpop.permute.xlu0 %357  ;;  %v9570_v55 = vpop.permute.xlu1 %318 }
 0x2b4   : > { %493 = vrot.lane.b32.xlu1 %v9474_v31, %s9255_s21  ;;  %532 = vrot.lane.b32.xlu0 %v9474_v31, %s9282_s3  ;;  %s13518_s21 = smov 70   ;;  %s13526_s3 = smov 84  }
 0x2b6   : > { %v9576_v56 = vpop.permute.xlu0 %363  ;;  %v9578_v57 = vpop.permute.xlu1 %324 }
 0x2b8   : > { %499 = vrot.lane.b32.xlu1 %v9474_v31, %s9257_s23  ;;  %538 = vrot.lane.b32.xlu0 %v9474_v31, %s13516_s19  ;;  %s13520_s23 = smov 66   ;;  %s13542_s19 = smov 42  }
 0x2ba   : > { %v9584_v58 = vpop.permute.xlu0 %369  ;;  %v9586_v59 = vpop.permute.xlu1 %330 }
 0x2bc   : > { %505 = vrot.lane.b32.xlu1 %v9474_v31, %s13517_s20  ;;  %544 = vrot.lane.b32.xlu0 %v9474_v31, %s13518_s21  ;;  %s13544_s20 = smov 64   ;;  %s13547_s21 = smov 60  }
 0x2be   : > { %v9592_v60 = vpop.permute.xlu0 %375  ;;  %v9594_v61 = vpop.permute.xlu1 %336 }
 0x2c0   : > { %511 = vrot.lane.b32.xlu1 %v9474_v31, %s13519_s22  ;;  %550 = vrot.lane.b32.xlu0 %v9474_v31, %s13520_s23  ;;  %s13550_s22 = smov 56   ;;  %s13583_s23 = smov 12  }
 0x2c2   : > { %v9600_v62 = vpop.permute.xlu0 %381  ;;  %v9602_v63 = vpop.permute.xlu1 %342 }
 0x2c3   : > { %13521 = vst [vmem:[#allocation4_spill] sm:$0xff] %v9602_v63 }
 0x2c4   : > { %517 = vrot.lane.b32.xlu1 %v9474_v31, %s13522_s26  ;;  %556 = vrot.lane.b32.xlu0 %v9474_v31, %s13523_s30  ;;  %s13586_s26 = smov 8   ;;  %s13589_s30 = smov 4  }
 0x2c6   : > { %v9608_v0 = vpop.permute.xlu0 %387  ;;  %v9610_v1 = vpop.permute.xlu1 %348 }
 0x2c7   : > { %13524 = vst [vmem:[#allocation5_spill] sm:$0xff] %v9608_v0  ;;  %13525 = vst [vmem:[#allocation6_spill] sm:$0xff] %v9610_v1  ;;  %v650_v0 = vcombine.high %v9360_v30, %v9490_v35 }
 0x2c8   : > { %523 = vrot.lane.b32.xlu1 %v9474_v31, %s13526_s3  ;;  %562 = vrot.lane.b32.xlu0 %v9474_v31, %s13527_s4  ;;  %s9152_s3 = sshll.u32 %s13855_s10, 2 }
 0x2ca   : > { %v9616_v2 = vpop.permute.xlu0 %393  ;;  %v9618_v3 = vpop.permute.xlu1 %354 }
 0x2cb   : > { %13528 = vst [vmem:[#allocation7_spill] sm:$0xff] %v9616_v2  ;;  %13529 = vst [vmem:[#allocation8_spill] sm:$0xff] %v9618_v3 }
 0x2cc   : > { %529 = vrot.lane.b32.xlu1 %v9474_v31, %s13530_s5  ;;  %568 = vrot.lane.b32.xlu0 %v9474_v31, %s13531_s6  ;;  %s141_s6 = scalar_lea.vmem %s13394_s2, %s9152_s3 }
 0x2ce   : > { %v9624_v4 = vpop.permute.xlu0 %399  ;;  %v9626_v5 = vpop.permute.xlu1 %360 }
 0x2cf   : > { %13532 = vst [vmem:[#allocation9_spill] sm:$0xff] %v9624_v4 }
 0x2d0   : > { %535 = vrot.lane.b32.xlu1 %v9474_v31, %s13533_s7  ;;  %574 = vrot.lane.b32.xlu0 %v9474_v31, %s13534_s8 }
 0x2d2   : > { %v9632_v6 = vpop.permute.xlu0 %405  ;;  %v9634_v8 = vpop.permute.xlu1 %366 }
 0x2d3   : > { %13535 = vst [vmem:[#allocation10_spill] sm:$0xff] %v9632_v6  ;;  %13536 = vst [vmem:[#allocation11_spill] sm:$0xff] %v9634_v8 }
 0x2d4   : > { %541 = vrot.lane.b32.xlu1 %v9474_v31, %s13537_s12  ;;  %580 = vrot.lane.b32.xlu0 %v9474_v31, %s13538_s14 }
 0x2d6   : > { %v9640_v10 = vpop.permute.xlu0 %411  ;;  %v9642_v11 = vpop.permute.xlu1 %372 }
 0x2d7   : > { %13539 = vst [vmem:[#allocation12_spill] sm:$0xff] %v9640_v10  ;;  %13540 = vst [vmem:[#allocation13_spill] sm:$0xff] %v9642_v11 }
 0x2d8   : > { %547 = vrot.lane.b32.xlu1 %v9474_v31, %s13541_s16  ;;  %586 = vrot.lane.b32.xlu0 %v9474_v31, %s13542_s19 }
 0x2da   : > { %v9648_v12 = vpop.permute.xlu0 %417  ;;  %v9650_v13 = vpop.permute.xlu1 %378 }
 0x2db   : > { %13543 = vst [vmem:[#allocation14_spill] sm:$0xff] %v9650_v13 }
 0x2dc   : > { %553 = vrot.lane.b32.xlu1 %v9474_v31, %s13544_s20  ;;  %592 = vrot.lane.b32.xlu0 %v9474_v31, %s9302_s29  ;;  %s13553_s29 = smov 52  }
 0x2de   : > { %v9656_v14 = vpop.permute.xlu0 %423  ;;  %v9658_v15 = vpop.permute.xlu1 %384 }
 0x2df   : > { %13545 = vst [vmem:[#allocation15_spill] sm:$0xff] %v9656_v14  ;;  %13546 = vst [vmem:[#allocation16_spill] sm:$0xff] %v9658_v15  ;;  %v1241_v3 = vcombine.low %v9650_v13, %v9658_v15 }
 0x2e0   : > { %559 = vrot.lane.b32.xlu1 %v9474_v31, %s13547_s21  ;;  %598 = vrot.lane.b32.xlu0 %v9474_v31, %s9304_s27  ;;  %s13556_s27 = smov 48  }
 0x2e2   : > { %v9664_v16 = vpop.permute.xlu0 %429  ;;  %v9666_v17 = vpop.permute.xlu1 %390 }
 0x2e3   : > { %13548 = vst [vmem:[#allocation17_spill] sm:$0xff] %v9664_v16  ;;  %13549 = vst [vmem:[#allocation18_spill] sm:$0xff] %v9666_v17 }
 0x2e4   : > { %565 = vrot.lane.b32.xlu1 %v9474_v31, %s13550_s22  ;;  %604 = vrot.lane.b32.xlu0 %v9474_v31, %s9306_s25  ;;  %s13559_s25 = smov 44  }
 0x2e6   : > { %v9672_v18 = vpop.permute.xlu0 %435  ;;  %v9674_v19 = vpop.permute.xlu1 %396 }
 0x2e7   : > { %13551 = vst [vmem:[#allocation19_spill] sm:$0xff] %v9672_v18  ;;  %13552 = vst [vmem:[#allocation20_spill] sm:$0xff] %v9674_v19  ;;  %v666_v19 = vcombine.high %v9482_v33, %v9480_v32 }
 0x2e8   : > { %571 = vrot.lane.b32.xlu1 %v9474_v31, %s13553_s29  ;;  %610 = vrot.lane.b32.xlu0 %v9474_v31, %s9307_s11  ;;  %s13562_s11 = smov 40  }
 0x2ea   : > { %v9680_v20 = vpop.permute.xlu0 %441  ;;  %v9682_v21 = vpop.permute.xlu1 %402 }
 0x2eb   : > { %13554 = vst [vmem:[#allocation21_spill] sm:$0xff] %v9680_v20  ;;  %13555 = vst [vmem:[#allocation22_spill] sm:$0xff] %v9682_v21  ;;  %v653_v20 = vunpack.c.0.s8 %v652_v29 }
 0x2ec   : > { %577 = vrot.lane.b32.xlu1 %v9474_v31, %s13556_s27  ;;  %616 = vrot.lane.b32.xlu0 %v9474_v31, %s9308_s13  ;;  %s13565_s13 = smov 36  }
 0x2ed   : > { %v9733_v29 = vsub.s32 %v653_v20, %v9350_v9 }
 0x2ee   : > { %v9688_v22 = vpop.permute.xlu0 %447  ;;  %v9690_v23 = vpop.permute.xlu1 %408 }
 0x2ef   : > { %13557 = vst [vmem:[#allocation23_spill] sm:$0xff] %v9688_v22  ;;  %13558 = vst [vmem:[#allocation24_spill] sm:$0xff] %v9690_v23 }
 0x2f0   : > { %583 = vrot.lane.b32.xlu1 %v9474_v31, %s13559_s25  ;;  %622 = vrot.lane.b32.xlu0 %v9474_v31, %s9309_s15  ;;  %s13568_s15 = smov 32  }
 0x2f2   : > { %v9696_v24 = vpop.permute.xlu0 %453  ;;  %v9698_v25 = vpop.permute.xlu1 %414 }
 0x2f3   : > { %13560 = vst [vmem:[#allocation25_spill] sm:$0xff] %v9696_v24  ;;  %13561 = vst [vmem:[#allocation26_spill] sm:$0xff] %v9698_v25  ;;  %v649_v24 = vcombine.low %v9360_v30, %v9490_v35  ;;  %v664_v30 = vrot.slane %v650_v0, %v9733_v29 }
 0x2f4   : > { %589 = vrot.lane.b32.xlu1 %v9474_v31, %s13562_s11  ;;  %628 = vrot.lane.b32.xlu0 %v9474_v31, %s9310_s18  ;;  %s13571_s18 = smov 28  }
 0x2f5   : > { %v657_v4 = vrot.slane %v649_v24, %v9733_v29 }
 0x2f6   : > { %v9704_v26 = vpop.permute.xlu1 %420  ;;  %v9706_v27 = vpop.permute.xlu0 %460 }
 0x2f7   : > { %13563 = vst [vmem:[#allocation27_spill] sm:$0xff] %v9704_v26  ;;  %13564 = vst [vmem:[#allocation28_spill] sm:$0xff] %v9706_v27 }
 0x2f8   : > { %595 = vrot.lane.b32.xlu1 %v9474_v31, %s13565_s13  ;;  %634 = vrot.lane.b32.xlu0 %v9474_v31, %s9311_s17  ;;  %s13574_s17 = smov 24  }
 0x2fa   : > { %v9712_v7 = vpop.permute.xlu1 %426  ;;  %v9714_v18 = vpop.permute.xlu0 %466 }
 0x2fb   : > { %13566 = vst [vmem:[#allocation29_spill] sm:$0xff] %v9712_v7  ;;  %13567 = vst [vmem:[#allocation30_spill] sm:$0xff] %v9714_v18  ;;  %v716_v18 = vunpack.c.l.s4 %v9315_v28 }
 0x2fc   : > { %601 = vrot.lane.b32.xlu1 %v9474_v31, %s13568_s15  ;;  %640 = vrot.lane.b32.xlu0 %v9474_v31, %s9312_s24  ;;  %s13577_s24 = smov 20  }
 0x2fd   : > { %v717_v28 = vunpack.c.0.s8 %v716_v18  ;;  %v698_v18 = vcombine.high %v9506_v39, %v9522_v43 }
 0x2fe   : > { %v9720_v27 = vpop.permute.xlu1 %432  ;;  %v9722_v22 = vpop.permute.xlu0 %472 }
 0x2ff   : > { %13569 = vst [vmem:[#allocation31_spill] sm:$0xff] %v9720_v27  ;;  %13570 = vst [vmem:[#allocation32_spill] sm:$0xff] %v9722_v22  ;;  %v665_v22 = vcombine.low %v9482_v33, %v9480_v32  ;;  %v697_v32 = vcombine.low %v9506_v39, %v9522_v43  ;;  %v9758_v33 = vsub.s32 %v717_v28, %v9350_v9 }
 0x300   : > { %607 = vrot.lane.b32.xlu1 %v9474_v31, %s13571_s18  ;;  %646 = vrot.lane.b32.xlu0 %v9474_v31, %s9313_s28  ;;  %v682_v28 = vcombine.high %v9498_v37, %v9514_v41  ;;  %v801_v39 = vcombine.low %v9538_v47, %v9546_v49  ;;  %v818_v43 = vcombine.high %v9496_v36, %v9504_v38  ;;  %s13580_s28 = smov 16  }
 0x301   : > { %v673_v35 = vrot.slane %v665_v22, %v9733_v29  ;;  %v833_v22 = vcombine.low %v9554_v51, %v9562_v53  ;;  %v705_v9 = vrot.slane %v697_v32, %v9733_v29 }
 0x302   : > { %v9737_v2 = vpop.permute.xlu1 %438  ;;  %v9739_v17 = vpop.permute.xlu0 %478 }
 0x303   : > { %13572 = vst [vmem:[#allocation33_spill] sm:$0xff] %v9737_v2  ;;  %13573 = vst [vmem:[#allocation34_spill] sm:$0xff] %v9739_v17  ;;  %v680_v2 = vrot.slane %v666_v19, %v9733_v29  ;;  %v713_v17 = vcombine.low %v657_v4, %v673_v35  ;;  %v714_v21 = vcombine.high %v657_v4, %v673_v35 }
 0x304   : > { %613 = vrot.lane.b32.xlu1 %v9474_v31, %s13574_s17  ;;  %v817_v19 = vcombine.low %v9496_v36, %v9504_v38  ;;  %v681_v4 = vcombine.low %v9498_v37, %v9514_v41  ;;  %v785_v37 = vcombine.low %v9530_v45, %v9488_v34  ;;  %v9791_v41 = vrot.slane %v833_v22, %v9733_v29 }
 0x305   : > { %v729_v0 = vcombine.low %v664_v30, %v680_v2  ;;  %v696_v22 = vrot.slane %v682_v28, %v9733_v29 }
 0x306   : > { %v9748_v20 = vpop.permute.xlu1 %444  ;;  %v9750_v6 = vpop.permute.xlu0 %484  ;;  %v9797_v38 = vrot.slane %v817_v19, %v9733_v29  ;;  %v9812_v19 = vrot.slane %v801_v39, %v9733_v29  ;;  %v9827_v39 = vrot.slane %v785_v37, %v9733_v29 }
 0x307   : > { %13575 = vst [vmem:[#allocation35_spill] sm:$0xff] %v9748_v20  ;;  %13576 = vst [vmem:[#allocation36_spill] sm:$0xff] %v9750_v6  ;;  %v730_v6 = vcombine.high %v664_v30, %v680_v2  ;;  %v9782_v20 = vrot.slane %v713_v17, %v9758_v33  ;;  %v712_v2 = vrot.slane %v698_v18, %v9733_v29 }
 0x308   : > { %619 = vrot.lane.b32.xlu1 %v9474_v31, %s13577_s24  ;;  %v9794_v36 = vrot.slane %v729_v0, %v9758_v33  ;;  %v689_v17 = vrot.slane %v681_v4, %v9733_v29  ;;  %v969_v30 = vcombine.low %v9586_v59, %v9594_v61  ;;  %v922_v0 = vcombine.high %v9512_v40, %v9520_v42 }
 0x309   : > { %v937_v4 = vcombine.low %v9570_v55, %v9578_v57  ;;  %v9824_v28 = vrot.slane %v730_v6, %v9758_v33  ;;  %v762_v63 = vcombine.high %v696_v22, %v712_v2 }
 0x30a   : > { %v9768_v24 = vpop.permute.xlu1 %450  ;;  %v9770_v35 = vpop.permute.xlu0 %490  ;;  %v745_v23 = vcombine.low %v689_v17, %v705_v9  ;;  %v9835_v1 = vrot.slane %v969_v30, %v9733_v29  ;;  %v9844_v37 = vrot.slane %v922_v0, %v9733_v29 }
 0x30b   : > { %13578 = vst [vmem:[#allocation37_spill] sm:$0xff] %v9768_v24  ;;  %13579 = vst [vmem:[#allocation38_spill] sm:$0xff] %v9770_v35  ;;  %v9785_v35 = vrot.slane %v714_v21, %v9758_v33  ;;  %v921_v21 = vcombine.low %v9512_v40, %v9520_v42  ;;  %v9817_v24 = vrot.slane %v818_v43, %v9733_v29 }
 0x30c   : > { %625 = vrot.lane.b32.xlu1 %v9474_v31, %s13580_s28  ;;  %v746_v40 = vcombine.high %v689_v17, %v705_v9  ;;  %v761_v42 = vcombine.low %v696_v22, %v712_v2  ;;  %v786_v17 = vcombine.high %v9530_v45, %v9488_v34  ;;  %v9851_v2 = vrot.slane %v937_v4, %v9733_v29 }
 0x30d   : > { %v9832_v43 = vrot.slane %v921_v21, %v9733_v29  ;;  %v849_v21 = vcombine.low %v9827_v39, %v9812_v19  ;;  %v1225_v22 = vcombine.low %v9592_v60, %v9600_v62  ;;  %v753_v34 = vrot.slane %v745_v23, %v9758_v33 }
 0x30e   : > { %v9804_v32 = vpop.permute.xlu1 %456  ;;  %v9806_v18 = vpop.permute.xlu0 %496  ;;  %v1193_v45 = vcombine.low %v9576_v56, %v9584_v58  ;;  %v9870_v4 = vrot.slane %v761_v42, %v9758_v33  ;;  %v1513_v23 = vcombine.low %v9712_v7, %v9720_v27  ;;  %v954_v42 = vcombine.high %v9528_v44, %v9536_v46 }
 0x30f   : > { %13581 = vst [vmem:[#allocation39_spill] sm:$0xff] %v9804_v32  ;;  %13582 = vst [vmem:[#allocation40_spill] sm:$0xff] %v9806_v18  ;;  %v953_v32 = vcombine.low %v9528_v44, %v9536_v46  ;;  %v881_v18 = vcombine.low %v9797_v38, %v9791_v41  ;;  %v9894_v15 = vrot.slane %v849_v21, %v9758_v33 }
 0x310   : > { %631 = vrot.lane.b32.xlu1 %v9474_v31, %s13583_s23  ;;  %v9897_v7 = vrot.slane %v1225_v22, %v9733_v29  ;;  %v834_v44 = vcombine.high %v9554_v51, %v9562_v53  ;;  %v9911_v46 = vrot.slane %v1193_v45, %v9733_v29  ;;  %v1465_v22 = vcombine.low %v9640_v10, %v9648_v12 }
 0x311   : > { %v9854_v30 = vrot.slane %v953_v32, %v9733_v29  ;;  %v9866_v0 = vrot.slane %v881_v18, %v9758_v33  ;;  %v760_v32 = vrot.slane %v746_v40, %v9758_v33  ;;  %v9884_v18 = vrot.slane %v762_v63, %v9758_v33 }
 0x312   : > { %v9839_v6 = vpop.permute.xlu1 %463  ;;  %v9841_v9 = vpop.permute.xlu0 %502  ;;  %v9887_v40 = vrot.slane %v786_v17, %v9733_v29  ;;  %v1497_v63 = vcombine.low %v9656_v14, %v9664_v16  ;;  %v1481_v17 = vcombine.low %v9698_v25, %v9704_v26  ;;  %v9921_v25 = vrot.slane %v1513_v23, %v9733_v29 }
 0x313   : > { %13584 = vst [vmem:[#allocation41_spill] sm:$0xff] %v9839_v6  ;;  %13585 = vst [vmem:[#allocation42_spill] sm:$0xff] %v9841_v9  ;;  %v1209_v9 = vcombine.low %v9634_v8, %v9642_v11  ;;  %v1017_v6 = vcombine.low %v9854_v30, %v9835_v1  ;;  %v9875_v8 = vrot.slane %v1241_v3, %v9733_v29 }
 0x314   : > { %637 = vrot.lane.b32.xlu1 %v9474_v31, %s13586_s26  ;;  %v985_v3 = vcombine.low %v9832_v43, %v9851_v2  ;;  %v913_v21 = vcombine.low %v9894_v15, %v9866_v0  ;;  %v802_v45 = vcombine.high %v9538_v47, %v9546_v49  ;;  %v777_v26 = vcombine.low %v9782_v20, %v753_v34 }
 0x315   : > { %v9928_v53 = vrot.slane %v1017_v6, %v9758_v33  ;;  %v779_v27 = vcombine.low %v9785_v35, %v760_v32  ;;  %v780_v14 = vcombine.high %v9785_v35, %v760_v32  ;;  %v9938_v16 = vrot.slane %v1497_v63, %v9733_v29 }
 0x316   : > { %v9879_v11 = vpop.permute.xlu1 %469  ;;  %v9881_v13 = vpop.permute.xlu0 %508  ;;  %v9944_v6 = vrot.slane %v985_v3, %v9758_v33  ;;  %v9947_v47 = vrot.slane %v954_v42, %v9733_v29  ;;  %v848_v49 = vrot.slane %v834_v44, %v9733_v29  ;;  %v781_v35 = vcombine.low %v9794_v36, %v9870_v4 }
 0x317   : > { %13587 = vst [vmem:[#allocation43_spill] sm:$0xff] %v9879_v11  ;;  %13588 = vst [vmem:[#allocation44_spill] sm:$0xff] %v9881_v13  ;;  %v9900_v13 = vrot.slane %v1209_v9, %v9733_v29  ;;  %v778_v9 = vcombine.high %v9782_v20, %v753_v34  ;;  %v1289_v11 = vcombine.low %v9897_v7, %v9875_v8  ;;  %v2829_v20 = vsel %vm2825_vm2, %v913_v21, -inf }
 0x318   : > { %643 = vrot.lane.b32.xlu1 %v9474_v31, %s13589_s30  ;;  %v9954_v34 = vrot.slane %v1465_v22, %v9733_v29  ;;  %v1561_v32 = vcombine.low %v9938_v16, %v9921_v25  ;;  %v1049_v42 = vcombine.low %v9944_v6, %v9928_v53  ;;  %v816_v44 = vrot.slane %v802_v45, %v9733_v29 }
 0x319   : > { %v1257_v23 = vcombine.low %v9911_v46, %v9900_v13  ;;  %v9969_v21 = vsel %vm2825_vm2, %v778_v9, -inf  ;;  %v9972_v22 = vsel %vm2825_vm2, %v777_v26, -inf  ;;  %v783_v45 = vcombine.low %v9824_v28, %v9884_v18 }
 0x31a   : > { %v9923_v31 = vpop.permute.xlu1 %475  ;;  %v9925_v51 = vpop.permute.xlu0 %514  ;;  %v882_v9 = vcombine.high %v9797_v38, %v9791_v41  ;;  %v9989_v26 = vsel %vm2825_vm2, %v780_v14, -inf  ;;  %v2832_v10 = vsel %vm2825_vm2, %v1049_v42, -inf  ;;  %v10005_v14 = vrot.slane %v1561_v32, %v9758_v33 }
 0x31b   : > { %13590 = vst [vmem:[#allocation45_spill] sm:$0xff] %v9923_v31  ;;  %13591 = vst [vmem:[#allocation46_spill] sm:$0xff] %v9925_v51  ;;  %v9941_v51 = vrot.slane %v1481_v17, %v9733_v29  ;;  %v9965_v17 = vrot.slane %v1289_v11, %v9758_v33  ;;  %v9979_v31 = vrot.slane %v1257_v23, %v9758_v33  ;;  %v9982_v11 = vsel %vm2825_vm2, %v779_v27, -inf }
 0x31c   : > { %v897_v23 = vcombine.low %v9817_v24, %v848_v49  ;;  %v850_v38 = vcombine.high %v9827_v39, %v9812_v19  ;;  %v866_v42 = vcombine.high %v9887_v40, %v816_v44  ;;  %v1058_v19 = vcombine.high %v9544_v48, %v9552_v50 }
 0x31d   : > { %v1321_v41 = vcombine.low %v9979_v31, %v9965_v17  ;;  %v1089_v39 = vcombine.low %v9560_v52, %v9568_v54 }
 0x31e   : > { %v9958_v63 = vpop.permute.xlu1 %481  ;;  %v9960_v3 = vpop.permute.xlu0 %520 }
 0x31f   : > { %13592 = vst [vmem:[#allocation47_spill] sm:$0xff] %v9958_v63  ;;  %13593 = vst [vmem:[#allocation48_spill] sm:$0xff] %v9960_v3  ;;  %2830 = vmax.xlane.f32.xlu0 %v2829_v20  ;;  %v782_v63 = vcombine.high %v9794_v36, %v9870_v4  ;;  %v1529_v3 = vcombine.low %v9954_v34, %v9941_v51  ;;  %v9992_v36 = vsel %vm2825_vm2, %v781_v35, -inf }
 0x320   : > { %13594 = vst [vmem:[#allocation49_spill] sm:$0xff] %v9992_v36  ;;  %v784_v4 = vcombine.high %v9824_v28, %v9884_v18  ;;  %v865_v35 = vcombine.low %v9887_v40, %v816_v44  ;;  %v938_v28 = vcombine.high %v9570_v55, %v9578_v57  ;;  %v898_v55 = vcombine.high %v9817_v24, %v848_v49  ;;  %v13629_v36 = vld [vmem:[#allocation35_spill] sm:$0xff] }
 0x321   : > { %v10013_v18 = vsel %vm2825_vm2, %v782_v63, -inf  ;;  %v10019_v32 = vrot.slane %v1529_v3, %v9758_v33  ;;  %v896_v57 = vrot.slane %v882_v9, %v9758_v33  ;;  %v2838_v3 = vsel %vm2825_vm2, %v1321_v41, -inf }
 0x322   : > { %v9997_v20 = vpop.permute.xlu1 %487  ;;  %v9999_v27 = vpop.permute.xlu0 %526  ;;  %13597 = vst [vmem:[#allocation52_spill] sm:$0xff] %v10013_v18  ;;  %v952_v24 = vrot.slane %v938_v28, %v9733_v29  ;;  %v864_v49 = vrot.slane %v850_v38, %v9758_v33  ;;  %v914_v41 = vcombine.high %v9894_v15, %v9866_v0  ;;  %v912_v38 = vrot.slane %v898_v55, %v9758_v33  ;;  %v13604_v55 = vld [vmem:[#allocation8_spill] sm:$0xff] }
 0x323   : > { %13595 = vst [vmem:[#allocation50_spill] sm:$0xff] %v9997_v20  ;;  %13596 = vst [vmem:[#allocation51_spill] sm:$0xff] %v9999_v27  ;;  %2833 = vmax.xlane.f32.xlu0 %v2832_v10  ;;  %v1057_v27 = vcombine.low %v9544_v48, %v9552_v50  ;;  %v10022_v20 = vsel %vm2825_vm2, %v783_v45, -inf  ;;  %v10029_v10 = vsel %vm2825_vm2, %v784_v4, -inf  ;;  %v1593_v44 = vcombine.low %v10019_v32, %v10005_v14 }
 0x324   : > { %13598 = vst [vmem:[#allocation53_spill] sm:$0xff] %v10022_v20  ;;  %13599 = vst [vmem:[#allocation54_spill] sm:$0xff] %v10029_v10  ;;  %v905_v48 = vrot.slane %v897_v23, %v9758_v33  ;;  %v1090_v50 = vcombine.high %v9560_v52, %v9568_v54  ;;  %v873_v45 = vrot.slane %v865_v35, %v9758_v33  ;;  %v13606_v10 = vld [vmem:[#allocation4_spill] sm:$0xff] }
 0x325   : > { %v10047_v9 = vrot.slane %v1057_v27, %v9733_v29  ;;  %v970_v4 = vcombine.high %v9586_v59, %v9594_v61  ;;  %v880_v23 = vrot.slane %v866_v42, %v9758_v33  ;;  %v10055_v52 = vrot.slane %v1058_v19, %v9733_v29 }
 0x326   : > { %v10033_v40 = vpop.permute.xlu1 %493  ;;  %v10035_v63 = vpop.permute.xlu0 %532  ;;  %v915_v54 = vcombine.low %v864_v49, %v896_v57  ;;  %v916_v28 = vcombine.high %v864_v49, %v896_v57  ;;  %v10059_v35 = vrot.slane %v1089_v39, %v9733_v29  ;;  %v2844_v59 = vsel %vm2825_vm2, %v1593_v44, -inf  ;;  %v13605_v44 = vld [vmem:[#allocation6_spill] sm:$0xff] }
 0x327   : > { %13600 = vst [vmem:[#allocation55_spill] sm:$0xff] %v10033_v40  ;;  %13601 = vst [vmem:[#allocation56_spill] sm:$0xff] %v10035_v63  ;;  %2839 = vmax.xlane.f32.xlu0 %v2838_v3  ;;  %v917_v61 = vcombine.low %v873_v45, %v905_v48  ;;  %v918_v15 = vcombine.high %v873_v45, %v905_v48  ;;  %v10067_v0 = vrot.slane %v1090_v50, %v9733_v29 }
 0x328   : > { %v986_v42 = vcombine.high %v9832_v43, %v9851_v2  ;;  %v1001_v19 = vcombine.low %v9844_v37, %v952_v24  ;;  %v1105_v57 = vcombine.low %v13604_v55, %v9626_v5  ;;  %v1002_v39 = vcombine.high %v9844_v37, %v952_v24 }
 0x329   : > { %v10076_v49 = vrot.slane %v970_v4, %v9733_v29  ;;  %v1073_v48 = vcombine.low %v13606_v10, %v13605_v44  ;;  %v10081_v50 = vsel %vm2825_vm2, %v914_v41, -inf  ;;  %v1194_v43 = vcombine.high %v9576_v56, %v9584_v58 }
 0x32a   : > { %v10061_v27 = vpop.permute.xlu1 %499  ;;  %v10063_v3 = vpop.permute.xlu0 %538  ;;  %v10086_v2 = vsel %vm2825_vm2, %v915_v54, -inf  ;;  %v10089_v45 = vsel %vm2825_vm2, %v916_v28, -inf  ;;  %v1050_v4 = vcombine.high %v9944_v6, %v9928_v53  ;;  %v10098_v41 = vsel %vm2825_vm2, %v917_v61, -inf  ;;  %v13613_v54 = vld [vmem:[#allocation24_spill] sm:$0xff]  ;;  %v13614_v28 = vld [vmem:[#allocation22_spill] sm:$0xff] }
 0x32b   : > { %13602 = vst [vmem:[#allocation57_spill] sm:$0xff] %v10061_v27  ;;  %13603 = vst [vmem:[#allocation58_spill] sm:$0xff] %v10063_v3  ;;  %2845 = vmax.xlane.f32.xlu0 %v2844_v59  ;;  %v919_v59 = vcombine.low %v880_v23, %v912_v38  ;;  %v10101_v20 = vsel %vm2825_vm2, %v918_v15, -inf  ;;  %v920_v56 = vcombine.high %v880_v23, %v912_v38  ;;  %v13615_v15 = vld [vmem:[#allocation10_spill] sm:$0xff]  ;;  %v13621_v3 = vld [vmem:[#allocation5_spill] sm:$0xff] }
 0x32c   : > { %13607 = vst [vmem:[#allocation8_spill] sm:$0xff] %v10086_v2  ;;  %13608 = vst [vmem:[#allocation6_spill] sm:$0xff] %v10089_v45  ;;  %v10104_v58 = vrot.slane %v1105_v57, %v9733_v29  ;;  %v1377_v63 = vcombine.low %v13614_v28, %v13613_v54  ;;  %v10113_v53 = vrot.slane %v1001_v19, %v9758_v33  ;;  %v13617_v19 = vld [vmem:[#allocation20_spill] sm:$0xff]  ;;  %v13626_v45 = vld [vmem:[#allocation37_spill] sm:$0xff] }
 0x32d   : > { %13611 = vst [vmem:[#allocation60_spill] sm:$0xff] %v10098_v41  ;;  %13612 = vst [vmem:[#allocation61_spill] sm:$0xff] %v10101_v20  ;;  %v1018_v6 = vcombine.high %v9854_v30, %v9835_v1  ;;  %v1033_v23 = vcombine.low %v9947_v47, %v10076_v49  ;;  %v10120_v38 = vrot.slane %v1073_v48, %v9733_v29  ;;  %v13618_v20 = vld [vmem:[#allocation18_spill] sm:$0xff]  ;;  %v10133_v1 = vsel %vm2825_vm2, %v919_v59, -inf  ;;  %v13620_v30 = vld [vmem:[#allocation7_spill] sm:$0xff] }
 0x32e   : > { %v10091_v37 = vpop.permute.xlu1 %505  ;;  %v10093_v24 = vpop.permute.xlu0 %544  ;;  %v10123_v61 = vrot.slane %v1002_v39, %v9758_v33  ;;  %v1345_v41 = vcombine.low %v13618_v20, %v13617_v19  ;;  %13619 = vst [vmem:[#allocation24_spill] sm:$0xff] %v10133_v1  ;;  %v2880_v39 = vsel %vm2825_vm2, %v1050_v4, -inf  ;;  %v10145_v40 = vsel %vm2825_vm2, %v920_v56, -inf  ;;  %v13627_v56 = vld [vmem:[#allocation25_spill] sm:$0xff] }
 0x32f   : > { %13609 = vst [vmem:[#allocation4_spill] sm:$0xff] %v10091_v37  ;;  %13610 = vst [vmem:[#allocation59_spill] sm:$0xff] %v10093_v24  ;;  %2875 = vmax.xlane.f32.xlu0 %v9969_v21  ;;  %v10110_v24 = vrot.slane %v986_v42, %v9758_v33  ;;  %v10126_v21 = vrot.slane %v1194_v43, %v9733_v29  ;;  %v13616_v42 = vld [vmem:[#allocation9_spill] sm:$0xff]  ;;  %v1329_v37 = vcombine.low %v13621_v3, %v13620_v30 }
 0x330   : > { %v1361_v57 = vcombine.low %v13616_v42, %v13615_v15  ;;  %v1322_v43 = vcombine.high %v9979_v31, %v9965_v17  ;;  %13624 = vst [vmem:[#allocation9_spill] sm:$0xff] %v10145_v40  ;;  %v1034_v27 = vcombine.high %v9947_v47, %v10076_v49  ;;  %v1153_v59 = vcombine.low %v10059_v35, %v10104_v58  ;;  %v13628_v40 = vld [vmem:[#allocation23_spill] sm:$0xff]  ;;  %v13630_v2 = vld [vmem:[#allocation33_spill] sm:$0xff] }
 0x331   : > { %v10152_v1 = vrot.slane %v1377_v63, %v9733_v29  ;;  %v1226_v4 = vcombine.high %v9592_v60, %v9600_v62  ;;  %v1121_v31 = vcombine.low %v10047_v9, %v10120_v38  ;;  %v1032_v17 = vrot.slane %v1018_v6, %v9758_v33 }
 0x332   : > { %v10137_v48 = vpop.permute.xlu1 %511  ;;  %v10139_v18 = vpop.permute.xlu0 %550  ;;  %v10162_v47 = vrot.slane %v1033_v23, %v9758_v33  ;;  %v10165_v49 = vrot.slane %v1361_v57, %v9733_v29  ;;  %v10168_v63 = vrot.slane %v1345_v41, %v9733_v29  ;;  %v1617_v60 = vcombine.low %v13630_v2, %v13629_v36 }
 0x333   : > { %13622 = vst [vmem:[#allocation22_spill] sm:$0xff] %v10137_v48  ;;  %13623 = vst [vmem:[#allocation10_spill] sm:$0xff] %v10139_v18  ;;  %v13625_v48 = vld [vmem:[#allocation39_spill] sm:$0xff]  ;;  %2881 = vmax.xlane.f32.xlu0 %v2880_v39  ;;  %v1633_v39 = vcombine.low %v13628_v40, %v13627_v56  ;;  %v1074_v62 = vcombine.high %v13606_v10, %v13605_v44  ;;  %v10177_v6 = vrot.slane %v1329_v37, %v9733_v29 }
 0x334   : > { %v1649_v18 = vcombine.low %v13626_v45, %v13625_v48  ;;  %v2886_v57 = vsel %vm2825_vm2, %v1322_v43, -inf  ;;  %v1594_v41 = vcombine.high %v10019_v32, %v10005_v14  ;;  %v13633_v48 = vld [vmem:[#allocation21_spill] sm:$0xff]  ;;  %v13634_v40 = vld [vmem:[#allocation19_spill] sm:$0xff]  ;;  %v1425_v2 = vcombine.low %v10165_v49, %v10152_v1 }
 0x335   : > { %v1601_v56 = vcombine.low %v13634_v40, %v13633_v48  ;;  %v10194_v44 = vrot.slane %v1153_v59, %v9758_v33  ;;  %v1106_v37 = vcombine.high %v13604_v55, %v9626_v5  ;;  %v1051_v43 = vcombine.low %v10110_v24, %v1032_v17 }
 0x336   : > { %v10179_v23 = vpop.permute.xlu1 %517  ;;  %v10181_v45 = vpop.permute.xlu0 %556  ;;  %v10191_v10 = vrot.slane %v1649_v18, %v9733_v29  ;;  %v1052_v14 = vcombine.high %v10110_v24, %v1032_v17  ;;  %v1053_v32 = vcombine.low %v10113_v53, %v10162_v47  ;;  %v10205_v18 = vrot.slane %v1633_v39, %v9733_v29 }
 0x337   : > { %13631 = vst [vmem:[#allocation20_spill] sm:$0xff] %v10179_v23  ;;  %13632 = vst [vmem:[#allocation18_spill] sm:$0xff] %v10181_v45  ;;  %2887 = vmax.xlane.f32.xlu0 %v2886_v57  ;;  %v1393_v45 = vcombine.low %v10177_v6, %v10168_v63  ;;  %v10208_v57 = vrot.slane %v1617_v60, %v9733_v29  ;;  %v10211_v59 = vrot.slane %v1121_v31, %v9758_v33 }
 0x338   : > { %v10214_v5 = vrot.slane %v1226_v4, %v9733_v29  ;;  %v1290_v55 = vcombine.high %v9897_v7, %v9875_v8  ;;  %v2892_v23 = vsel %vm2825_vm2, %v1594_v41, -inf  ;;  %v10224_v39 = vrot.slane %v1034_v27, %v9758_v33 }
 0x339   : > { %v10227_v60 = vrot.slane %v1601_v56, %v9733_v29  ;;  %v1697_v31 = vcombine.low %v10205_v18, %v10191_v10  ;;  %v1185_v4 = vcombine.low %v10211_v59, %v10194_v44  ;;  %v10234_v7 = vrot.slane %v1425_v2, %v9758_v33 }
 0x33a   : > { %v10218_v24 = vpop.permute.xlu1 %523  ;;  %v10220_v17 = vpop.permute.xlu0 %562  ;;  %v10237_v8 = vrot.slane %v1074_v62, %v9733_v29  ;;  %v10240_v41 = vrot.slane %v1106_v37, %v9733_v29  ;;  %v1258_v27 = vcombine.high %v9911_v46, %v9900_v13  ;;  %v2928_v56 = vsel %vm2825_vm2, %v1051_v43, -inf }
 0x33b   : > { %13635 = vst [vmem:[#allocation7_spill] sm:$0xff] %v10218_v24  ;;  %13636 = vst [vmem:[#allocation5_spill] sm:$0xff] %v10220_v17  ;;  %2893 = vmax.xlane.f32.xlu0 %v2892_v23  ;;  %v1665_v23 = vcombine.low %v10227_v60, %v10208_v57  ;;  %v10249_v17 = vrot.slane %v1393_v45, %v9758_v33  ;;  %v10252_v2 = vsel %vm2825_vm2, %v1052_v14, -inf  ;;  %v10255_v62 = vsel %vm2825_vm2, %v1053_v32, -inf }
 0x33c   : > { %2827 = vmax.xlane.f32.xlu1 %v9972_v22  ;;  %v1122_v37 = vcombine.high %v10047_v9, %v10120_v38  ;;  %v1562_v13 = vcombine.high %v9938_v16, %v9921_v25  ;;  %v10266_v43 = vrot.slane %v1290_v55, %v9758_v33  ;;  %v1054_v45 = vcombine.high %v10113_v53, %v10162_v47  ;;  %v13639_v47 = vld [vmem:[#allocation16_spill] sm:$0xff]  ;;  %v13640_v55 = vld [vmem:[#allocation14_spill] sm:$0xff] }
 0x33d   : > { %v1154_v14 = vcombine.high %v10059_v35, %v10104_v58  ;;  %v2835_v9 = vsel %vm2825_vm2, %v1185_v4, -inf  ;;  %v1457_v16 = vcombine.low %v10249_v17, %v10234_v7  ;;  %v10277_v25 = vrot.slane %v1697_v31, %v9758_v33 }
 0x33e   : > { %v10261_v46 = vpop.permute.xlu1 %529  ;;  %v10263_v22 = vpop.permute.xlu0 %568  ;;  %v1137_v38 = vcombine.low %v10055_v52, %v10237_v8  ;;  %v1169_v32 = vcombine.low %v10067_v0, %v10240_v41  ;;  %v1530_v53 = vcombine.high %v9954_v34, %v9941_v51  ;;  %v1138_v35 = vcombine.high %v10055_v52, %v10237_v8 }
 0x33f   : > { %13637 = vst [vmem:[#allocation35_spill] sm:$0xff] %v10261_v46  ;;  %13638 = vst [vmem:[#allocation21_spill] sm:$0xff] %v10263_v22  ;;  %2923 = vmax.xlane.f32.xlu0 %v9982_v11  ;;  %v10286_v11 = vrot.slane %v1258_v27, %v9758_v33  ;;  %v1330_v58 = vcombine.high %v13621_v3, %v13620_v30  ;;  %v1242_v31 = vcombine.high %v13640_v55, %v13639_v47  ;;  %v13641_v22 = vld [vmem:[#allocation13_spill] sm:$0xff]  ;;  %v13642_v46 = vld [vmem:[#allocation11_spill] sm:$0xff] }
 0x340   : > { %2836 = vmax.xlane.f32.xlu1 %v2835_v9  ;;  %v10295_v4 = vrot.slane %v1665_v23, %v9758_v33  ;;  %v1210_v24 = vcombine.high %v13642_v46, %v13641_v22  ;;  %v10306_v52 = vrot.slane %v1562_v13, %v9758_v33  ;;  %v10309_v3 = vsel %vm2825_vm2, %v1054_v45, -inf }
 0x341   : > { %v1323_v27 = vcombine.low %v10286_v11, %v10266_v43  ;;  %v2841_v30 = vsel %vm2825_vm2, %v1457_v16, -inf  ;;  %v1168_v23 = vrot.slane %v1154_v14, %v9758_v33  ;;  %v1055_v46 = vcombine.low %v10123_v61, %v10224_v39 }
 0x342   : > { %v10299_v51 = vpop.permute.xlu1 %535  ;;  %v10301_v34 = vpop.permute.xlu0 %574  ;;  %v1729_v8 = vcombine.low %v10295_v4, %v10277_v25  ;;  %v1170_v22 = vcombine.high %v10067_v0, %v10240_v41  ;;  %v10320_v13 = vrot.slane %v1530_v53, %v9758_v33  ;;  %v1136_v45 = vrot.slane %v1122_v37, %v9758_v33 }
 0x343   : > { %2929 = vmax.xlane.f32.xlu0 %v2928_v56  ;;  %v1177_v56 = vrot.slane %v1169_v32, %v9758_v33  ;;  %v1362_v9 = vcombine.high %v13616_v42, %v13615_v15  ;;  %v1256_v16 = vrot.slane %v1242_v31, %v9733_v29  ;;  %v1145_v14 = vrot.slane %v1137_v38, %v9758_v33 }
 0x344   : > { %2842 = vmax.xlane.f32.xlu1 %v2841_v30  ;;  %v1056_v47 = vcombine.high %v10123_v61, %v10224_v39  ;;  %v10331_v0 = vrot.slane %v1330_v58, %v9733_v29  ;;  %v1224_v41 = vrot.slane %v1210_v24, %v9733_v29  ;;  %v2934_v32 = vsel %vm2825_vm2, %v1323_v27, -inf }
 0x345   : > { %v1595_v15 = vcombine.low %v10320_v13, %v10306_v52  ;;  %v2847_v42 = vsel %vm2825_vm2, %v1729_v8, -inf  ;;  %v1186_v61 = vcombine.high %v10211_v59, %v10194_v44  ;;  %v1187_v39 = vcombine.low %v1136_v45, %v1168_v23 }
 0x346   : > { %v10334_v53 = vpop.permute.xlu1 %541  ;;  %v10336_v37 = vpop.permute.xlu0 %580  ;;  %v10345_v38 = vsel %vm2825_vm2, %v1055_v46, -inf  ;;  %v1188_v24 = vcombine.high %v1136_v45, %v1168_v23  ;;  %v1189_v58 = vcombine.low %v1145_v14, %v1177_v56  ;;  %v1152_v55 = vrot.slane %v1138_v35, %v9758_v33 }
 0x347   : > { %2935 = vmax.xlane.f32.xlu0 %v2934_v32  ;;  %v1184_v31 = vrot.slane %v1170_v22, %v9758_v33  ;;  %v10350_v27 = vrot.slane %v1362_v9, %v9733_v29  ;;  %v1305_v30 = vcombine.low %v10214_v5, %v1256_v16  ;;  %v1378_v8 = vcombine.high %v13614_v28, %v13613_v54  ;;  %v13643_v32 = vld [vmem:[#allocation12_spill] sm:$0xff] }
 0x348   : > { %2848 = vmax.xlane.f32.xlu1 %v2847_v42  ;;  %v10356_v44 = vsel %vm2825_vm2, %v1056_v47, -inf  ;;  %v1273_v59 = vcombine.low %v10126_v21, %v1224_v41  ;;  %v1346_v23 = vcombine.high %v13618_v20, %v13617_v19  ;;  %v2940_v22 = vsel %vm2825_vm2, %v1595_v15, -inf }
 0x349   : > { %v1190_v45 = vcombine.high %v1145_v14, %v1177_v56  ;;  %v1274_v9 = vcombine.high %v10126_v21, %v1224_v41  ;;  %v1466_v54 = vcombine.high %v13643_v32, %v9648_v12  ;;  %v2883_v28 = vsel %vm2825_vm2, %v1186_v61, -inf  ;;  %v13644_v14 = vld [vmem:[#allocation17_spill] sm:$0xff]  ;;  %v13645_v41 = vld [vmem:[#allocation15_spill] sm:$0xff] }
 0x34a   : > { %v10361_v46 = vpop.permute.xlu1 %547  ;;  %v10363_v35 = vpop.permute.xlu0 %586  ;;  %v10371_v47 = vsel %vm2825_vm2, %v1187_v39, -inf  ;;  %v1306_v20 = vcombine.high %v10214_v5, %v1256_v16  ;;  %v10376_v19 = vsel %vm2825_vm2, %v1188_v24, -inf  ;;  %v10379_v56 = vsel %vm2825_vm2, %v1189_v58, -inf }
 0x34b   : > { %2941 = vmax.xlane.f32.xlu0 %v2940_v22  ;;  %v1191_v21 = vcombine.low %v1152_v55, %v1184_v31  ;;  %v1498_v12 = vcombine.high %v13645_v41, %v13644_v14  ;;  %v1392_v15 = vrot.slane %v1378_v8, %v9733_v29  ;;  %v1313_v42 = vrot.slane %v1305_v30, %v9758_v33  ;;  %v13647_v30 = vld [vmem:[#allocation29_spill] sm:$0xff] }
 0x34c   : > { %2878 = vmax.xlane.f32.xlu1 %v10081_v50  ;;  %v1192_v61 = vcombine.high %v1152_v55, %v1184_v31  ;;  %v1360_v39 = vrot.slane %v1346_v23, %v9733_v29  ;;  %v1324_v50 = vcombine.high %v10286_v11, %v10266_v43  ;;  %v1281_v16 = vrot.slane %v1273_v59, %v9758_v33  ;;  %v13646_v11 = vld [vmem:[#allocation31_spill] sm:$0xff] }
 0x34d   : > { %v10392_v24 = vsel %vm2825_vm2, %v1190_v45, -inf  ;;  %v10395_v58 = vrot.slane %v1466_v54, %v9733_v29  ;;  %v1426_v8 = vcombine.high %v10165_v49, %v10152_v1  ;;  %v1458_v55 = vcombine.high %v10249_v17, %v10234_v7  ;;  %v13652_v45 = vld [vmem:[#allocation26_spill] sm:$0xff] }
 0x34e   : > { %v10386_v5 = vpop.permute.xlu1 %553  ;;  %v1288_v31 = vrot.slane %v1274_v9, %v9758_v33  ;;  %v1394_v43 = vcombine.high %v10177_v6, %v10168_v63  ;;  %v1514_v59 = vcombine.high %v13647_v30, %v13646_v11  ;;  %v10407_v23 = vpop.permute.xlu0 %592  ;;  %v1320_v22 = vrot.slane %v1306_v20, %v9758_v33  ;;  %v13651_v6 = vld [vmem:[#allocation27_spill] sm:$0xff] }
 0x34f   : > { %2971 = vmax.xlane.f32.xlu0 %v9989_v26  ;;  %13648 = vst [vmem:[#allocation19_spill] sm:$0xff] %v10407_v23  ;;  %v10411_v1 = vsel %vm2825_vm2, %v1191_v21, -inf  ;;  %v10414_v26 = vrot.slane %v1498_v12, %v9733_v29  ;;  %v1441_v49 = vcombine.low %v10350_v27, %v1392_v15  ;;  %v1325_v17 = vcombine.low %v1281_v16, %v1313_v42 }
 0x350   : > { %2884 = vmax.xlane.f32.xlu1 %v2883_v28  ;;  %13649 = vst [vmem:[#allocation16_spill] sm:$0xff] %v10411_v1  ;;  %v10418_v7 = vsel %vm2825_vm2, %v1192_v61, -inf  ;;  %v1409_v63 = vcombine.low %v10331_v0, %v1360_v39  ;;  %v1482_v9 = vcombine.high %v13652_v45, %v13651_v6  ;;  %v2982_v54 = vsel %vm2825_vm2, %v1324_v50, -inf }
 0x351   : > { %13650 = vst [vmem:[#allocation14_spill] sm:$0xff] %v10418_v7  ;;  %v1326_v28 = vcombine.high %v1281_v16, %v1313_v42  ;;  %v1410_v20 = vcombine.high %v10331_v0, %v1360_v39  ;;  %v2889_v21 = vsel %vm2825_vm2, %v1458_v55, -inf  ;;  %v1730_v14 = vcombine.high %v10295_v4, %v10277_v25  ;;  %v13654_v39 = vld [vmem:[#allocation23_spill] sm:$0xff]  ;;  %v13675_v7 = vld [vmem:[#allocation38_spill] sm:$0xff] }
 0x352   : > { %v10423_v32 = vpop.permute.xlu1 %559  ;;  %v1440_v41 = vrot.slane %v1426_v8, %v9758_v33  ;;  %v1602_v12 = vcombine.high %v13634_v40, %v13633_v48  ;;  %v10435_v61 = vrot.slane %v1514_v59, %v9733_v29  ;;  %v1408_v42 = vrot.slane %v1394_v43, %v9758_v33  ;;  %v10443_v8 = vpop.permute.xlu0 %598 }
 0x353   : > { %2977 = vmax.xlane.f32.xlu0 %v10252_v2  ;;  %v1327_v50 = vcombine.low %v1288_v31, %v1320_v22  ;;  %v1442_v0 = vcombine.high %v10350_v27, %v1392_v15  ;;  %v13653_v2 = vld [vmem:[#allocation25_spill] sm:$0xff]  ;;  %v1449_v55 = vrot.slane %v1441_v49, %v9758_v33  ;;  %v1328_v25 = vcombine.high %v1288_v31, %v1320_v22 }
 0x354   : > { %2890 = vmax.xlane.f32.xlu1 %v2889_v21  ;;  %v1634_v16 = vcombine.high %v13654_v39, %v13653_v2  ;;  %v1496_v4 = vrot.slane %v1482_v9, %v9733_v29  ;;  %13655 = vst [vmem:[#allocation13_spill] sm:$0xff] %v10443_v8  ;;  %v1596_v48 = vcombine.high %v10320_v13, %v10306_v52  ;;  %v10450_v43 = vsel %vm2825_vm2, %v1325_v17, -inf  ;;  %v13656_v9 = vld [vmem:[#allocation39_spill] sm:$0xff]  ;;  %v13659_v39 = vld [vmem:[#allocation30_spill] sm:$0xff] }
 0x355   : > { %v10453_v27 = vsel %vm2825_vm2, %v1326_v28, -inf  ;;  %v2895_v15 = vsel %vm2825_vm2, %v1730_v14, -inf  ;;  %v1459_v11 = vcombine.low %v1408_v42, %v1440_v41  ;;  %v1460_v31 = vcombine.high %v1408_v42, %v1440_v41 }
 0x356   : > { %v10445_v40 = vpop.permute.xlu1 %565  ;;  %v1417_v30 = vrot.slane %v1409_v63, %v9758_v33  ;;  %v10458_v59 = vrot.slane %v1602_v12, %v9733_v29  ;;  %v1577_v22 = vcombine.low %v10414_v26, %v10435_v61  ;;  %v10463_v52 = vsel %vm2825_vm2, %v1327_v50, -inf }
 0x357   : > { %2983 = vmax.xlane.f32.xlu0 %v2982_v54  ;;  %v1424_v13 = vrot.slane %v1410_v20, %v9758_v33  ;;  %v10467_v49 = vrot.slane %v1634_v16, %v9733_v29  ;;  %v10470_v6 = vsel %vm2825_vm2, %v1328_v25, -inf  ;;  %v1456_v63 = vrot.slane %v1442_v0, %v9758_v33  ;;  %v13657_v54 = vld [vmem:[#allocation37_spill] sm:$0xff]  ;;  %v13660_v16 = vld [vmem:[#allocation28_spill] sm:$0xff] }
 0x358   : > { %2896 = vmax.xlane.f32.xlu1 %v2895_v15  ;;  %v1461_v17 = vcombine.low %v1417_v30, %v1449_v55  ;;  %v1545_v45 = vcombine.low %v10395_v58, %v1496_v4  ;;  %v1650_v28 = vcombine.high %v13657_v54, %v13656_v9  ;;  %v2988_v14 = vsel %vm2825_vm2, %v1596_v48, -inf  ;;  %v13658_v20 = vld [vmem:[#allocation33_spill] sm:$0xff]  ;;  %v10492_v48 = vpop.permute.xlu0 %604  ;;  %v13664_v54 = vld [vmem:[#allocation34_spill] sm:$0xff] }
 0x359   : > { %v1462_v41 = vcombine.high %v1417_v30, %v1449_v55  ;;  %v1618_v12 = vcombine.high %v13658_v20, %v13629_v36  ;;  %v1698_v42 = vcombine.high %v10205_v18, %v10191_v10  ;;  %v2937_v50 = vsel %vm2825_vm2, %v1459_v11, -inf  ;;  %13661 = vst [vmem:[#allocation11_spill] sm:$0xff] %v10492_v48  ;;  %v13662_v36 = vld [vmem:[#allocation8_spill] sm:$0xff] }
 0x35a   : > { %v10476_v21 = vpop.permute.xlu1 %571  ;;  %v10485_v0 = vsel %vm2825_vm2, %v1460_v31, -inf  ;;  %v1546_v2 = vcombine.high %v10395_v58, %v1496_v4  ;;  %v1753_v25 = vcombine.low %v13660_v16, %v13659_v39  ;;  %v1754_v55 = vcombine.high %v13660_v16, %v13659_v39  ;;  %v13668_v16 = vld [vmem:[#allocation41_spill] sm:$0xff] }
 0x35b   : > { %2989 = vmax.xlane.f32.xlu0 %v2988_v14  ;;  %v1585_v10 = vrot.slane %v1577_v22, %v9758_v33  ;;  %v1578_v18 = vcombine.high %v10414_v26, %v10435_v61  ;;  %v1666_v15 = vcombine.high %v10227_v60, %v10208_v57  ;;  %v10501_v58 = vsel %vm2825_vm2, %v1461_v17, -inf  ;;  %v13665_v14 = vld [vmem:[#allocation32_spill] sm:$0xff]  ;;  %v13666_v61 = vld [vmem:[#allocation49_spill] sm:$0xff] }
 0x35c   : > { %2926 = vmax.xlane.f32.xlu1 %v13662_v36  ;;  %v1463_v4 = vcombine.low %v1424_v13, %v1456_v63  ;;  %v1664_v11 = vrot.slane %v1650_v28, %v9733_v29  ;;  %v1553_v30 = vrot.slane %v1545_v45, %v9758_v33  ;;  %v10508_v9 = vsel %vm2825_vm2, %v1462_v41, -inf  ;;  %v13670_v36 = vld [vmem:[#allocation45_spill] sm:$0xff] }
 0x35d   : > { %v1464_v22 = vcombine.high %v1424_v13, %v1456_v63  ;;  %v1785_v26 = vcombine.low %v13665_v14, %v13664_v54  ;;  %v1786_v57 = vcombine.high %v13665_v14, %v13664_v54  ;;  %v1632_v60 = vrot.slane %v1618_v12, %v9733_v29  ;;  %v13671_v54 = vld [vmem:[#allocation43_spill] sm:$0xff]  ;;  %v10539_v14 = vpop.permute.xlu0 %610 }
 0x35e   : > { %v10504_v31 = vpop.permute.xlu1 %577  ;;  %v10517_v17 = vrot.slane %v1698_v42, %v9758_v33  ;;  %v10520_v28 = vrot.slane %v1753_v25, %v9733_v29  ;;  %v10523_v45 = vrot.slane %v1754_v55, %v9733_v29  ;;  %v1597_v13 = vcombine.low %v1553_v30, %v1585_v10  ;;  %v13669_v25 = vld [vmem:[#allocation3_spill] sm:$0xff]  ;;  %13672 = vst [vmem:[#allocation15_spill] sm:$0xff] %v10539_v14 }
 0x35f   : > { %13663 = vst [vmem:[#allocation12_spill] sm:$0xff] %v10504_v31  ;;  %3019 = vmax.xlane.f32.xlu0 %v13666_v61  ;;  %v1560_v63 = vrot.slane %v1546_v2, %v9758_v33  ;;  %v10528_v41 = vrot.slane %v1666_v15, %v9758_v33  ;;  %v1598_v20 = vcombine.high %v1553_v30, %v1585_v10  ;;  %v10532_v42 = vsel %vm2825_vm2, %v1463_v4, -inf  ;;  %v13676_v31 = vld [vmem:[#allocation36_spill] sm:$0xff] }
 0x360   : > { %2932 = vmax.xlane.f32.xlu1 %v10371_v47  ;;  %v1592_v12 = vrot.slane %v1578_v18, %v9758_v33  ;;  %13667 = vst [vmem:[#allocation17_spill] sm:$0xff] %v10532_v42  ;;  %v1713_v39 = vcombine.low %v10467_v49, %v1664_v11  ;;  %v1737_v55 = vcombine.low %v13669_v25, %v13668_v16  ;;  %v10544_v15 = vsel %vm2825_vm2, %v1464_v22, -inf }
 0x361   : > { %v1769_v47 = vcombine.low %v13671_v54, %v13670_v36  ;;  %13674 = vst [vmem:[#allocation29_spill] sm:$0xff] %v10544_v15  ;;  %v10547_v10 = vrot.slane %v1785_v26, %v9733_v29  ;;  %v10550_v18 = vrot.slane %v1786_v57, %v9733_v29  ;;  %v1681_v4 = vcombine.low %v10458_v59, %v1632_v60 }
 0x362   : > { %v10541_v2 = vpop.permute.xlu1 %583  ;;  %v1731_v30 = vcombine.low %v10528_v41, %v10517_v17  ;;  %v1682_v61 = vcombine.high %v10458_v59, %v1632_v60  ;;  %v1714_v22 = vcombine.high %v10467_v49, %v1664_v11  ;;  %v3036_v26 = vsel %vm2825_vm2, %v1597_v13, -inf  ;;  %v13678_v11 = vld [vmem:[#allocation42_spill] sm:$0xff]  ;;  %v13679_v13 = vld [vmem:[#allocation40_spill] sm:$0xff] }
 0x363   : > { %13673 = vst [vmem:[#allocation31_spill] sm:$0xff] %v10541_v2  ;;  %3025 = vmax.xlane.f32.xlu0 %v10255_v62  ;;  %v1889_v2 = vcombine.low %v13676_v31, %v13675_v7  ;;  %v1890_v57 = vcombine.high %v13676_v31, %v13675_v7  ;;  %v1738_v15 = vcombine.high %v13669_v25, %v13668_v16  ;;  %v10566_v62 = vsel %vm2825_vm2, %v1598_v20, -inf }
 0x364   : > { %2938 = vmax.xlane.f32.xlu1 %v2937_v50  ;;  %v1599_v42 = vcombine.low %v1560_v63, %v1592_v12  ;;  %v10569_v59 = vrot.slane %v1737_v55, %v9733_v29  ;;  %v1777_v60 = vrot.slane %v1769_v47, %v9733_v29  ;;  %v1721_v49 = vrot.slane %v1713_v39, %v9758_v33  ;;  %v10587_v39 = vpop.permute.xlu0 %616 }
 0x365   : > { %v1600_v50 = vcombine.high %v1560_v63, %v1592_v12  ;;  %v1921_v7 = vcombine.low %v13679_v13, %v13678_v11  ;;  %v1922_v31 = vcombine.high %v13679_v13, %v13678_v11  ;;  %v2943_v20 = vsel %vm2825_vm2, %v1731_v30, -inf  ;;  %v13682_v13 = vld [vmem:[#allocation46_spill] sm:$0xff] }
 0x366   : > { %v10572_v1 = vpop.permute.xlu1 %589  ;;  %v1689_v16 = vrot.slane %v1681_v4, %v9758_v33  ;;  %v10583_v25 = vrot.slane %v1889_v2, %v9733_v29  ;;  %v1770_v55 = vcombine.high %v13671_v54, %v13670_v36  ;;  %v1696_v63 = vrot.slane %v1682_v61, %v9758_v33 }
 0x367   : > { %13677 = vst [vmem:[#allocation27_spill] sm:$0xff] %v10572_v1  ;;  %3031 = vmax.xlane.f32.xlu0 %v10450_v43  ;;  %v1728_v12 = vrot.slane %v1714_v22, %v9758_v33  ;;  %v10592_v47 = vrot.slane %v1890_v57, %v9733_v29  ;;  %v1752_v43 = vrot.slane %v1738_v15, %v9733_v29  ;;  %v10598_v2 = vsel %vm2825_vm2, %v1599_v42, -inf }
 0x368   : > { %2944 = vmax.xlane.f32.xlu1 %v2943_v20  ;;  %v1732_v4 = vcombine.high %v10528_v41, %v10517_v17  ;;  %v1801_v36 = vcombine.low %v10569_v59, %v10520_v28  ;;  %v1833_v54 = vcombine.low %v1777_v60, %v10547_v10  ;;  %v1733_v61 = vcombine.low %v1689_v16, %v1721_v49  ;;  %v13683_v20 = vld [vmem:[#allocation44_spill] sm:$0xff] }
 0x369   : > { %v10606_v22 = vsel %vm2825_vm2, %v1600_v50, -inf  ;;  %v1802_v15 = vcombine.high %v10569_v59, %v10520_v28  ;;  %v10611_v57 = vrot.slane %v1921_v7, %v9733_v29  ;;  %v10614_v17 = vrot.slane %v1922_v31, %v9733_v29  ;;  %v13684_v50 = vld [vmem:[#allocation6_spill] sm:$0xff]  ;;  %v13686_v31 = vld [vmem:[#allocation47_spill] sm:$0xff] }
 0x36a   : > { %v10603_v30 = vpop.permute.xlu1 %595  ;;  %13681 = vst [vmem:[#allocation25_spill] sm:$0xff] %v10606_v22  ;;  %v1734_v41 = vcombine.high %v1689_v16, %v1721_v49  ;;  %v1784_v42 = vrot.slane %v1770_v55, %v9733_v29  ;;  %v1834_v11 = vcombine.high %v1777_v60, %v10547_v10  ;;  %v2025_v1 = vcombine.low %v13683_v20, %v13682_v13  ;;  %v13685_v49 = vld [vmem:[#allocation50_spill] sm:$0xff]  ;;  %v10628_v55 = vpop.permute.xlu0 %622 }
 0x36b   : > { %13680 = vst [vmem:[#allocation26_spill] sm:$0xff] %v10603_v30  ;;  %3037 = vmax.xlane.f32.xlu0 %v3036_v26  ;;  %v1735_v30 = vcombine.low %v1696_v63, %v1728_v12  ;;  %v1817_v28 = vcombine.low %v1752_v43, %v10523_v45  ;;  %v1818_v59 = vcombine.high %v1752_v43, %v10523_v45  ;;  %v2991_v26 = vsel %vm2825_vm2, %v1732_v4, -inf  ;;  %v13687_v43 = vld [vmem:[#allocation57_spill] sm:$0xff] }
 0x36c   : > { %2974 = vmax.xlane.f32.xlu1 %v13684_v50  ;;  %v2026_v7 = vcombine.high %v13683_v20, %v13682_v13  ;;  %v1873_v16 = vcombine.low %v13686_v31, %v13685_v49  ;;  %v10633_v60 = vsel %vm2825_vm2, %v1733_v61, -inf  ;;  %v1809_v50 = vrot.slane %v1801_v36, %v9758_v33  ;;  %v13688_v13 = vld [vmem:[#allocation55_spill] sm:$0xff]  ;;  %v13689_v20 = vld [vmem:[#allocation52_spill] sm:$0xff] }
 0x36d   : > { %v1841_v23 = vrot.slane %v1833_v54, %v9758_v33  ;;  %v1874_v45 = vcombine.high %v13686_v31, %v13685_v49  ;;  %v1905_v4 = vcombine.low %v13688_v13, %v13687_v43  ;;  %v10643_v8 = vsel %vm2825_vm2, %v1734_v41, -inf  ;;  %v13691_v41 = vld [vmem:[#allocation51_spill] sm:$0xff] }
 0x36e   : > { %v10630_v10 = vpop.permute.xlu1 %601  ;;  %v1736_v22 = vcombine.high %v1696_v63, %v1728_v12  ;;  %v1849_v48 = vcombine.low %v1784_v42, %v10550_v18  ;;  %v10647_v61 = vrot.slane %v2025_v1, %v9733_v29  ;;  %v10651_v36 = vsel %vm2825_vm2, %v1735_v30, -inf }
 0x36f   : > { %3067 = vmax.xlane.f32.xlu0 %v13689_v20  ;;  %13690 = vst [vmem:[#allocation23_spill] sm:$0xff] %v10651_v36  ;;  %v1848_v54 = vrot.slane %v1834_v11, %v9758_v33  ;;  %v1850_v49 = vcombine.high %v1784_v42, %v10550_v18  ;;  %v10656_v31 = vrot.slane %v2026_v7, %v9733_v29  ;;  %v13692_v20 = vld [vmem:[#allocation48_spill] sm:$0xff] }
 0x370   : > { %2980 = vmax.xlane.f32.xlu1 %v10376_v19  ;;  %v2057_v63 = vcombine.low %v13692_v20, %v13691_v41  ;;  %v2058_v12 = vcombine.high %v13692_v20, %v13691_v41  ;;  %v1881_v1 = vrot.slane %v1873_v16, %v9733_v29  ;;  %v1865_v19 = vcombine.low %v1809_v50, %v1841_v23  ;;  %v10675_v41 = vpop.permute.xlu0 %628 }
 0x371   : > { %v1866_v30 = vcombine.high %v1809_v50, %v1841_v23  ;;  %v1816_v36 = vrot.slane %v1802_v15, %v9758_v33  ;;  %v1888_v11 = vrot.slane %v1874_v45, %v9733_v29  ;;  %v1913_v18 = vrot.slane %v1905_v4, %v9733_v29  ;;  %13694 = vst [vmem:[#allocation37_spill] sm:$0xff] %v10675_v41 }
 0x372   : > { %v10663_v14 = vpop.permute.xlu1 %607  ;;  %v10670_v42 = vsel %vm2825_vm2, %v1736_v22, -inf  ;;  %v1825_v7 = vrot.slane %v1817_v28, %v9758_v33  ;;  %v1906_v16 = vcombine.high %v13688_v13, %v13687_v43  ;;  %v1857_v15 = vrot.slane %v1849_v48, %v9758_v33 }
 0x373   : > { %3073 = vmax.xlane.f32.xlu0 %v10309_v3  ;;  %13693 = vst [vmem:[#allocation39_spill] sm:$0xff] %v10670_v42  ;;  %v1867_v23 = vcombine.low %v1816_v36, %v1848_v54  ;;  %v1832_v50 = vrot.slane %v1818_v59, %v9758_v33  ;;  %v10681_v45 = vrot.slane %v2057_v63, %v9733_v29  ;;  %v10695_v48 = vsel %vm2825_vm2, %v1866_v30, -inf }
 0x374   : > { %2986 = vmax.xlane.f32.xlu1 %v10485_v0  ;;  %v10684_v3 = vrot.slane %v2058_v12, %v9733_v29  ;;  %v1868_v22 = vcombine.high %v1816_v36, %v1848_v54  ;;  %v1864_v28 = vrot.slane %v1850_v49, %v9758_v33  ;;  %v1937_v43 = vcombine.low %v1881_v1, %v10583_v25 }
 0x375   : > { %v1938_v13 = vcombine.high %v1881_v1, %v10583_v25  ;;  %v10692_v0 = vsel %vm2825_vm2, %v1865_v19, -inf  ;;  %13696 = vst [vmem:[#allocation30_spill] sm:$0xff] %v10695_v48  ;;  %v1953_v59 = vcombine.low %v1888_v11, %v10592_v47  ;;  %v1954_v20 = vcombine.high %v1888_v11, %v10592_v47  ;;  %v13698_v1 = vld [vmem:[#allocation22_spill] sm:$0xff]  ;;  %v13699_v19 = vld [vmem:[#allocation4_spill] sm:$0xff] }
 0x376   : > { %v10689_v4 = vpop.permute.xlu1 %613  ;;  %13695 = vst [vmem:[#allocation33_spill] sm:$0xff] %v10692_v0  ;;  %v1969_v36 = vcombine.low %v1913_v18, %v10611_v57  ;;  %v1970_v54 = vcombine.high %v1913_v18, %v10611_v57  ;;  %v1920_v25 = vrot.slane %v1906_v16, %v9733_v29  ;;  %v10704_v49 = vsel %vm2825_vm2, %v1867_v23, -inf  ;;  %v13702_v18 = vld [vmem:[#allocation20_spill] sm:$0xff] }
 0x377   : > { %3079 = vmax.xlane.f32.xlu0 %v10453_v27  ;;  %13697 = vst [vmem:[#allocation28_spill] sm:$0xff] %v10704_v49  ;;  %v1869_v63 = vcombine.low %v1825_v7, %v1857_v15  ;;  %v1870_v12 = vcombine.high %v1825_v7, %v1857_v15  ;;  %v2009_v30 = vcombine.low %v13699_v19, %v13698_v1  ;;  %v10709_v42 = vsel %vm2825_vm2, %v1868_v22, -inf  ;;  %v13701_v27 = vld [vmem:[#allocation7_spill] sm:$0xff]  ;;  %v13705_v49 = vld [vmem:[#allocation56_spill] sm:$0xff] }
 0x378   : > { %2992 = vmax.xlane.f32.xlu1 %v2991_v26  ;;  %13700 = vst [vmem:[#allocation8_spill] sm:$0xff] %v10709_v42  ;;  %v1871_v47 = vcombine.low %v1832_v50, %v1864_v28  ;;  %v1872_v11 = vcombine.high %v1832_v50, %v1864_v28  ;;  %v2010_v57 = vcombine.high %v13699_v19, %v13698_v1  ;;  %v10715_v26 = vpop.permute.xlu0 %634  ;;  %v13704_v42 = vld [vmem:[#allocation58_spill] sm:$0xff] }
 0x379   : > { %v2041_v16 = vcombine.low %v13702_v18, %v13701_v27  ;;  %13703 = vst [vmem:[#allocation34_spill] sm:$0xff] %v10715_v26  ;;  %v1945_v7 = vrot.slane %v1937_v43, %v9758_v33  ;;  %v1952_v15 = vrot.slane %v1938_v13, %v9758_v33  ;;  %v1977_v22 = vrot.slane %v1969_v36, %v9758_v33  ;;  %v13706_v43 = vld [vmem:[#allocation60_spill] sm:$0xff]  ;;  %v13710_v26 = vld [vmem:[#allocation59_spill] sm:$0xff] }
 0x37a   : > { %v10717_v23 = vpop.permute.xlu1 %619  ;;  %v1984_v50 = vrot.slane %v1970_v54, %v9758_v33  ;;  %v10725_v28 = vrot.slane %v1953_v59, %v9758_v33  ;;  %v10728_v1 = vrot.slane %v1954_v20, %v9758_v33  ;;  %v1985_v19 = vcombine.low %v1920_v25, %v10614_v17  ;;  %v13709_v54 = vld [vmem:[#allocation10_spill] sm:$0xff] }
 0x37b   : > { %3085 = vmax.xlane.f32.xlu0 %v10566_v62  ;;  %v2161_v41 = vcombine.low %v13705_v49, %v13704_v42  ;;  %v10735_v13 = vsel %vm2825_vm2, %v1869_v63, -inf  ;;  %v10738_v62 = vsel %vm2825_vm2, %v1870_v12, -inf  ;;  %v1986_v36 = vcombine.high %v1920_v25, %v10614_v17  ;;  %v13712_v17 = vld [vmem:[#allocation53_spill] sm:$0xff] }
 0x37c   : > { %3022 = vmax.xlane.f32.xlu1 %v13706_v43  ;;  %13707 = vst [vmem:[#allocation32_spill] sm:$0xff] %v10735_v13  ;;  %13708 = vst [vmem:[#allocation49_spill] sm:$0xff] %v10738_v62  ;;  %v2162_v59 = vcombine.high %v13705_v49, %v13704_v42  ;;  %v2017_v20 = vrot.slane %v2009_v30, %v9733_v29  ;;  %v2193_v48 = vcombine.low %v13710_v26, %v13709_v54 }
 0x37d   : > { %v2024_v0 = vrot.slane %v2010_v57, %v9733_v29  ;;  %v2194_v43 = vcombine.high %v13710_v26, %v13709_v54  ;;  %v2049_v63 = vrot.slane %v2041_v16, %v9733_v29  ;;  %v10753_v12 = vsel %vm2825_vm2, %v1871_v47, -inf  ;;  %v10764_v16 = vpop.permute.xlu0 %640 }
 0x37e   : > { %v10750_v13 = vpop.permute.xlu1 %625  ;;  %13711 = vst [vmem:[#allocation41_spill] sm:$0xff] %v10753_v12  ;;  %v2001_v42 = vcombine.low %v1945_v7, %v1977_v22  ;;  %v2002_v25 = vcombine.high %v1945_v7, %v1977_v22  ;;  %v2003_v49 = vcombine.low %v1952_v15, %v1984_v50  ;;  %v10757_v30 = vsel %vm2825_vm2, %v1872_v11, -inf }
 0x37f   : > { %3115 = vmax.xlane.f32.xlu0 %v13712_v17  ;;  %13713 = vst [vmem:[#allocation3_spill] sm:$0xff] %v10757_v30  ;;  %v10760_v57 = vrot.slane %v2161_v41, %v9733_v29  ;;  %v2042_v26 = vcombine.high %v13702_v18, %v13701_v27  ;;  %v2004_v47 = vcombine.high %v1952_v15, %v1984_v50 }
 0x380   : > { %3028 = vmax.xlane.f32.xlu1 %v10379_v56  ;;  %v1993_v54 = vrot.slane %v1985_v19, %v9758_v33  ;;  %v10769_v17 = vrot.slane %v2162_v59, %v9733_v29  ;;  %v2073_v7 = vcombine.low %v2017_v20, %v10647_v61  ;;  %v10773_v11 = vrot.slane %v2193_v48, %v9733_v29 }
 0x381   : > { %v2000_v41 = vrot.slane %v1986_v36, %v9758_v33  ;;  %v2074_v22 = vcombine.high %v2017_v20, %v10647_v61  ;;  %v2089_v27 = vcombine.low %v2024_v0, %v10656_v31  ;;  %v10779_v18 = vrot.slane %v2194_v43, %v9733_v29 }
 0x382   : > { %v2105_v56 = vcombine.low %v2049_v63, %v10681_v45  ;;  %v10782_v15 = vpop.permute.xlu1 %631  ;;  %v2090_v50 = vcombine.high %v2024_v0, %v10656_v31  ;;  %v10787_v48 = vsel %vm2825_vm2, %v2001_v42, -inf  ;;  %v10790_v19 = vsel %vm2825_vm2, %v2002_v25, -inf  ;;  %v13717_v25 = vld [vmem:[#allocation35_spill] sm:$0xff] }
 0x383   : > { %3121 = vmax.xlane.f32.xlu0 %v10345_v38  ;;  %13714 = vst [vmem:[#allocation45_spill] sm:$0xff] %v10790_v19  ;;  %v10793_v61 = vsel %vm2825_vm2, %v2003_v49, -inf  ;;  %v2056_v36 = vrot.slane %v2042_v26, %v9733_v29  ;;  %v2106_v59 = vcombine.high %v2049_v63, %v10681_v45  ;;  %v10799_v20 = vsel %vm2825_vm2, %v2004_v47, -inf  ;;  %v10808_v26 = vpop.permute.xlu0 %646 }
 0x384   : > { %13715 = vst [vmem:[#allocation43_spill] sm:$0xff] %v10793_v61  ;;  %3034 = vmax.xlane.f32.xlu1 %v10501_v58  ;;  %13716 = vst [vmem:[#allocation38_spill] sm:$0xff] %v10799_v20  ;;  %v2005_v38 = vcombine.low %v10725_v28, %v1993_v54  ;;  %v2081_v31 = vrot.slane %v2073_v7, %v9758_v33  ;;  %v2006_v0 = vcombine.high %v10725_v28, %v1993_v54  ;;  %v13718_v7 = vld [vmem:[#allocation5_spill] sm:$0xff]  ;;  %v13719_v28 = vld [vmem:[#allocation18_spill] sm:$0xff] }
 0x385   : > { %v2007_v43 = vcombine.low %v10728_v1, %v2000_v41  ;;  %v2008_v42 = vcombine.high %v10728_v1, %v2000_v41  ;;  %v2145_v49 = vcombine.low %v13717_v25, %v10299_v51  ;;  %v2113_v58 = vrot.slane %v2105_v56, %v9758_v33  ;;  %v13741_v61 = vld [vmem:[#allocation24_spill] sm:$0xff] }
 0x386   : > { %v10810_v45 = vpop.permute.xlu1 %637  ;;  %v2088_v63 = vrot.slane %v2074_v22, %v9758_v33  ;;  %v10815_v47 = vrot.slane %v2089_v27, %v9758_v33  ;;  %v2297_v54 = vcombine.low %v13719_v28, %v13718_v7  ;;  %v2298_v1 = vcombine.high %v13719_v28, %v13718_v7  ;;  %v13725_v28 = vld [vmem:[#allocation61_spill] sm:$0xff] }
 0x387   : > { %v2146_v41 = vcombine.high %v13717_v25, %v10299_v51  ;;  %3127 = vmax.xlane.f32.xlu0 %v10463_v52  ;;  %v10825_v30 = vrot.slane %v2090_v50, %v9758_v33  ;;  %v2121_v56 = vcombine.low %v2056_v36, %v10684_v3  ;;  %v2122_v22 = vcombine.high %v2056_v36, %v10684_v3 }
 0x388   : > { %3040 = vmax.xlane.f32.xlu1 %v10633_v60  ;;  %v2120_v27 = vrot.slane %v2106_v59, %v9758_v33  ;;  %v10832_v12 = vsel %vm2825_vm2, %v2005_v38, -inf  ;;  %v2738_v7 = vcombine.high %v10764_v16, %v10808_v26  ;;  %v10837_v51 = vsel %vm2825_vm2, %v2006_v0, -inf  ;;  %v13724_v60 = vld [vmem:[#allocation21_spill] sm:$0xff] }
 0x389   : > { %13720 = vst [vmem:[#allocation36_spill] sm:$0xff] %v10832_v12  ;;  %13721 = vst [vmem:[#allocation42_spill] sm:$0xff] %v10837_v51  ;;  %v10840_v52 = vsel %vm2825_vm2, %v2007_v43, -inf  ;;  %v10843_v50 = vsel %vm2825_vm2, %v2008_v42, -inf  ;;  %v2153_v3 = vrot.slane %v2145_v49, %v9733_v29  ;;  %v2329_v36 = vcombine.low %v13724_v60, %v10301_v34 }
 0x38a   : > { %13722 = vst [vmem:[#allocation40_spill] sm:$0xff] %v10840_v52  ;;  %13723 = vst [vmem:[#allocation46_spill] sm:$0xff] %v10843_v50  ;;  %v2330_v59 = vcombine.high %v13724_v60, %v10301_v34  ;;  %v10850_v38 = vpop.permute.xlu1 %643  ;;  %v2137_v25 = vcombine.low %v2081_v31, %v2113_v58  ;;  %v10853_v0 = vrot.slane %v2297_v54, %v9733_v29 }
 0x38b   : > { %v10856_v43 = vrot.slane %v2298_v1, %v9733_v29  ;;  %v2160_v42 = vrot.slane %v2146_v41, %v9733_v29  ;;  %v2722_v49 = vcombine.high %v10810_v45, %v10850_v38  ;;  %3133 = vmax.xlane.f32.xlu0 %v10598_v2  ;;  %v2138_v50 = vcombine.high %v2081_v31, %v2113_v58 }
 0x38c   : > { %3070 = vmax.xlane.f32.xlu1 %v13725_v28  ;;  %v2139_v34 = vcombine.low %v2088_v63, %v2120_v27  ;;  %v2129_v60 = vrot.slane %v2121_v56, %v9758_v33  ;;  %v2136_v52 = vrot.slane %v2122_v22, %v9758_v33  ;;  %v2177_v54 = vcombine.low %v10334_v53, %v10361_v46 }
 0x38d   : > { %v10868_v1 = vrot.slane %v2738_v7, %v9733_v29  ;;  %v10871_v41 = vrot.slane %v2722_v49, %v9733_v29  ;;  %v2140_v51 = vcombine.high %v2088_v63, %v2120_v27  ;;  %v2209_v2 = vcombine.low %v2153_v3, %v10760_v57  ;;  %v13726_v27 = vld [vmem:[#allocation54_spill] sm:$0xff]  ;;  %v13735_v7 = vld [vmem:[#allocation15_spill] sm:$0xff] }
 0x38e   : > { %v10875_v28 = vrot.slane %v2329_v36, %v9733_v29  ;;  %v10878_v31 = vrot.slane %v2330_v59, %v9733_v29  ;;  %v10881_v58 = vsel %vm2825_vm2, %v2137_v25, -inf  ;;  %v2210_v56 = vcombine.high %v2153_v3, %v10760_v57 }
 0x38f   : > { %v2225_v22 = vcombine.low %v2160_v42, %v10769_v17  ;;  %3163 = vmax.xlane.f32.xlu0 %v13726_v27  ;;  %v2226_v36 = vcombine.high %v2160_v42, %v10769_v17  ;;  %v10893_v59 = vsel %vm2825_vm2, %v2138_v50, -inf  ;;  %v2141_v25 = vcombine.low %v10815_v47, %v2129_v60 }
 0x390   : > { %3076 = vmax.xlane.f32.xlu1 %v10392_v24  ;;  %v2142_v57 = vcombine.high %v10815_v47, %v2129_v60  ;;  %v2178_v3 = vcombine.high %v10334_v53, %v10361_v46  ;;  %v2185_v49 = vrot.slane %v2177_v54, %v9733_v29  ;;  %v2143_v63 = vcombine.low %v10825_v30, %v2136_v52 }
 0x391   : > { %v2144_v27 = vcombine.high %v10825_v30, %v2136_v52  ;;  %v2433_v17 = vcombine.low %v10336_v37, %v10363_v35  ;;  %v2313_v24 = vcombine.low %v10445_v40, %v10476_v21  ;;  %v10907_v50 = vsel %vm2825_vm2, %v2139_v34, -inf }
 0x392   : > { %v10910_v47 = vsel %vm2825_vm2, %v2140_v51, -inf  ;;  %v2434_v53 = vcombine.high %v10336_v37, %v10363_v35  ;;  %v10916_v46 = vrot.slane %v2209_v2, %v9758_v33  ;;  %v10919_v30 = vrot.slane %v2210_v56, %v9758_v33 }
 0x393   : > { %13727 = vst [vmem:[#allocation44_spill] sm:$0xff] %v10910_v47  ;;  %3169 = vmax.xlane.f32.xlu0 %v10356_v44  ;;  %v10922_v52 = vrot.slane %v2225_v22, %v9758_v33  ;;  %v2281_v42 = vcombine.low %v10386_v5, %v10423_v32  ;;  %v10928_v51 = vsel %vm2825_vm2, %v2141_v25, -inf  ;;  %v10931_v37 = vsel %vm2825_vm2, %v2142_v57, -inf }
 0x394   : > { %3082 = vmax.xlane.f32.xlu1 %v10508_v9  ;;  %13728 = vst [vmem:[#allocation6_spill] sm:$0xff] %v10928_v51  ;;  %13729 = vst [vmem:[#allocation50_spill] sm:$0xff] %v10931_v37  ;;  %v10934_v44 = vrot.slane %v2226_v36, %v9758_v33  ;;  %v2192_v35 = vrot.slane %v2178_v3, %v9733_v29  ;;  %v2241_v34 = vcombine.low %v2185_v49, %v10773_v11 }
 0x395   : > { %v10939_v60 = vsel %vm2825_vm2, %v2143_v63, -inf  ;;  %v10942_v54 = vsel %vm2825_vm2, %v2144_v27, -inf  ;;  %v10945_v9 = vrot.slane %v2433_v17, %v9733_v29  ;;  %v10948_v2 = vrot.slane %v2313_v24, %v9733_v29  ;;  %v13732_v63 = vld [vmem:[#allocation2_spill] sm:$0xff] }
 0x396   : > { %13730 = vst [vmem:[#allocation47_spill] sm:$0xff] %v10939_v60  ;;  %13731 = vst [vmem:[#allocation57_spill] sm:$0xff] %v10942_v54  ;;  %v2585_v56 = vcombine.low %v10689_v4, %v10717_v23  ;;  %v2242_v22 = vcombine.high %v2185_v49, %v10773_v11  ;;  %v10954_v36 = vrot.slane %v2434_v53, %v9733_v29  ;;  %v10958_v25 = vsub.s32 0, %v13732_v63  ;;  %v13736_v54 = vld [vmem:[#allocation11_spill] sm:$0xff] }
 0x397   : > { %3175 = vmax.xlane.f32.xlu0 %v10470_v6  ;;  %v10961_v57 = vsub.s32 1, %v13732_v63  ;;  %v2289_v3 = vrot.slane %v2281_v42, %v9733_v29  ;;  %v2601_v27 = vcombine.low %v10587_v39, %v10628_v55  ;;  %v2553_v17 = vcombine.low %v10630_v10, %v10663_v14 }
 0x398   : > { %3088 = vmax.xlane.f32.xlu1 %v10643_v8  ;;  %v10970_v11 = vsub.s32 2, %v13732_v63  ;;  %v2257_v6 = vcombine.low %v2192_v35, %v10779_v18  ;;  %v2258_v49 = vcombine.high %v2192_v35, %v10779_v18  ;;  %v2249_v24 = vrot.slane %v2241_v34, %v9758_v33  ;;  %v13738_v35 = vld [vmem:[#allocation25_spill] sm:$0xff] }
 0x399   : > { %v10976_v53 = vsub.s32 3, %v13732_v63  ;;  %v2377_v42 = vcombine.low %v10948_v2, %v10875_v28  ;;  %v2569_v60 = vcombine.low %v13736_v54, %v13735_v7  ;;  %v10983_v8 = vrot.slane %v2585_v56, %v9733_v29 }
 0x39a   : > { %13733 = vst [vmem:[#allocation55_spill] sm:$0xff] %v10970_v11  ;;  %v10986_v12 = vsub.s32 4, %v13732_v63  ;;  %v2282_v18 = vcombine.high %v10386_v5, %v10423_v32  ;;  %v2256_v34 = vrot.slane %v2242_v22, %v9758_v33  ;;  %v10993_v37 = vsub.s32 5, %v13732_v63  ;;  %v13743_v32 = vld [vmem:[#allocation13_spill] sm:$0xff]  ;;  %v13744_v22 = vld [vmem:[#allocation19_spill] sm:$0xff] }
 0x39b   : > { %13734 = vst [vmem:[#allocation52_spill] sm:$0xff] %v10976_v53  ;;  %3181 = vmax.xlane.f32.xlu0 %v13738_v35  ;;  %v10996_v62 = vsub.s32 6, %v13732_v63  ;;  %v2345_v20 = vcombine.low %v2289_v3, %v10853_v0  ;;  %v11000_v56 = vrot.slane %v2601_v27, %v9733_v29  ;;  %v11003_v51 = vrot.slane %v2553_v17, %v9733_v29 }
 0x39c   : > { %13737 = vst [vmem:[#allocation51_spill] sm:$0xff] %v10986_v12  ;;  %13739 = vst [vmem:[#allocation48_spill] sm:$0xff] %v10993_v37  ;;  %3118 = vmax.xlane.f32.xlu1 %v13741_v61  ;;  %v11007_v5 = vsub.s32 7, %v13732_v63  ;;  %v2465_v35 = vcombine.low %v13744_v22, %v13743_v32  ;;  %v2466_v47 = vcombine.high %v13744_v22, %v13743_v32  ;;  %v13745_v12 = vld [vmem:[#allocation33_spill] sm:$0xff]  ;;  %v9316_v22 = vmov 1966171168  }
 0x39d   : > { %13740 = vst [vmem:[#allocation22_spill] sm:$0xff] %v10996_v62  ;;  %v2273_v19 = vcombine.low %v10916_v46, %v2249_v24  ;;  %v2274_v62 = vcombine.high %v10916_v46, %v2249_v24  ;;  %v2314_v27 = vcombine.high %v10445_v40, %v10476_v21  ;;  %v11018_v17 = vrot.slane %v2569_v60, %v9733_v29  ;;  %v13746_v21 = vld [vmem:[#allocation16_spill] sm:$0xff] }
 0x39e   : > { %13742 = vst [vmem:[#allocation4_spill] sm:$0xff] %v11007_v5  ;;  %v2649_v61 = vcombine.low %v10983_v8, %v11000_v56  ;;  %v11023_v5 = vrot.slane %v2377_v42, %v9758_v33  ;;  %v2296_v37 = vrot.slane %v2282_v18, %v9733_v29  ;;  %v2275_v32 = vcombine.low %v10919_v30, %v2256_v34 }
 0x39f   : > { %2851 = vmax.xlane.f32.xlu0 %v13745_v12  ;;  %v2265_v46 = vrot.slane %v2257_v6, %v9758_v33  ;;  %v2272_v24 = vrot.slane %v2258_v49, %v9758_v33  ;;  %v2617_v40 = vcombine.low %v11003_v51, %v11018_v17  ;;  %v11034_v60 = vrot.slane %v2345_v20, %v9758_v33 }
 0x3a0   : > { %3124 = vmax.xlane.f32.xlu1 %v13746_v21  ;;  %v2276_v42 = vcombine.high %v10919_v30, %v2256_v34  ;;  %v5391_v18 = vunpack.c.l.s4 %v9316_v22  ;;  %v2346_v12 = vcombine.high %v2289_v3, %v10853_v0  ;;  %v11039_v53 = vrot.slane %v2465_v35, %v9733_v29  ;;  %v13749_v35 = vld [vmem:[#allocation17_spill] sm:$0xff]  ;;  %v13752_v22 = vld [vmem:[#allocation12_spill] sm:$0xff] }
 0x3a1   : > { %v11042_v6 = vrot.slane %v2466_v47, %v9733_v29  ;;  %v11045_v49 = vsel %vm2825_vm2, %v2273_v19, -inf  ;;  %v2328_v21 = vrot.slane %v2314_v27, %v9733_v29  ;;  %v2409_v20 = vcombine.low %v11034_v60, %v11023_v5 }
 0x3a2   : > { %v11051_v30 = vrot.slane %v2649_v61, %v9758_v33  ;;  %v11054_v34 = vsel %vm2825_vm2, %v2274_v62, -inf  ;;  %v2361_v0 = vcombine.low %v2296_v37, %v10856_v43  ;;  %v2362_v3 = vcombine.high %v2296_v37, %v10856_v43  ;;  %v13751_v37 = vld [vmem:[#allocation31_spill] sm:$0xff] }
 0x3a3   : > { %13747 = vst [vmem:[#allocation7_spill] sm:$0xff] %v11054_v34  ;;  %v2378_v47 = vcombine.high %v10948_v2, %v10875_v28  ;;  %2857 = vmax.xlane.f32.xlu0 %v10881_v58  ;;  %v11062_v19 = vsel %vm2825_vm2, %v2275_v32, -inf  ;;  %v11066_v27 = vrot.slane %v2617_v40, %v9758_v33  ;;  %v11069_v62 = vsel %vm2825_vm2, %v2276_v42, -inf }
 0x3a4   : > { %13748 = vst [vmem:[#allocation20_spill] sm:$0xff] %v11062_v19  ;;  %3130 = vmax.xlane.f32.xlu1 %v13749_v35  ;;  %13750 = vst [vmem:[#allocation58_spill] sm:$0xff] %v11069_v62  ;;  %v2277_v61 = vcombine.low %v10922_v52, %v2265_v46  ;;  %v2278_v43 = vcombine.high %v10922_v52, %v2265_v46  ;;  %v2417_v28 = vcombine.low %v13752_v22, %v13751_v37  ;;  %v13753_v52 = vld [vmem:[#allocation26_spill] sm:$0xff]  ;;  %v13754_v46 = vld [vmem:[#allocation27_spill] sm:$0xff] }
 0x3a5   : > { %v2360_v58 = vrot.slane %v2346_v12, %v9758_v33  ;;  %v2279_v2 = vcombine.low %v10934_v44, %v2272_v24  ;;  %v2280_v32 = vcombine.high %v10934_v44, %v2272_v24  ;;  %v2393_v35 = vcombine.low %v2328_v21, %v10878_v31 }
 0x3a6   : > { %v2418_v40 = vcombine.high %v13752_v22, %v13751_v37  ;;  %v2862_v42 = vsel %vm2825_vm2, %v2409_v20, -inf  ;;  %v2681_v62 = vcombine.low %v11066_v27, %v11051_v30  ;;  %v2449_v19 = vcombine.low %v13754_v46, %v13753_v52  ;;  %v13755_v37 = vld [vmem:[#allocation23_spill] sm:$0xff] }
 0x3a7   : > { %2863 = vmax.xlane.f32.xlu0 %v2862_v42  ;;  %v2392_v12 = vrot.slane %v2378_v47, %v9758_v33  ;;  %v11088_v34 = vrot.slane %v2361_v0, %v9758_v33  ;;  %v11091_v44 = vrot.slane %v2362_v3, %v9758_v33  ;;  %v2394_v24 = vcombine.high %v2328_v21, %v10878_v31 }
 0x3a8   : > { %v2570_v20 = vcombine.high %v13736_v54, %v13735_v7  ;;  %3136 = vmax.xlane.f32.xlu1 %v13755_v37  ;;  %v11097_v22 = vpop.xlane.xlu0 %2830  ;;  %v11100_v11 = vsel %vm2825_vm2, %v2277_v61, -inf  ;;  %v5392_v42 = vunpack.c.0.s8 %v5391_v18  ;;  %v2425_v47 = vrot.slane %v2417_v28, %v9733_v29  ;;  %v13760_v37 = vld [vmem:[#allocation30_spill] sm:$0xff] }
 0x3a9   : > { %v2602_v0 = vcombine.high %v10587_v39, %v10628_v55  ;;  %v2410_v3 = vcombine.high %v11034_v60, %v11023_v5  ;;  %v11108_v31 = vsel %vm2825_vm2, %v2278_v43, -inf  ;;  %v2432_v7 = vrot.slane %v2418_v40, %v9733_v29  ;;  %v13759_v43 = vld [vmem:[#allocation9_spill] sm:$0xff] }
 0x3aa   : > { %13756 = vst [vmem:[#allocation56_spill] sm:$0xff] %v11108_v31  ;;  %v2868_v54 = vsel %vm2825_vm2, %v2681_v62, -inf  ;;  %v2401_v21 = vrot.slane %v2393_v35, %v9758_v33  ;;  %v11114_v61 = vsel %vm2825_vm2, %v2279_v2, -inf  ;;  %v2450_v18 = vcombine.high %v13754_v46, %v13753_v52 }
 0x3ab   : > { %13757 = vst [vmem:[#allocation60_spill] sm:$0xff] %v11114_v61  ;;  %v2457_v39 = vrot.slane %v2449_v19, %v9733_v29  ;;  %2869 = vmax.xlane.f32.xlu0 %v2868_v54  ;;  %v2411_v55 = vcombine.low %v2360_v58, %v2392_v12  ;;  %v11120_v5 = vsel %vm2825_vm2, %v2280_v32, -inf  ;;  %v11123_v60 = vrot.slane %v2570_v20, %v9733_v29 }
 0x3ac   : > { %13758 = vst [vmem:[#allocation10_spill] sm:$0xff] %v11120_v5  ;;  %3166 = vmax.xlane.f32.xlu1 %v13759_v43  ;;  %v11126_v62 = vpop.xlane.xlu0 %2833  ;;  %v2412_v28 = vcombine.high %v2360_v58, %v2392_v12  ;;  %v2408_v2 = vrot.slane %v2394_v24, %v9758_v33  ;;  %v11130_v35 = vsub.s32 %v5392_v42, %v13732_v63  ;;  %v2910_v52 = vsel %vm2825_vm2, %v2410_v3, -inf  ;;  %v13761_v3 = vld [vmem:[#allocation14_spill] sm:$0xff]  ;;  %v13763_v43 = vld [vmem:[#allocation37_spill] sm:$0xff] }
 0x3ad   : > { %v2481_v19 = vcombine.low %v2425_v47, %v10945_v9  ;;  %v2482_v40 = vcombine.high %v2425_v47, %v10945_v9  ;;  %v11135_v32 = vrot.slane %v2602_v0, %v9733_v29  ;;  %v2497_v46 = vcombine.low %v2432_v7, %v10954_v36  ;;  %v13781_v5 = vld [vmem:[#allocation45_spill] sm:$0xff] }
 0x3ae   : > { %v2498_v20 = vcombine.high %v2432_v7, %v10954_v36  ;;  %v2413_v58 = vcombine.low %v11088_v34, %v2401_v21  ;;  %v2464_v12 = vrot.slane %v2450_v18, %v9733_v29  ;;  %v2513_v24 = vcombine.low %v2457_v39, %v11039_v53 }
 0x3af   : > { %2899 = vmax.xlane.f32.xlu0 %v13760_v37  ;;  %v11145_v42 = vsel %vm2825_vm2, %v2411_v55, -inf  ;;  %v2414_v9 = vcombine.high %v11088_v34, %v2401_v21  ;;  %v9317_v47 = vmov 0   ;;  %v2514_v0 = vcombine.high %v2457_v39, %v11039_v53  ;;  %v13762_v55 = vld [vmem:[#allocation34_spill] sm:$0xff] }
 0x3b0   : > { %9237 = vset.pattern.permute.xlu1 %v9317_v47  ;;  %v2586_v36 = vcombine.high %v10689_v4, %v10717_v23  ;;  %v11152_v7 = vpop.xlane.xlu0 %2839  ;;  %v11155_v54 = vsel %vm2825_vm2, %v2412_v28, -inf  ;;  %v2415_v18 = vcombine.low %v11091_v44, %v2408_v2  ;;  %9236 = vset.pattern.permute.xlu0 %v9317_v47  ;;  %v2705_v34 = vcombine.low %v13763_v43, %v13762_v55 }
 0x3b1   : > { %3172 = vmax.xlane.f32.xlu1 %v13761_v3  ;;  %v2489_v21 = vrot.slane %v2481_v19, %v9758_v33  ;;  %v11162_v53 = vrot.slane %v2482_v40, %v9758_v33  ;;  %v2416_v4 = vcombine.high %v11091_v44, %v2408_v2  ;;  %v2706_v23 = vcombine.high %v13763_v43, %v13762_v55  ;;  %v13764_v40 = vld [vmem:[#allocation29_spill] sm:$0xff] }
 0x3b2   : > { %v2554_v39 = vcombine.high %v10630_v10, %v10663_v14  ;;  %v11170_v28 = vrot.slane %v2497_v46, %v9758_v33  ;;  %v11173_v37 = vrot.slane %v2498_v20, %v9758_v33  ;;  %v2529_v47 = vcombine.low %v2464_v12, %v11042_v6 }
 0x3b3   : > { %v2721_v19 = vcombine.low %v10810_v45, %v10850_v38  ;;  %2905 = vmax.xlane.f32.xlu0 %v10893_v59  ;;  %v2521_v44 = vrot.slane %v2513_v24, %v9758_v33  ;;  %v11181_v2 = vsel %vm2825_vm2, %v2413_v58, -inf  ;;  %v2737_v14 = vcombine.low %v10764_v16, %v10808_v26 }
 0x3b4   : > { %v2600_v10 = vrot.slane %v2586_v36, %v9733_v29  ;;  %v11187_v46 = vpop.xlane.xlu0 %2845  ;;  %v11190_v20 = vrot.slane %v2514_v0, %v9758_v33  ;;  %v11193_v45 = vsel %vm2825_vm2, %v2414_v9, -inf  ;;  %v11196_v38 = vrot.slane %v2705_v34, %v9733_v29 }
 0x3b5   : > { %3178 = vmax.xlane.f32.xlu1 %v13764_v40  ;;  %v2689_v59 = vcombine.low %v10750_v13, %v10782_v15  ;;  %v11201_v16 = vsel %vm2825_vm2, %v2415_v18, -inf  ;;  %v11204_v26 = vsel %vm2825_vm2, %v2416_v4, -inf  ;;  %v2530_v58 = vcombine.high %v2464_v12, %v11042_v6  ;;  %v13766_v12 = vld [vmem:[#allocation39_spill] sm:$0xff] }
 0x3b6   : > { %13765 = vst [vmem:[#allocation59_spill] sm:$0xff] %v11204_v26  ;;  %v11208_v24 = vrot.slane %v2706_v23, %v9733_v29  ;;  %v2568_v9 = vrot.slane %v2554_v39, %v9733_v29  ;;  %v2682_v0 = vcombine.high %v11066_v27, %v11051_v30  ;;  %v2650_v36 = vcombine.high %v10983_v8, %v11000_v56 }
 0x3b7   : > { %v2729_v3 = vrot.slane %v2721_v19, %v9733_v29  ;;  %2911 = vmax.xlane.f32.xlu0 %v2910_v52  ;;  %v2545_v18 = vcombine.low %v2489_v21, %v2521_v44  ;;  %v2537_v55 = vrot.slane %v2529_v47, %v9758_v33  ;;  %v2745_v43 = vrot.slane %v2737_v14, %v9733_v29 }
 0x3b8   : > { %v2665_v6 = vcombine.low %v2600_v10, %v11135_v32  ;;  %v11220_v34 = vpop.xlane.xlu0 %2875  ;;  %v2546_v4 = vcombine.high %v2489_v21, %v2521_v44  ;;  %v2547_v30 = vcombine.low %v11162_v53, %v11190_v20  ;;  %v2618_v8 = vcombine.high %v11003_v51, %v11018_v17 }
 0x3b9   : > { %3184 = vmax.xlane.f32.xlu1 %v13766_v12  ;;  %v2666_v56 = vcombine.high %v2600_v10, %v11135_v32  ;;  %v2690_v27 = vcombine.high %v10750_v13, %v10782_v15  ;;  %v2697_v52 = vrot.slane %v2689_v59, %v9733_v29  ;;  %v2633_v23 = vcombine.low %v2568_v9, %v11123_v60 }
 0x3ba   : > { %v2916_v39 = vsel %vm2825_vm2, %v2682_v0, -inf  ;;  %v2548_v21 = vcombine.high %v11162_v53, %v11190_v20  ;;  %v2544_v47 = vrot.slane %v2530_v58, %v9758_v33  ;;  %v2634_v19 = vcombine.high %v2568_v9, %v11123_v60 }
 0x3bb   : > { %v2785_v44 = vcombine.low %v2729_v3, %v2745_v43  ;;  %2917 = vmax.xlane.f32.xlu0 %v2916_v39  ;;  %v2865_v51 = vsel %vm2825_vm2, %v2545_v18, -inf  ;;  %v2664_v17 = vrot.slane %v2650_v36, %v9758_v33  ;;  %v11242_v15 = vsel %vm2825_vm2, %v2546_v4, -inf  ;;  %v13767_v36 = vld [vmem:[#allocation28_spill] sm:$0xff] }
 0x3bc   : > { %v11239_v13 = vpop.xlane.xlu0 %2881  ;;  %v11245_v32 = vsel %vm2825_vm2, %v2547_v30, -inf  ;;  %v2673_v53 = vrot.slane %v2665_v6, %v9758_v33  ;;  %v2549_v60 = vcombine.low %v11170_v28, %v2537_v55  ;;  %v2704_v14 = vrot.slane %v2690_v27, %v9733_v29 }
 0x3bd   : > { %2854 = vmax.xlane.f32.xlu1 %v10787_v48  ;;  %v2753_v10 = vcombine.low %v2697_v52, %v11196_v38  ;;  %v2632_v40 = vrot.slane %v2618_v8, %v9758_v33  ;;  %v2680_v48 = vrot.slane %v2666_v56, %v9758_v33  ;;  %v2641_v20 = vrot.slane %v2633_v23, %v9758_v33 }
 0x3be   : > { %v2550_v59 = vcombine.high %v11170_v28, %v2537_v55  ;;  %v2551_v58 = vcombine.low %v11173_v37, %v2544_v47  ;;  %v2552_v9 = vcombine.high %v11173_v37, %v2544_v47  ;;  %v2786_v0 = vcombine.high %v2729_v3, %v2745_v43 }
 0x3bf   : > { %2947 = vmax.xlane.f32.xlu0 %v13767_v36  ;;  %v11259_v18 = vrot.slane %v2785_v44, %v9758_v33  ;;  %v2683_v29 = vcombine.low %v2632_v40, %v2664_v17  ;;  %v2648_v6 = vrot.slane %v2634_v19, %v9758_v33  ;;  %v2754_v12 = vcombine.high %v2697_v52, %v11196_v38 }
 0x3c0   : > { %v11264_v4 = vpop.xlane.xlu0 %2887  ;;  %v2684_v28 = vcombine.high %v2632_v40, %v2664_v17  ;;  %v2685_v55 = vcombine.low %v2641_v20, %v2673_v53  ;;  %v2686_v30 = vcombine.high %v2641_v20, %v2673_v53  ;;  %v2769_v37 = vcombine.low %v2704_v14, %v11208_v24 }
 0x3c1   : > { %2860 = vmax.xlane.f32.xlu1 %v11045_v49  ;;  %v2770_v3 = vcombine.high %v2704_v14, %v11208_v24  ;;  %v11269_v43 = vrot.slane %v2753_v10, %v9758_v33  ;;  %v2687_v8 = vcombine.low %v2648_v6, %v2680_v48  ;;  %v11272_v56 = vsel %vm2825_vm2, %v2548_v21, -inf }
 0x3c2   : > { %v11275_v38 = vsel %vm2825_vm2, %v2549_v60, -inf  ;;  %v11278_v49 = vsel %vm2825_vm2, %v2550_v59, -inf  ;;  %v2688_v27 = vcombine.high %v2648_v6, %v2680_v48  ;;  %v11284_v24 = vrot.slane %v2786_v0, %v9758_v33  ;;  %v13776_v6 = vld [vmem:[#allocation52_spill] sm:$0xff] }
 0x3c3   : > { %13768 = vst [vmem:[#allocation53_spill] sm:$0xff] %v11278_v49  ;;  %2953 = vmax.xlane.f32.xlu0 %v10907_v50  ;;  %v2817_v52 = vcombine.low %v11269_v43, %v11259_v18  ;;  %v11287_v23 = vsel %vm2825_vm2, %v2551_v58, -inf  ;;  %v11290_v39 = vsel %vm2825_vm2, %v2552_v9, -inf  ;;  %v2964_v47 = vsel %vm2825_vm2, %v2683_v29, -inf }
 0x3c4   : > { %13769 = vst [vmem:[#allocation35_spill] sm:$0xff] %v11287_v23  ;;  %13770 = vst [vmem:[#allocation5_spill] sm:$0xff] %v11290_v39  ;;  %v11292_v21 = vpop.xlane.xlu0 %2893  ;;  %v11296_v19 = vsel %vm2825_vm2, %v2684_v28, -inf  ;;  %v11299_v50 = vsel %vm2825_vm2, %v2685_v55, -inf  ;;  %v11302_v44 = vsel %vm2825_vm2, %v2686_v30, -inf  ;;  %v11305_v53 = vrot.slane %v2754_v12, %v9758_v33  ;;  %v13777_v55 = vld [vmem:[#allocation51_spill] sm:$0xff] }
 0x3c5   : > { %2866 = vmax.xlane.f32.xlu1 %v2865_v51  ;;  %v2828_v17 = vpop.xlane.xlu1 %2827  ;;  %v11308_v60 = vrot.slane %v2769_v37, %v9758_v33  ;;  %v11311_v51 = vsel %vm2825_vm2, %v2687_v8, -inf  ;;  %v11314_v14 = vrot.slane %v2770_v3, %v9758_v33  ;;  %v13772_v40 = vcombine.low %v10871_v41, %v10868_v1  ;;  %v13778_v30 = vld [vmem:[#allocation48_spill] sm:$0xff]  ;;  %v13779_v3 = vld [vmem:[#allocation22_spill] sm:$0xff] }
 0x3c6   : > { %13771 = vst [vmem:[#allocation18_spill] sm:$0xff] %v11311_v51  ;;  %v3210_v10 = vmax.f32 %v2828_v17, %v11097_v22  ;;  %v11324_v20 = vsel %vm2825_vm2, %v2688_v27, -inf  ;;  %v13774_v59 = vcombine.high %v10871_v41, %v10868_v1  ;;  %v2871_v9 = vsel %vm2825_vm2, %v2817_v52, -inf  ;;  %v13775_v41 = vld [vmem:[#allocation55_spill] sm:$0xff]  ;;  %v13780_v8 = vld [vmem:[#allocation4_spill] sm:$0xff] }
 0x3c7   : > { %v11321_v48 = vrot.slane %v13772_v40, %v9758_v33  ;;  %13773 = vst [vmem:[#allocation21_spill] sm:$0xff] %v11324_v20  ;;  %2959 = vmax.xlane.f32.xlu0 %v11145_v42  ;;  %v2818_v22 = vcombine.high %v11269_v43, %v11259_v18  ;;  %v2819_v0 = vcombine.low %v11305_v53, %v11284_v24 }
 0x3c8   : > { %v11330_v58 = vrot.slane %v13774_v59, %v9758_v33  ;;  %v11340_v29 = vpop.xlane.xlu0 %2923  ;;  %v3341_v1 = vrot.slane %v3210_v10, %v10958_v25  ;;  %v3345_v33 = vrot.slane %v3210_v10, %v10961_v57  ;;  %v3349_v42 = vrot.slane %v3210_v10, %v13775_v41 }
 0x3c9   : > { %2872 = vmax.xlane.f32.xlu1 %v2871_v9  ;;  %v3353_v12 = vrot.slane %v3210_v10, %v13776_v6  ;;  %v2837_v28 = vpop.xlane.xlu1 %2836  ;;  %v3357_v18 = vrot.slane %v3210_v10, %v13777_v55  ;;  %v3361_v37 = vrot.slane %v3210_v10, %v13778_v30  ;;  %v3365_v43 = vrot.slane %v3210_v10, %v13779_v3 }
 0x3ca   : > { %v3369_v27 = vrot.slane %v3210_v10, %v13780_v8  ;;  %v3211_v52 = vmax.f32 %v11126_v62, %v2837_v28  ;;  %v2821_v17 = vcombine.low %v11308_v60, %v11321_v48  ;;  %v5386_v40 = vcombine.low %v3341_v1, %v3345_v33 }
 0x3cb   : > { %v5387_v59 = vcombine.low %v3349_v42, %v3353_v12  ;;  %2965 = vmax.xlane.f32.xlu0 %v2964_v47  ;;  %v2822_v9 = vcombine.high %v11308_v60, %v11321_v48  ;;  %v5388_v63 = vcombine.low %v3357_v18, %v3361_v37 }
 0x3cc   : > { %v5389_v39 = vcombine.low %v3365_v43, %v3369_v27  ;;  %v11358_v23 = vpop.xlane.xlu0 %2929  ;;  %v5396_v62 = vrot.slane %v5386_v40, %v11130_v35  ;;  %v3373_v1 = vrot.slane %v3211_v52, %v10958_v25  ;;  %v3377_v47 = vrot.slane %v3211_v52, %v10961_v57  ;;  %v13782_v43 = vld [vmem:[#allocation8_spill] sm:$0xff] }
 0x3cd   : > { %2902 = vmax.xlane.f32.xlu1 %v13781_v5  ;;  %v5403_v10 = vrot.slane %v5387_v59, %v11130_v35  ;;  %v2843_v33 = vpop.xlane.xlu1 %2842  ;;  %v5410_v60 = vrot.slane %v5388_v63, %v11130_v35  ;;  %v3381_v42 = vrot.slane %v3211_v52, %v13775_v41  ;;  %v3385_v12 = vrot.slane %v3211_v52, %v13776_v6  ;;  %v13783_v59 = vld [vmem:[#allocation7_spill] sm:$0xff] }
 0x3ce   : > { %v5417_v48 = vrot.slane %v5389_v39, %v11130_v35  ;;  %v3212_v5 = vmax.f32 %v11152_v7, %v2843_v33  ;;  %v3389_v18 = vrot.slane %v3211_v52, %v13777_v55  ;;  %v3393_v37 = vrot.slane %v3211_v52, %v13778_v30 }
 0x3cf   : > { %2995 = vmax.xlane.f32.xlu0 %v13782_v43  ;;  %v2919_v27 = vsel %vm2825_vm2, %v2818_v22, -inf  ;;  %v3397_v63 = vrot.slane %v3211_v52, %v13779_v3  ;;  %v3401_v39 = vrot.slane %v3211_v52, %v13780_v8  ;;  %v5435_v40 = vcombine.low %v3373_v1, %v3377_v47 }
 0x3d0   : > { %v11378_v36 = vpop.xlane.xlu0 %2935  ;;  %v11381_v7 = vsel %vm2825_vm2, %v2819_v0, -inf  ;;  %v5418_v33 = vcombine.low %v5396_v62, %v5403_v10  ;;  %v5436_v28 = vcombine.low %v3381_v42, %v3385_v12  ;;  %v5437_v61 = vcombine.low %v3389_v18, %v3393_v37 }
 0x3d1   : > { %2908 = vmax.xlane.f32.xlu1 %v13783_v59  ;;  %v2849_v20 = vpop.xlane.xlu1 %2848  ;;  %v5419_v26 = vcombine.low %v5410_v60, %v5417_v48  ;;  %v5438_v43 = vcombine.low %v3397_v63, %v3401_v39  ;;  %v3405_v22 = vrot.slane %v3212_v5, %v10958_v25  ;;  %v3409_v49 = vrot.slane %v3212_v5, %v10961_v57  ;;  %v13784_v59 = vld [vmem:[#allocation44_spill] sm:$0xff] }
 0x3d2   : > { %v11386_v52 = vmax.f32 %v11187_v46, %v2849_v20  ;;  %v5445_v1 = vrot.slane %v5435_v40, %v11130_v35  ;;  %v5452_v47 = vrot.slane %v5436_v28, %v11130_v35  ;;  %v3413_v0 = vrot.slane %v3212_v5, %v13775_v41 }
 0x3d3   : > { %3001 = vmax.xlane.f32.xlu0 %v13784_v59  ;;  %v5459_v62 = vrot.slane %v5437_v61, %v11130_v35  ;;  %v5466_v10 = vrot.slane %v5438_v43, %v11130_v35  ;;  %v3417_v60 = vrot.slane %v3212_v5, %v13776_v6  ;;  %v3421_v48 = vrot.slane %v3212_v5, %v13777_v55 }
 0x3d4   : > { %v11397_v46 = vpop.xlane.xlu0 %2941  ;;  %v13785_v20 = vcombine.high %v11305_v53, %v11284_v24  ;;  %v3425_v12 = vrot.slane %v3212_v5, %v13778_v30  ;;  %v3429_v61 = vrot.slane %v3212_v5, %v13779_v3  ;;  %v3433_v28 = vrot.slane %v3212_v5, %v13780_v8 }
 0x3d5   : > { %2914 = vmax.xlane.f32.xlu1 %v11242_v15  ;;  %v2879_v18 = vpop.xlane.xlu1 %2878  ;;  %v11409_v37 = vsel %vm2825_vm2, %v2821_v17, -inf  ;;  %v11412_v15 = vsel %vm2825_vm2, %v2822_v9, -inf  ;;  %v5426_v63 = vrot.slane %v5418_v33, %v11130_v35  ;;  %v5484_v39 = vcombine.low %v3405_v22, %v3409_v49 }
 0x3d6   : > { %v11403_v42 = vsel %vm2825_vm2, %v13785_v20, -inf  ;;  %13786 = vst [vmem:[#allocation61_spill] sm:$0xff] %v11412_v15  ;;  %v3218_v24 = vmax.f32 %v11220_v34, %v2879_v18  ;;  %v5433_v53 = vrot.slane %v5419_v26, %v11130_v35  ;;  %v11417_v40 = vcombine.low %v5445_v1, %v5452_v47 }
 0x3d7   : > { %v5485_v43 = vcombine.low %v3413_v0, %v3417_v60  ;;  %3007 = vmax.xlane.f32.xlu0 %v11155_v54  ;;  %v11420_v5 = vcombine.low %v5459_v62, %v5466_v10  ;;  %v11422_v59 = vcombine.low %v3421_v48, %v3425_v12  ;;  %v11424_v17 = vcombine.low %v3429_v61, %v3433_v28 }
 0x3d8   : > { %v5494_v9 = vrot.slane %v5484_v39, %v11130_v35  ;;  %v11427_v33 = vpop.xlane.xlu0 %2971  ;;  %v3597_v34 = vrot.slane %v3218_v24, %v10958_v25  ;;  %v3601_v26 = vrot.slane %v3218_v24, %v10961_v57  ;;  %v3605_v49 = vrot.slane %v3218_v24, %v13775_v41  ;;  %v13791_v39 = vld [vmem:[#allocation43_spill] sm:$0xff] }
 0x3d9   : > { %2920 = vmax.xlane.f32.xlu1 %v2919_v27  ;;  %v3609_v22 = vrot.slane %v3218_v24, %v13776_v6  ;;  %v2885_v54 = vpop.xlane.xlu1 %2884  ;;  %v3613_v1 = vrot.slane %v3218_v24, %v13777_v55  ;;  %v3617_v47 = vrot.slane %v3218_v24, %v13778_v30  ;;  %v3621_v0 = vrot.slane %v3218_v24, %v13779_v3 }
 0x3da   : > { %v3625_v62 = vrot.slane %v3218_v24, %v13780_v8  ;;  %v11438_v27 = vmax.f32 %v11239_v13, %v2885_v54  ;;  %v5778_v10 = vcombine.low %v3597_v34, %v3601_v26  ;;  %v5501_v48 = vrot.slane %v5485_v43, %v11130_v35 }
 0x3db   : > { %v5779_v60 = vcombine.low %v3605_v49, %v3609_v22  ;;  %3013 = vmax.xlane.f32.xlu0 %v11296_v19  ;;  %v13787_v20 = vcombine.low %v11314_v14, %v11330_v58  ;;  %v5780_v61 = vcombine.low %v3613_v1, %v3617_v47  ;;  %v13789_v18 = vcombine.high %v11314_v14, %v11330_v58  ;;  %v13795_v58 = vld [vmem:[#allocation6_spill] sm:$0xff] }
 0x3dc   : > { %v5781_v28 = vcombine.low %v3621_v0, %v3625_v62  ;;  %v11455_v24 = vpop.xlane.xlu0 %2977  ;;  %v11457_v43 = vcombine.low %v5426_v63, %v5433_v53  ;;  %v5788_v19 = vrot.slane %v5778_v10, %v11130_v35  ;;  %v3437_v26 = vrot.slane %v11386_v52, %v10958_v25  ;;  %v13793_v0 = vld [vmem:[#allocation32_spill] sm:$0xff] }
 0x3dd   : > { %v11446_v12 = vsel %vm2825_vm2, %v13787_v20, -inf  ;;  %v11452_v13 = vsel %vm2825_vm2, %v13789_v18, -inf  ;;  %2950 = vmax.xlane.f32.xlu1 %v13791_v39  ;;  %v5795_v34 = vrot.slane %v5779_v60, %v11130_v35  ;;  %v2891_v49 = vpop.xlane.xlu1 %2890  ;;  %v5508_v22 = vrot.slane %v11422_v59, %v11130_v35 }
 0x3de   : > { %13788 = vst [vmem:[#allocation54_spill] sm:$0xff] %v11446_v12  ;;  %13790 = vst [vmem:[#allocation15_spill] sm:$0xff] %v11452_v13  ;;  %v3441_v63 = vrot.slane %v11386_v52, %v10961_v57  ;;  %v3220_v53 = vmax.f32 %v11264_v4, %v2891_v49  ;;  %v5515_v54 = vrot.slane %v11424_v17, %v11130_v35  ;;  %v13794_v4 = vld [vmem:[#allocation20_spill] sm:$0xff] }
 0x3df   : > { %13792 = vst [vmem:[#allocation11_spill] sm:$0xff] %v11457_v43  ;;  %v11474_v1 = vcombine.low %v5494_v9, %v5501_v48  ;;  %v3445_v47 = vrot.slane %v11386_v52, %v13775_v41  ;;  %3043 = vmax.xlane.f32.xlu0 %v13793_v0  ;;  %v5802_v62 = vrot.slane %v5780_v61, %v11130_v35 }
 0x3e0   : > { %v5809_v10 = vrot.slane %v5781_v28, %v11130_v35  ;;  %v11481_v59 = vcombine.low %v5788_v19, %v5795_v34  ;;  %v3449_v60 = vrot.slane %v11386_v52, %v13776_v6  ;;  %v11486_v20 = vpop.xlane.xlu0 %2983  ;;  %v3661_v17 = vrot.slane %v3220_v53, %v10958_v25 }
 0x3e1   : > { %2956 = vmax.xlane.f32.xlu1 %v13794_v4  ;;  %v3665_v9 = vrot.slane %v3220_v53, %v10961_v57  ;;  %v3669_v48 = vrot.slane %v3220_v53, %v13775_v41  ;;  %v3453_v61 = vrot.slane %v11386_v52, %v13777_v55  ;;  %v2897_v18 = vpop.xlane.xlu1 %2896  ;;  %v3673_v28 = vrot.slane %v3220_v53, %v13776_v6 }
 0x3e2   : > { %v3677_v39 = vrot.slane %v3220_v53, %v13777_v55  ;;  %v3681_v19 = vrot.slane %v3220_v53, %v13778_v30  ;;  %v3457_v34 = vrot.slane %v11386_v52, %v13778_v30  ;;  %v11499_v49 = vmax.f32 %v11292_v21, %v2897_v18 }
 0x3e3   : > { %v3685_v0 = vrot.slane %v3220_v53, %v13779_v3  ;;  %v3689_v4 = vrot.slane %v3220_v53, %v13780_v8  ;;  %v5876_v14 = vcombine.low %v3661_v17, %v3665_v9  ;;  %3049 = vmax.xlane.f32.xlu0 %v13795_v58  ;;  %v5811_v13 = vcombine.low %v5802_v62, %v5809_v10 }
 0x3e4   : > { %v5877_v43 = vcombine.low %v3669_v48, %v3673_v28  ;;  %v5878_v12 = vcombine.low %v3677_v39, %v3681_v19  ;;  %v3461_v15 = vrot.slane %v11386_v52, %v13779_v3  ;;  %v11507_v31 = vpop.xlane.xlu0 %2989  ;;  %v3465_v18 = vrot.slane %v11386_v52, %v13780_v8 }
 0x3e5   : > { %2962 = vmax.xlane.f32.xlu1 %v11245_v32  ;;  %v5879_v51 = vcombine.low %v3685_v0, %v3689_v4  ;;  %v5886_v21 = vrot.slane %v5876_v14, %v11130_v35  ;;  %v5533_v53 = vcombine.low %v3437_v26, %v3441_v63  ;;  %v2927_v17 = vpop.xlane.xlu1 %2926  ;;  %v11513_v62 = vcombine.low %v5508_v22, %v5515_v54 }
 0x3e6   : > { %v5893_v58 = vrot.slane %v5877_v43, %v11130_v35  ;;  %v5534_v10 = vcombine.low %v3445_v47, %v3449_v60  ;;  %v5535_v9 = vcombine.low %v3453_v61, %v3457_v34  ;;  %v3226_v48 = vmax.f32 %v11340_v29, %v2927_v17 }
 0x3e7   : > { %v5818_v32 = vrot.slane %v11481_v59, %v11130_v35  ;;  %v5900_v28 = vrot.slane %v5878_v12, %v11130_v35  ;;  %v5907_v14 = vrot.slane %v5879_v51, %v11130_v35  ;;  %3055 = vmax.xlane.f32.xlu0 %v11181_v2  ;;  %v5825_v52 = vrot.slane %v5811_v13, %v11130_v35 }
 0x3e8   : > { %v11522_v26 = vcombine.low %v5886_v21, %v5893_v58  ;;  %v5536_v43 = vcombine.low %v3461_v15, %v3465_v18  ;;  %v5543_v22 = vrot.slane %v5533_v53, %v11130_v35  ;;  %v11526_v63 = vpop.xlane.xlu0 %3019  ;;  %v3853_v29 = vrot.slane %v3226_v48, %v10958_v25  ;;  %v13796_v21 = vld [vmem:[#allocation38_spill] sm:$0xff] }
 0x3e9   : > { %2968 = vmax.xlane.f32.xlu1 %v11381_v7  ;;  %v3857_v54 = vrot.slane %v3226_v48, %v10961_v57  ;;  %v3861_v12 = vrot.slane %v3226_v48, %v13775_v41  ;;  %v5550_v51 = vrot.slane %v5534_v10, %v11130_v35  ;;  %v2933_v2 = vpop.xlane.xlu1 %2932  ;;  %v3865_v13 = vrot.slane %v3226_v48, %v13776_v6  ;;  %v13803_v10 = vld [vmem:[#allocation36_spill] sm:$0xff] }
 0x3ea   : > { %v3869_v47 = vrot.slane %v3226_v48, %v13777_v55  ;;  %v3873_v15 = vrot.slane %v3226_v48, %v13778_v30  ;;  %v5557_v59 = vrot.slane %v5535_v9, %v11130_v35  ;;  %v11537_v7 = vmax.f32 %v11358_v23, %v2933_v2 }
 0x3eb   : > { %v11539_v60 = vcombine.low %v5900_v28, %v5907_v14  ;;  %v3877_v61 = vrot.slane %v3226_v48, %v13779_v3  ;;  %v3881_v39 = vrot.slane %v3226_v48, %v13780_v8  ;;  %3061 = vmax.xlane.f32.xlu0 %v11299_v50  ;;  %v6170_v19 = vcombine.low %v3853_v29, %v3857_v54 }
 0x3ec   : > { %v6171_v34 = vcombine.low %v3861_v12, %v3865_v13  ;;  %v6172_v0 = vcombine.low %v3869_v47, %v3873_v15  ;;  %v5564_v4 = vrot.slane %v5536_v43, %v11130_v35  ;;  %v11546_v18 = vpop.xlane.xlu0 %3025  ;;  %v13797_v23 = vrot.slane %v11420_v5, %v11130_v35  ;;  %v13800_v12 = vld [vmem:[#allocation49_spill] sm:$0xff] }
 0x3ed   : > { %2998 = vmax.xlane.f32.xlu1 %v13796_v21  ;;  %v6173_v53 = vcombine.low %v3877_v61, %v3881_v39  ;;  %v13798_v17 = vrot.slane %v11417_v40, %v11130_v35  ;;  %v2939_v9 = vpop.xlane.xlu1 %2938  ;;  %v11560_v48 = vcombine.low %v5818_v32, %v5825_v52  ;;  %v6180_v28 = vrot.slane %v6170_v19, %v11130_v35 }
 0x3ee   : > { %v6187_v14 = vrot.slane %v6171_v34, %v11130_v35  ;;  %v3629_v5 = vrot.slane %v11438_v27, %v10958_v25  ;;  %v3228_v40 = vmax.f32 %v11378_v36, %v2939_v9  ;;  %v6194_v29 = vrot.slane %v6172_v0, %v11130_v35  ;;  %v13801_v36 = vld [vmem:[#allocation58_spill] sm:$0xff] }
 0x3ef   : > { %v11554_v58 = vcombine.low %v13798_v17, %v13797_v23  ;;  %v6201_v54 = vrot.slane %v6173_v53, %v11130_v35  ;;  %3091 = vmax.xlane.f32.xlu0 %v13800_v12  ;;  %v5923_v32 = vrot.slane %v11539_v60, %v11130_v35  ;;  %v11574_v52 = vcombine.low %v5543_v22, %v5550_v51  ;;  %v13802_v17 = vld [vmem:[#allocation50_spill] sm:$0xff] }
 0x3f0   : > { %v11576_v2 = vcombine.low %v5557_v59, %v5564_v4  ;;  %v3633_v13 = vrot.slane %v11438_v27, %v10961_v57  ;;  %v11581_v47 = vpop.xlane.xlu0 %3031  ;;  %v3917_v15 = vrot.slane %v3228_v40, %v10958_v25  ;;  %v3921_v61 = vrot.slane %v3228_v40, %v10961_v57 }
 0x3f1   : > { %13799 = vst [vmem:[#allocation25_spill] sm:$0xff] %v11554_v58  ;;  %3004 = vmax.xlane.f32.xlu1 %v13801_v36  ;;  %v3925_v39 = vrot.slane %v3228_v40, %v13775_v41  ;;  %v3637_v19 = vrot.slane %v11438_v27, %v13775_v41  ;;  %v2945_v22 = vpop.xlane.xlu1 %2944  ;;  %v6202_v51 = vcombine.low %v6180_v28, %v6187_v14 }
 0x3f2   : > { %v3929_v59 = vrot.slane %v3228_v40, %v13776_v6  ;;  %v3933_v34 = vrot.slane %v3228_v40, %v13777_v55  ;;  %v3937_v0 = vrot.slane %v3228_v40, %v13778_v30  ;;  %v11592_v4 = vmax.f32 %v11397_v46, %v2945_v22 }
 0x3f3   : > { %v6203_v21 = vcombine.low %v6194_v29, %v6201_v54  ;;  %v3941_v53 = vrot.slane %v3228_v40, %v13779_v3  ;;  %v3945_v23 = vrot.slane %v3228_v40, %v13780_v8  ;;  %3097 = vmax.xlane.f32.xlu0 %v13802_v17  ;;  %v6268_v9 = vcombine.low %v3917_v15, %v3921_v61 }
 0x3f4   : > { %v6269_v12 = vcombine.low %v3925_v39, %v3929_v59  ;;  %v6270_v36 = vcombine.low %v3933_v34, %v3937_v0  ;;  %v3641_v28 = vrot.slane %v11438_v27, %v13776_v6  ;;  %v11600_v14 = vpop.xlane.xlu0 %3037  ;;  %v5573_v46 = vrot.slane %v11574_v52, %v11130_v35 }
 0x3f5   : > { %3010 = vmax.xlane.f32.xlu1 %v11272_v56  ;;  %v6271_v50 = vcombine.low %v3941_v53, %v3945_v23  ;;  %v5580_v29 = vrot.slane %v11576_v2, %v11130_v35  ;;  %v3645_v40 = vrot.slane %v11438_v27, %v13777_v55  ;;  %v2975_v54 = vpop.xlane.xlu1 %2974  ;;  %v6210_v15 = vrot.slane %v6202_v51, %v11130_v35 }
 0x3f6   : > { %v6278_v61 = vrot.slane %v6268_v9, %v11130_v35  ;;  %v6285_v39 = vrot.slane %v6269_v12, %v11130_v35  ;;  %v3649_v56 = vrot.slane %v11438_v27, %v13778_v30  ;;  %v3234_v22 = vmax.f32 %v11427_v33, %v2975_v54 }
 0x3f7   : > { %v6217_v52 = vrot.slane %v6203_v21, %v11130_v35  ;;  %v6292_v59 = vrot.slane %v6270_v36, %v11130_v35  ;;  %v6299_v2 = vrot.slane %v6271_v50, %v11130_v35  ;;  %3103 = vmax.xlane.f32.xlu0 %v11193_v45  ;;  %v3653_v51 = vrot.slane %v11438_v27, %v13779_v3 }
 0x3f8   : > { %v3657_v34 = vrot.slane %v11438_v27, %v13780_v8  ;;  %v5827_v0 = vcombine.low %v3629_v5, %v3633_v13  ;;  %v5828_v53 = vcombine.low %v3637_v19, %v3641_v28  ;;  %v11623_v23 = vpop.xlane.xlu0 %3067  ;;  %v6300_v33 = vcombine.low %v6278_v61, %v6285_v39 }
 0x3f9   : > { %3016 = vmax.xlane.f32.xlu1 %v11403_v42  ;;  %v4109_v21 = vrot.slane %v3234_v22, %v10958_v25  ;;  %v4113_v17 = vrot.slane %v3234_v22, %v10961_v57  ;;  %v4117_v50 = vrot.slane %v3234_v22, %v13775_v41  ;;  %v2981_v45 = vpop.xlane.xlu1 %2980  ;;  %v4121_v9 = vrot.slane %v3234_v22, %v13776_v6 }
 0x3fa   : > { %v4125_v12 = vrot.slane %v3234_v22, %v13777_v55  ;;  %v4129_v27 = vrot.slane %v3234_v22, %v13778_v30  ;;  %v5829_v5 = vcombine.low %v3645_v40, %v3649_v56  ;;  %v11632_v13 = vmax.f32 %v11455_v24, %v2981_v45 }
 0x3fb   : > { %v6301_v42 = vcombine.low %v6292_v59, %v6299_v2  ;;  %v4133_v19 = vrot.slane %v3234_v22, %v13779_v3  ;;  %v4137_v36 = vrot.slane %v3234_v22, %v13780_v8  ;;  %3109 = vmax.xlane.f32.xlu0 %v11302_v44  ;;  %v6562_v28 = vcombine.low %v4109_v21, %v4113_v17  ;;  %v13809_v17 = vld [vmem:[#allocation41_spill] sm:$0xff] }
 0x3fc   : > { %v6563_v54 = vcombine.low %v4117_v50, %v4121_v9  ;;  %v6564_v61 = vcombine.low %v4125_v12, %v4129_v27  ;;  %v5830_v39 = vcombine.low %v3653_v51, %v3657_v34  ;;  %v11638_v43 = vpop.xlane.xlu0 %3073  ;;  %v13804_v24 = vrot.slane %v11522_v26, %v11130_v35 }
 0x3fd   : > { %3046 = vmax.xlane.f32.xlu1 %v13803_v10  ;;  %v6565_v56 = vcombine.low %v4133_v19, %v4137_v36  ;;  %v13805_v44 = vrot.slane %v11513_v62, %v11130_v35  ;;  %v13806_v22 = vrot.slane %v11474_v1, %v11130_v35  ;;  %v11656_v10 = vcombine.low %v5573_v46, %v5580_v29  ;;  %v2987_v2 = vpop.xlane.xlu1 %2986 }
 0x3fe   : > { %v11646_v40 = vcombine.low %v13804_v24, %v5923_v32  ;;  %v11658_v51 = vcombine.low %v6210_v15, %v6217_v52  ;;  %v6308_v60 = vrot.slane %v6300_v33, %v11130_v35  ;;  %v6572_v26 = vrot.slane %v6562_v28, %v11130_v35  ;;  %v13810_v28 = vld [vmem:[#allocation47_spill] sm:$0xff] }
 0x3ff   : > { %v11654_v59 = vcombine.low %v13806_v22, %v13805_v44  ;;  %13808 = vst [vmem:[#allocation13_spill] sm:$0xff] %v11656_v10  ;;  %v6579_v32 = vrot.slane %v6563_v54, %v11130_v35  ;;  %v3236_v34 = vmax.f32 %v11486_v20, %v2987_v2  ;;  %v6315_v62 = vrot.slane %v6301_v42, %v11130_v35  ;;  %v13824_v10 = vld [vmem:[#allocation40_spill] sm:$0xff] }
 0x400   : > { %v5837_v21 = vrot.slane %v5827_v0, %v11130_v35  ;;  %v5844_v1 = vrot.slane %v5828_v53, %v11130_v35  ;;  %3139 = vmax.xlane.f32.xlu0 %v13809_v17  ;;  %v6586_v46 = vrot.slane %v6564_v61, %v11130_v35  ;;  %v5851_v29 = vrot.slane %v5829_v5, %v11130_v35  ;;  %v11674_v20 = vpop.xlane.xlu0 %3079 }
 0x401   : > { %13807 = vst [vmem:[#allocation24_spill] sm:$0xff] %v11654_v59  ;;  %v5858_v15 = vrot.slane %v5830_v39, %v11130_v35  ;;  %v3693_v52 = vrot.slane %v11499_v49, %v10958_v25  ;;  %3052 = vmax.xlane.f32.xlu1 %v11100_v11  ;;  %v6593_v33 = vrot.slane %v6565_v56, %v11130_v35  ;;  %v2993_v45 = vpop.xlane.xlu1 %2992 }
 0x402   : > { %v4173_v0 = vrot.slane %v3236_v34, %v10958_v25  ;;  %v4177_v53 = vrot.slane %v3236_v34, %v10961_v57  ;;  %v4181_v50 = vrot.slane %v3236_v34, %v13775_v41  ;;  %v11680_v9 = vcombine.low %v6572_v26, %v6579_v32 }
 0x403   : > { %v4185_v12 = vrot.slane %v3236_v34, %v13776_v6  ;;  %v4189_v27 = vrot.slane %v3236_v34, %v13777_v55  ;;  %v4193_v5 = vrot.slane %v3236_v34, %v13778_v30  ;;  %v11685_v11 = vcombine.low %v6308_v60, %v6315_v62 }
 0x404   : > { %v4197_v42 = vrot.slane %v3236_v34, %v13779_v3  ;;  %v4201_v19 = vrot.slane %v3236_v34, %v13780_v8  ;;  %v11689_v36 = vcombine.low %v5837_v21, %v5844_v1  ;;  %3145 = vmax.xlane.f32.xlu0 %v13810_v28  ;;  %v6660_v54 = vcombine.low %v4173_v0, %v4177_v53  ;;  %v11695_v56 = vpop.xlane.xlu0 %3085 }
 0x405   : > { %v6661_v61 = vcombine.low %v4181_v50, %v4185_v12  ;;  %v6662_v39 = vcombine.low %v4189_v27, %v4193_v5  ;;  %v3697_v24 = vrot.slane %v11499_v49, %v10961_v57  ;;  %3058 = vmax.xlane.f32.xlu1 %v11275_v38  ;;  %v11697_v22 = vcombine.low %v5851_v29, %v5858_v15  ;;  %v3023_v26 = vpop.xlane.xlu1 %3022 }
 0x406   : > { %v6663_v44 = vcombine.low %v4197_v42, %v4201_v19  ;;  %v3701_v2 = vrot.slane %v11499_v49, %v13775_v41  ;;  %v3705_v60 = vrot.slane %v11499_v49, %v13776_v6  ;;  %v11703_v32 = vcombine.low %v6586_v46, %v6593_v33 }
 0x407   : > { %v6670_v62 = vrot.slane %v6660_v54, %v11130_v35  ;;  %v6677_v38 = vrot.slane %v6661_v61, %v11130_v35  ;;  %v11710_v21 = vmax.f32 %v11507_v31, %v2993_v45  ;;  %v3242_v1 = vmax.f32 %v11526_v63, %v3023_v26  ;;  %v13811_v61 = vld [vmem:[#allocation18_spill] sm:$0xff] }
 0x408   : > { %v6684_v17 = vrot.slane %v6662_v39, %v11130_v35  ;;  %v6691_v29 = vrot.slane %v6663_v44, %v11130_v35  ;;  %3151 = vmax.xlane.f32.xlu0 %v11201_v16  ;;  %v3709_v15 = vrot.slane %v11499_v49, %v13777_v55  ;;  %v3713_v33 = vrot.slane %v11499_v49, %v13778_v30  ;;  %v11725_v63 = vpop.xlane.xlu0 %3115 }
 0x409   : > { %v11716_v46 = vcombine.low %v6670_v62, %v6677_v38  ;;  %v3717_v31 = vrot.slane %v11499_v49, %v13779_v3  ;;  %3064 = vmax.xlane.f32.xlu1 %v11409_v37  ;;  %v4365_v0 = vrot.slane %v3242_v1, %v10958_v25  ;;  %v4369_v53 = vrot.slane %v3242_v1, %v10961_v57  ;;  %v3029_v45 = vpop.xlane.xlu1 %3028  ;;  %v13812_v62 = vld [vmem:[#allocation42_spill] sm:$0xff] }
 0x40a   : > { %v4373_v16 = vrot.slane %v3242_v1, %v13775_v41  ;;  %v3721_v50 = vrot.slane %v11499_v49, %v13780_v8  ;;  %v4377_v12 = vrot.slane %v3242_v1, %v13776_v6  ;;  %v4381_v27 = vrot.slane %v3242_v1, %v13777_v55 }
 0x40b   : > { %v4385_v5 = vrot.slane %v3242_v1, %v13778_v30  ;;  %v5925_v42 = vcombine.low %v3693_v52, %v3697_v24  ;;  %v6693_v37 = vcombine.low %v6684_v17, %v6691_v29  ;;  %v4389_v19 = vrot.slane %v3242_v1, %v13779_v3 }
 0x40c   : > { %v4393_v28 = vrot.slane %v3242_v1, %v13780_v8  ;;  %v5926_v54 = vcombine.low %v3701_v2, %v3705_v60  ;;  %3157 = vmax.xlane.f32.xlu0 %v13811_v61  ;;  %v6954_v39 = vcombine.low %v4365_v0, %v4369_v53  ;;  %v6955_v44 = vcombine.low %v4373_v16, %v4377_v12  ;;  %v11739_v38 = vpop.xlane.xlu0 %3121 }
 0x40d   : > { %v6956_v26 = vcombine.low %v4381_v27, %v4385_v5  ;;  %v5927_v49 = vcombine.low %v3709_v15, %v3713_v33  ;;  %3094 = vmax.xlane.f32.xlu1 %v13812_v62  ;;  %v6609_v34 = vrot.slane %v11703_v32, %v11130_v35  ;;  %v5867_v24 = vrot.slane %v11689_v36, %v11130_v35  ;;  %v3035_v1 = vpop.xlane.xlu1 %3034  ;;  %v13813_v36 = vld [vmem:[#allocation3_spill] sm:$0xff] }
 0x40e   : > { %v6957_v52 = vcombine.low %v4389_v19, %v4393_v28  ;;  %v5928_v17 = vcombine.low %v3717_v31, %v3721_v50  ;;  %v6964_v2 = vrot.slane %v6954_v39, %v11130_v35  ;;  %v6971_v60 = vrot.slane %v6955_v44, %v11130_v35 }
 0x40f   : > { %v6978_v29 = vrot.slane %v6956_v26, %v11130_v35  ;;  %v5874_v15 = vrot.slane %v11697_v22, %v11130_v35  ;;  %v3244_v33 = vmax.f32 %v11581_v47, %v3035_v1  ;;  %v5935_v32 = vrot.slane %v5925_v42, %v11130_v35  ;;  %v13814_v22 = vld [vmem:[#allocation56_spill] sm:$0xff] }
 0x410   : > { %v6985_v0 = vrot.slane %v6957_v52, %v11130_v35  ;;  %v5942_v53 = vrot.slane %v5926_v54, %v11130_v35  ;;  %3187 = vmax.xlane.f32.xlu0 %v13813_v36  ;;  %v6700_v31 = vrot.slane %v11716_v46, %v11130_v35  ;;  %v6707_v16 = vrot.slane %v6693_v37, %v11130_v35  ;;  %v11761_v47 = vpop.xlane.xlu0 %3127  ;;  %v13816_v52 = vld [vmem:[#allocation57_spill] sm:$0xff] }
 0x411   : > { %v5949_v50 = vrot.slane %v5927_v49, %v11130_v35  ;;  %v5956_v12 = vrot.slane %v5928_v17, %v11130_v35  ;;  %3100 = vmax.xlane.f32.xlu1 %v13814_v22  ;;  %v11763_v27 = vcombine.low %v6964_v2, %v6971_v60  ;;  %v4429_v5 = vrot.slane %v3244_v33, %v10958_v25  ;;  %v11768_v28 = vpop.xlane.xlu1 %3040 }
 0x412   : > { %v4433_v42 = vrot.slane %v3244_v33, %v10961_v57  ;;  %v4437_v19 = vrot.slane %v3244_v33, %v13775_v41  ;;  %v11770_v46 = vcombine.low %v6978_v29, %v6985_v0  ;;  %v4441_v37 = vrot.slane %v3244_v33, %v13776_v6  ;;  %v13819_v0 = vld [vmem:[#allocation53_spill] sm:$0xff] }
 0x413   : > { %v4445_v54 = vrot.slane %v3244_v33, %v13777_v55  ;;  %v4449_v61 = vrot.slane %v3244_v33, %v13778_v30  ;;  %v13815_v39 = vrot.slane %v11680_v9, %v11130_v35  ;;  %v4453_v26 = vrot.slane %v3244_v33, %v13779_v3 }
 0x414   : > { %v4457_v49 = vrot.slane %v3244_v33, %v13780_v8  ;;  %v11782_v62 = vcombine.low %v5935_v32, %v5942_v53  ;;  %3193 = vmax.xlane.f32.xlu0 %v13816_v52  ;;  %v7052_v17 = vcombine.low %v4429_v5, %v4433_v42  ;;  %v7053_v1 = vcombine.low %v4437_v19, %v4441_v37  ;;  %v11791_v9 = vpop.xlane.xlu0 %3133  ;;  %v13821_v5 = vld [vmem:[#allocation59_spill] sm:$0xff] }
 0x415   : > { %v11778_v44 = vcombine.low %v13815_v39, %v6609_v34  ;;  %v7054_v2 = vcombine.low %v4445_v54, %v4449_v61  ;;  %v11785_v60 = vcombine.low %v5867_v24, %v5874_v15  ;;  %v11788_v29 = vmax.f32 %v11546_v18, %v3029_v45  ;;  %3106 = vmax.xlane.f32.xlu1 %v13819_v0  ;;  %v3071_v32 = vpop.xlane.xlu1 %3070 }
 0x416   : > { %v11793_v34 = vcombine.low %v6700_v31, %v6707_v16  ;;  %v7055_v36 = vcombine.low %v4453_v26, %v4457_v49  ;;  %v3885_v33 = vrot.slane %v11537_v7, %v10958_v25  ;;  %v11801_v15 = vcombine.low %v5949_v50, %v5956_v12 }
 0x417   : > { %13817 = vst [vmem:[#allocation19_spill] sm:$0xff] %v11785_v60  ;;  %13818 = vst [vmem:[#allocation33_spill] sm:$0xff] %v11788_v29  ;;  %v3889_v18 = vrot.slane %v11537_v7, %v10961_v57  ;;  %v3250_v45 = vmax.f32 %v11623_v23, %v3071_v32  ;;  %v7062_v31 = vrot.slane %v7052_v17, %v11130_v35  ;;  %v13822_v23 = vld [vmem:[#allocation61_spill] sm:$0xff] }
 0x418   : > { %13820 = vst [vmem:[#allocation16_spill] sm:$0xff] %v11793_v34  ;;  %v7069_v16 = vrot.slane %v7053_v1, %v11130_v35  ;;  %3199 = vmax.xlane.f32.xlu0 %v13821_v5  ;;  %v7076_v42 = vrot.slane %v7054_v2, %v11130_v35  ;;  %v7083_v19 = vrot.slane %v7055_v36, %v11130_v35  ;;  %v11818_v37 = vpop.xlane.xlu0 %3163 }
 0x419   : > { %v3893_v50 = vrot.slane %v11537_v7, %v13775_v41  ;;  %v3897_v12 = vrot.slane %v11537_v7, %v13776_v6  ;;  %3112 = vmax.xlane.f32.xlu1 %v13822_v23  ;;  %v4621_v54 = vrot.slane %v3250_v45, %v10958_v25  ;;  %v4625_v61 = vrot.slane %v3250_v45, %v10961_v57  ;;  %v3077_v49 = vpop.xlane.xlu1 %3076  ;;  %v13823_v23 = vld [vmem:[#allocation21_spill] sm:$0xff] }
 0x41a   : > { %v4629_v39 = vrot.slane %v3250_v45, %v13775_v41  ;;  %v3901_v26 = vrot.slane %v11537_v7, %v13777_v55  ;;  %v4633_v52 = vrot.slane %v3250_v45, %v13776_v6  ;;  %v4637_v17 = vrot.slane %v3250_v45, %v13777_v55 }
 0x41b   : > { %v4641_v1 = vrot.slane %v3250_v45, %v13778_v30  ;;  %v3905_v2 = vrot.slane %v11537_v7, %v13778_v30  ;;  %v7084_v0 = vcombine.low %v7062_v31, %v7069_v16  ;;  %v4645_v36 = vrot.slane %v3250_v45, %v13779_v3 }
 0x41c   : > { %v4649_v32 = vrot.slane %v3250_v45, %v13780_v8  ;;  %v3909_v5 = vrot.slane %v11537_v7, %v13779_v3  ;;  %3205 = vmax.xlane.f32.xlu0 %v13823_v23  ;;  %v7346_v22 = vcombine.low %v4621_v54, %v4625_v61  ;;  %v7347_v53 = vcombine.low %v4629_v39, %v4633_v52  ;;  %v11838_v59 = vpop.xlane.xlu0 %3169 }
 0x41d   : > { %v7348_v24 = vcombine.low %v4637_v17, %v4641_v1  ;;  %v3913_v60 = vrot.slane %v11537_v7, %v13780_v8  ;;  %3142 = vmax.xlane.f32.xlu1 %v13824_v10  ;;  %v7085_v31 = vcombine.low %v7076_v42, %v7083_v19  ;;  %v6219_v29 = vcombine.low %v3885_v33, %v3889_v18  ;;  %v11840_v45 = vpop.xlane.xlu1 %3082 }
 0x41e   : > { %v7349_v16 = vcombine.low %v4645_v36, %v4649_v32  ;;  %v6220_v34 = vcombine.low %v3893_v50, %v3897_v12  ;;  %v7356_v58 = vrot.slane %v7346_v22, %v11130_v35  ;;  %v7363_v23 = vrot.slane %v7347_v53, %v11130_v35  ;;  %v13825_v22 = vld [vmem:[#allocation60_spill] sm:$0xff] }
 0x41f   : > { %v7370_v54 = vrot.slane %v7348_v24, %v11130_v35  ;;  %v6221_v61 = vcombine.low %v3901_v26, %v3905_v2  ;;  %v5972_v7 = vrot.slane %v11801_v15, %v11130_v35  ;;  %v6222_v10 = vcombine.low %v3909_v5, %v3913_v60 }
 0x420   : > { %v7377_v39 = vrot.slane %v7349_v16, %v11130_v35  ;;  %v6229_v42 = vrot.slane %v6219_v29, %v11130_v35  ;;  %v7092_v33 = vrot.slane %v7084_v0, %v11130_v35  ;;  %v6236_v18 = vrot.slane %v6220_v34, %v11130_v35  ;;  %v11855_v24 = vpop.xlane.xlu0 %3175 }
 0x421   : > { %v6243_v19 = vrot.slane %v6221_v61, %v11130_v35  ;;  %v3949_v53 = vrot.slane %v11592_v4, %v10958_v25  ;;  %3148 = vmax.xlane.f32.xlu1 %v13825_v22  ;;  %v7099_v50 = vrot.slane %v7085_v31, %v11130_v35  ;;  %v6250_v15 = vrot.slane %v6222_v10, %v11130_v35  ;;  %v11863_v34 = vpop.xlane.xlu1 %3088 }
 0x422   : > { %v3953_v60 = vrot.slane %v11592_v4, %v10961_v57  ;;  %v3957_v29 = vrot.slane %v11592_v4, %v13775_v41  ;;  %v11865_v12 = vcombine.low %v7356_v58, %v7363_v23  ;;  %v11867_v26 = vcombine.low %v7370_v54, %v7377_v39 }
 0x423   : > { %v3961_v52 = vrot.slane %v11592_v4, %v13776_v6  ;;  %v3965_v17 = vrot.slane %v11592_v4, %v13777_v55  ;;  %v11875_v1 = vmax.f32 %v11600_v14, %v11768_v28  ;;  %v13826_v2 = vrot.slane %v11770_v46, %v11130_v35 }
 0x424   : > { %v13827_v0 = vrot.slane %v11763_v27, %v11130_v35  ;;  %v11885_v36 = vcombine.low %v6229_v42, %v6236_v18  ;;  %v3969_v32 = vrot.slane %v11592_v4, %v13778_v30  ;;  %v11889_v5 = vcombine.low %v6243_v19, %v6250_v15  ;;  %v13828_v27 = vld [vmem:[#allocation35_spill] sm:$0xff]  ;;  %v11904_v39 = vpop.xlane.xlu0 %3181  ;;  %v13830_v15 = vld [vmem:[#allocation54_spill] sm:$0xff] }
 0x425   : > { %v3973_v31 = vrot.slane %v11592_v4, %v13779_v3  ;;  %v3977_v14 = vrot.slane %v11592_v4, %v13780_v8  ;;  %v6317_v28 = vcombine.low %v3949_v53, %v3953_v60  ;;  %v11896_v46 = vmax.f32 %v11638_v43, %v3077_v49  ;;  %3154 = vmax.xlane.f32.xlu1 %v13828_v27  ;;  %v3119_v10 = vpop.xlane.xlu1 %3118 }
 0x426   : > { %v11883_v58 = vcombine.low %v13827_v0, %v13826_v2  ;;  %v13829_v16 = vrot.slane %v11782_v62, %v11130_v35  ;;  %v6318_v54 = vcombine.low %v3957_v29, %v3961_v52  ;;  %v6319_v61 = vcombine.low %v3965_v17, %v3969_v32  ;;  %v13833_v62 = vld [vmem:[#allocation46_spill] sm:$0xff] }
 0x427   : > { %v11906_v42 = vcombine.low %v7092_v33, %v7099_v50  ;;  %v6320_v49 = vcombine.low %v3973_v31, %v3977_v14  ;;  %v3258_v18 = vmax.f32 %v11725_v63, %v3119_v10  ;;  %v4141_v50 = vrot.slane %v11632_v13, %v10958_v25 }
 0x428   : > { %v11902_v23 = vcombine.low %v13829_v16, %v5972_v7  ;;  %v6327_v7 = vrot.slane %v6317_v28, %v11130_v35  ;;  %v6334_v19 = vrot.slane %v6318_v54, %v11130_v35  ;;  %v6341_v53 = vrot.slane %v6319_v61, %v11130_v35  ;;  %v11935_v54 = vpop.xlane.xlu0 %2851 }
 0x429   : > { %v6348_v22 = vrot.slane %v6320_v49, %v11130_v35  ;;  %3160 = vmax.xlane.f32.xlu1 %v13830_v15  ;;  %v4877_v63 = vrot.slane %v3258_v18, %v10958_v25  ;;  %v4881_v60 = vrot.slane %v3258_v18, %v10961_v57  ;;  %v4885_v29 = vrot.slane %v3258_v18, %v13775_v41  ;;  %v3125_v17 = vpop.xlane.xlu1 %3124 }
 0x42a   : > { %v4889_v52 = vrot.slane %v3258_v18, %v13776_v6  ;;  %v4893_v2 = vrot.slane %v3258_v18, %v13777_v55  ;;  %v4897_v0 = vrot.slane %v3258_v18, %v13778_v30  ;;  %v4901_v32 = vrot.slane %v3258_v18, %v13779_v3  ;;  %13832 = vst [vmem:[#allocation31_spill] sm:$0xff] %v11935_v54  ;;  %v13837_v54 = vld [vmem:[#allocation5_spill] sm:$0xff] }
 0x42b   : > { %v4905_v31 = vrot.slane %v3258_v18, %v13780_v8  ;;  %v11933_v14 = vmax.f32 %v11739_v38, %v3125_v17  ;;  %v7738_v28 = vcombine.low %v4877_v63, %v4881_v60  ;;  %v6349_v16 = vcombine.low %v6327_v7, %v6334_v19 }
 0x42c   : > { %v7739_v27 = vcombine.low %v4885_v29, %v4889_v52  ;;  %v7740_v61 = vcombine.low %v4893_v2, %v4897_v0  ;;  %v6350_v49 = vcombine.low %v6341_v53, %v6348_v22  ;;  %v4145_v15 = vrot.slane %v11632_v13, %v10961_v57 }
 0x42d   : > { %13831 = vst [vmem:[#allocation17_spill] sm:$0xff] %v11933_v14  ;;  %v7741_v10 = vcombine.low %v4901_v32, %v4905_v31  ;;  %3190 = vmax.xlane.f32.xlu1 %v13833_v62  ;;  %v7748_v33 = vrot.slane %v7738_v28, %v11130_v35  ;;  %v4149_v38 = vrot.slane %v11632_v13, %v13775_v41  ;;  %v3131_v19 = vpop.xlane.xlu1 %3130  ;;  %v13834_v28 = vld [vmem:[#allocation10_spill] sm:$0xff] }
 0x42e   : > { %v7755_v18 = vrot.slane %v7739_v27, %v11130_v35  ;;  %v4153_v7 = vrot.slane %v11632_v13, %v13776_v6  ;;  %v7762_v63 = vrot.slane %v7740_v61, %v11130_v35  ;;  %v4157_v22 = vrot.slane %v11632_v13, %v13777_v55  ;;  %v11966_v61 = vpop.xlane.xlu0 %2857 }
 0x42f   : > { %v7769_v53 = vrot.slane %v7741_v10, %v11130_v35  ;;  %v4161_v62 = vrot.slane %v11632_v13, %v13778_v30  ;;  %v3260_v60 = vmax.f32 %v11761_v47, %v3131_v19  ;;  %v6357_v52 = vrot.slane %v6349_v16, %v11130_v35  ;;  %13835 = vst [vmem:[#allocation12_spill] sm:$0xff] %v11966_v61 }
 0x430   : > { %v7770_v29 = vcombine.low %v7748_v33, %v7755_v18  ;;  %v4165_v17 = vrot.slane %v11632_v13, %v13779_v3  ;;  %v6364_v0 = vrot.slane %v6350_v49, %v11130_v35  ;;  %v4169_v32 = vrot.slane %v11632_v13, %v13780_v8  ;;  %v13836_v18 = vld [vmem:[#allocation11_spill] sm:$0xff] }
 0x431   : > { %v7771_v2 = vcombine.low %v7762_v63, %v7769_v53  ;;  %v11959_v31 = vcombine.low %v4141_v50, %v4145_v15  ;;  %3196 = vmax.xlane.f32.xlu1 %v13834_v28  ;;  %v4941_v47 = vrot.slane %v3260_v60, %v10958_v25  ;;  %v4945_v33 = vrot.slane %v3260_v60, %v10961_v57  ;;  %v3137_v10 = vpop.xlane.xlu1 %3136 }
 0x432   : > { %v7778_v27 = vrot.slane %v7770_v29, %v11130_v35  ;;  %v4949_v16 = vrot.slane %v3260_v60, %v13775_v41  ;;  %8523 = vperm.xlu0 %9236, %v13836_v18   ;;  %v4953_v13 = vrot.slane %v3260_v60, %v13776_v6  ;;  %v4957_v50 = vrot.slane %v3260_v60, %v13777_v55 }
 0x433   : > { %v7785_v49 = vrot.slane %v7771_v2, %v11130_v35  ;;  %v4961_v15 = vrot.slane %v3260_v60, %v13778_v30  ;;  %v4965_v19 = vrot.slane %v3260_v60, %v13779_v3  ;;  %v4969_v63 = vrot.slane %v3260_v60, %v13780_v8  ;;  %v12013_v60 = vpop.xlane.xlu0 %2863 }
 0x434   : > { %v7836_v53 = vcombine.low %v4941_v47, %v4945_v33  ;;  %v6612_v29 = vcombine.low %v4149_v38, %v4153_v7  ;;  %v7837_v28 = vcombine.low %v4949_v16, %v4953_v13  ;;  %v6613_v43 = vcombine.low %v4157_v22, %v4161_v62 }
 0x435   : > { %v7838_v4 = vcombine.low %v4957_v50, %v4961_v15  ;;  %v6614_v61 = vcombine.low %v4165_v17, %v4169_v32  ;;  %v11977_v18 = vmax.f32 %v11674_v20, %v11840_v45  ;;  %v11981_v2 = vmax.f32 %v11695_v56, %v11863_v34  ;;  %3202 = vmax.xlane.f32.xlu1 %v13837_v54  ;;  %v3167_v20 = vpop.xlane.xlu1 %3166 }
 0x436   : > { %v13838_v14 = vrot.slane %v11867_v26, %v11130_v35  ;;  %v13839_v38 = vrot.slane %v11865_v12, %v11130_v35  ;;  %v7839_v22 = vcombine.low %v4965_v19, %v4969_v63  ;;  %v11993_v62 = vmax.f32 %v11791_v9, %v3137_v10  ;;  %8547 = vperm.xlu0 %9236, %v11560_v48  }
 0x437   : > { %v11996_v45 = vcombine.low %v7778_v27, %v7785_v49  ;;  %v13840_v56 = vrot.slane %v11889_v5, %v11130_v35  ;;  %v13841_v34 = vrot.slane %v11885_v36, %v11130_v35  ;;  %v12006_v12 = vcombine.low %v6357_v52, %v6364_v0  ;;  %v13842_v0 = vld [vmem:[#allocation15_spill] sm:$0xff] }
 0x438   : > { %v11990_v7 = vcombine.low %v13839_v38, %v13838_v14  ;;  %v3266_v14 = vmax.f32 %v11818_v37, %v3167_v20  ;;  %v7846_v9 = vrot.slane %v7836_v53, %v11130_v35  ;;  %v6621_v54 = vrot.slane %v11959_v31, %v11130_v35  ;;  %v12040_v38 = vpop.xlane.xlu0 %2869 }
 0x439   : > { %v12004_v26 = vcombine.low %v13841_v34, %v13840_v56  ;;  %v6628_v48 = vrot.slane %v6612_v29, %v11130_v35  ;;  %v7853_v5 = vrot.slane %v7837_v28, %v11130_v35  ;;  %v7860_v17 = vrot.slane %v7838_v4, %v11130_v35  ;;  %3208 = vmax.xlane.f32.xlu1 %v13842_v0 }
 0x43a   : > { %v6635_v36 = vrot.slane %v6613_v43, %v11130_v35  ;;  %v6642_v52 = vrot.slane %v6614_v61, %v11130_v35  ;;  %v7867_v37 = vrot.slane %v7839_v22, %v11130_v35  ;;  %v5133_v32 = vrot.slane %v3266_v14, %v10958_v25  ;;  %v3173_v47 = vpop.xlane.xlu1 %3172  ;;  %8553 = vperm.xlu0 %9236, %v11646_v40  }
 0x43b   : > { %v5137_v31 = vrot.slane %v3266_v14, %v10961_v57  ;;  %v5141_v27 = vrot.slane %v3266_v14, %v13775_v41  ;;  %v5145_v33 = vrot.slane %v3266_v14, %v13776_v6  ;;  %v5149_v4 = vrot.slane %v3266_v14, %v13777_v55 }
 0x43c   : > { %v5153_v43 = vrot.slane %v3266_v14, %v13778_v30  ;;  %v4685_v16 = vrot.slane %v11977_v18, %v10958_v25  ;;  %v5157_v61 = vrot.slane %v3266_v14, %v13779_v3  ;;  %v5161_v10 = vrot.slane %v3266_v14, %v13780_v8 }
 0x43d   : > { %v4689_v49 = vrot.slane %v11977_v18, %v10961_v57  ;;  %v4693_v13 = vrot.slane %v11977_v18, %v13775_v41  ;;  %v8130_v40 = vcombine.low %v5133_v32, %v5137_v31  ;;  %v8131_v50 = vcombine.low %v5141_v27, %v5145_v33 }
 0x43e   : > { %v8132_v15 = vcombine.low %v5149_v4, %v5153_v43  ;;  %v4697_v19 = vrot.slane %v11977_v18, %v13776_v6  ;;  %v7868_v63 = vcombine.low %v7846_v9, %v7853_v5  ;;  %v7869_v53 = vcombine.low %v7860_v17, %v7867_v37  ;;  %v3179_v22 = vpop.xlane.xlu1 %3178  ;;  %8571 = vperm.xlu0 %9236, %v11658_v51  }
 0x43f   : > { %v8133_v29 = vcombine.low %v5157_v61, %v5161_v10  ;;  %v4701_v28 = vrot.slane %v11977_v18, %v13777_v55  ;;  %v8140_v20 = vrot.slane %v8130_v40, %v11130_v35  ;;  %v8147_v56 = vrot.slane %v8131_v50, %v11130_v35  ;;  %v12068_v10 = vpop.xlane.xlu0 %2899 }
 0x440   : > { %v8154_v34 = vrot.slane %v8132_v15, %v11130_v35  ;;  %v4705_v14 = vrot.slane %v11977_v18, %v13778_v30  ;;  %v6643_v5 = vcombine.low %v6621_v54, %v6628_v48  ;;  %v6644_v17 = vcombine.low %v6635_v36, %v6642_v52 }
 0x441   : > { %v8161_v9 = vrot.slane %v8133_v29, %v11130_v35  ;;  %v4709_v0 = vrot.slane %v11977_v18, %v13779_v3  ;;  %v8162_v37 = vcombine.low %v8140_v20, %v8147_v56  ;;  %v4713_v51 = vrot.slane %v11977_v18, %v13780_v8 }
 0x442   : > { %v7444_v32 = vcombine.low %v4685_v16, %v4689_v49  ;;  %v7445_v31 = vcombine.low %v4693_v13, %v4697_v19  ;;  %v12054_v27 = vmax.f32 %v11838_v59, %v3173_v47  ;;  %v7876_v33 = vrot.slane %v7868_v63, %v11130_v35  ;;  %v3185_v61 = vpop.xlane.xlu1 %3184  ;;  %8577 = vperm.xlu0 %9236, %v11685_v11  }
 0x443   : > { %v7883_v4 = vrot.slane %v7869_v53, %v11130_v35  ;;  %v8163_v43 = vcombine.low %v8154_v34, %v8161_v9  ;;  %v7446_v54 = vcombine.low %v4701_v28, %v4705_v14  ;;  %v7447_v48 = vcombine.low %v4709_v0, %v4713_v51 }
 0x444   : > { %v4205_v36 = vrot.slane %v11710_v21, %v10958_v25  ;;  %v4209_v18 = vrot.slane %v11710_v21, %v10961_v57  ;;  %v8170_v52 = vrot.slane %v8162_v37, %v11130_v35  ;;  %v6651_v59 = vrot.slane %v6643_v5, %v11130_v35 }
 0x445   : > { %v6658_v47 = vrot.slane %v6644_v17, %v11130_v35  ;;  %v4213_v16 = vrot.slane %v11710_v21, %v13775_v41  ;;  %v7454_v11 = vrot.slane %v7444_v32, %v11130_v35  ;;  %v7461_v49 = vrot.slane %v7445_v31, %v11130_v35  ;;  %v12108_v32 = vpop.xlane.xlu0 %2905  ;;  %v13843_v31 = vld [vmem:[#allocation25_spill] sm:$0xff] }
 0x446   : > { %v4217_v13 = vrot.slane %v11710_v21, %v13776_v6  ;;  %v4221_v40 = vrot.slane %v11710_v21, %v13777_v55  ;;  %v8177_v50 = vrot.slane %v8163_v43, %v11130_v35  ;;  %v4225_v15 = vrot.slane %v11710_v21, %v13778_v30  ;;  %v12083_v53 = vpop.xlane.xlu1 %2854  ;;  %8595 = vperm.xlu0 %9236, %v11778_v44  }
 0x447   : > { %v4229_v19 = vrot.slane %v11710_v21, %v13779_v3  ;;  %v4233_v63 = vrot.slane %v11710_v21, %v13780_v8  ;;  %v12086_v29 = vcombine.low %v7876_v33, %v7883_v4  ;;  %v7468_v28 = vrot.slane %v7446_v54, %v11130_v35  ;;  %v13844_v33 = vld [vmem:[#allocation16_spill] sm:$0xff] }
 0x448   : > { %v7475_v20 = vrot.slane %v7447_v48, %v11130_v35  ;;  %v6709_v56 = vcombine.low %v4205_v36, %v4209_v18  ;;  %v12091_v34 = vmax.f32 %v11855_v24, %v3179_v22  ;;  %v12093_v14 = vcombine.low %v6651_v59, %v6658_v47 }
 0x449   : > { %v6710_v9 = vcombine.low %v4213_v16, %v4217_v13  ;;  %v6711_v5 = vcombine.low %v4221_v40, %v4225_v15  ;;  %v12096_v21 = vmax.f32 %v11904_v39, %v3185_v61  ;;  %v6712_v17 = vcombine.low %v4229_v19, %v4233_v63  ;;  %v13845_v13 = vld [vmem:[#allocation33_spill] sm:$0xff]  ;;  %v13846_v19 = vld [vmem:[#allocation24_spill] sm:$0xff] }
 0x44a   : > { %v4717_v44 = vrot.slane %v11981_v2, %v10958_v25  ;;  %v4721_v0 = vrot.slane %v11981_v2, %v10961_v57  ;;  %v12102_v37 = vcombine.low %v8170_v52, %v8177_v50  ;;  %v7476_v51 = vcombine.low %v7454_v11, %v7461_v49  ;;  %v12110_v39 = vpop.xlane.xlu1 %2860  ;;  %8526 = vperm.xlu1 %9237, %v13843_v31  }
 0x44b   : > { %v4725_v24 = vrot.slane %v11981_v2, %v13775_v41  ;;  %v4729_v22 = vrot.slane %v11981_v2, %v13776_v6  ;;  %8601 = vperm.xlu0 %9236, %v13844_v33   ;;  %v7477_v4 = vcombine.low %v7468_v28, %v7475_v20  ;;  %v6719_v43 = vrot.slane %v6709_v56, %v11130_v35 }
 0x44c   : > { %v4733_v61 = vrot.slane %v11981_v2, %v13777_v55  ;;  %v6726_v54 = vrot.slane %v6710_v9, %v11130_v35  ;;  %v6733_v48 = vrot.slane %v6711_v5, %v11130_v35  ;;  %v4737_v36 = vrot.slane %v11981_v2, %v13778_v30 }
 0x44d   : > { %v4741_v18 = vrot.slane %v11981_v2, %v13779_v3  ;;  %v6740_v52 = vrot.slane %v6712_v17, %v11130_v35  ;;  %v4745_v59 = vrot.slane %v11981_v2, %v13780_v8  ;;  %v7493_v47 = vcombine.low %v4717_v44, %v4721_v0  ;;  %v12143_v17 = vpop.xlane.xlu0 %2911 }
 0x44e   : > { %v7494_v16 = vcombine.low %v4725_v24, %v4729_v22  ;;  %v7484_v11 = vrot.slane %v7476_v51, %v11130_v35  ;;  %v7495_v49 = vcombine.low %v4733_v61, %v4737_v36  ;;  %v4397_v40 = vrot.slane %v13845_v13, %v10958_v25  ;;  %v12131_v15 = vpop.xlane.xlu1 %2866  ;;  %8529 = vperm.xlu1 %9237, %v13846_v19  }
 0x44f   : > { %v4401_v50 = vrot.slane %v13845_v13, %v10961_v57  ;;  %8619 = vperm.xlu0 %9236, %v11883_v58   ;;  %v7496_v63 = vcombine.low %v4741_v18, %v4745_v59  ;;  %v7503_v2 = vrot.slane %v7493_v47, %v11130_v35  ;;  %v7491_v20 = vrot.slane %v7477_v4, %v11130_v35 }
 0x450   : > { %v7510_v28 = vrot.slane %v7494_v16, %v11130_v35  ;;  %v12138_v56 = vcombine.low %v6719_v43, %v6726_v54  ;;  %v7517_v9 = vrot.slane %v7495_v49, %v11130_v35  ;;  %v4405_v5 = vrot.slane %v13845_v13, %v13775_v41  ;;  %v13847_v43 = vld [vmem:[#allocation13_spill] sm:$0xff] }
 0x451   : > { %v12145_v44 = vcombine.low %v6733_v48, %v6740_v52  ;;  %v7524_v58 = vrot.slane %v7496_v63, %v11130_v35  ;;  %v4409_v0 = vrot.slane %v13845_v13, %v13776_v6  ;;  %v4413_v51 = vrot.slane %v13845_v13, %v13777_v55  ;;  %v12182_v19 = vpop.xlane.xlu0 %2917 }
 0x452   : > { %v4417_v24 = vrot.slane %v13845_v13, %v13778_v30  ;;  %v4421_v22 = vrot.slane %v13845_v13, %v13779_v3  ;;  %v4425_v31 = vrot.slane %v13845_v13, %v13780_v8  ;;  %v7003_v33 = vcombine.low %v4397_v40, %v4401_v50  ;;  %v12158_v4 = vpop.xlane.xlu1 %2872  ;;  %8532 = vperm.xlu1 %9237, %v13847_v43  }
 0x453   : > { %8625 = vperm.xlu0 %9236, %v11906_v42   ;;  %v12162_v61 = vcombine.low %v7503_v2, %v7510_v28  ;;  %v12164_v54 = vcombine.low %v7517_v9, %v7524_v58  ;;  %v7004_v48 = vcombine.low %v4405_v5, %v4409_v0  ;;  %v12166_v36 = vcombine.low %v7484_v11, %v7491_v20  ;;  %v13848_v2 = vld [vmem:[#allocation19_spill] sm:$0xff] }
 0x454   : > { %v7005_v18 = vcombine.low %v4413_v51, %v4417_v24  ;;  %v7006_v52 = vcombine.low %v4421_v22, %v4425_v31  ;;  %v7013_v59 = vrot.slane %v7003_v33, %v11130_v35  ;;  %v6749_v47 = vrot.slane %v12138_v56, %v11130_v35 }
 0x455   : > { %v7020_v16 = vrot.slane %v7004_v48, %v11130_v35  ;;  %v4461_v49 = vrot.slane %v11875_v1, %v10958_v25  ;;  %v4465_v42 = vrot.slane %v11875_v1, %v10961_v57  ;;  %v4469_v40 = vrot.slane %v11875_v1, %v13775_v41 }
 0x456   : > { %v7027_v13 = vrot.slane %v7005_v18, %v11130_v35  ;;  %v7034_v11 = vrot.slane %v7006_v52, %v11130_v35  ;;  %v4473_v50 = vrot.slane %v11875_v1, %v13776_v6  ;;  %v2903_v63 = vpop.xlane.xlu1 %2902  ;;  %8550 = vperm.xlu1 %9237, %v13848_v2   ;;  %v6756_v28 = vrot.slane %v12145_v44, %v11130_v35 }
 0x457   : > { %8643 = vperm.xlu0 %9236, %v11990_v7   ;;  %v7533_v20 = vrot.slane %v12162_v61, %v11130_v35  ;;  %v7540_v56 = vrot.slane %v12164_v54, %v11130_v35  ;;  %v3222_v9 = vmax.f32 %v12068_v10, %v2903_v63  ;;  %v7035_v5 = vcombine.low %v7013_v59, %v7020_v16  ;;  %v2948_v16 = vpop.xlane.xlu0 %2947 }
 0x458   : > { %v7036_v58 = vcombine.low %v7027_v13, %v7034_v11  ;;  %v4477_v0 = vrot.slane %v11875_v1, %v13777_v55  ;;  %v4481_v51 = vrot.slane %v11875_v1, %v13778_v30  ;;  %v4485_v7 = vrot.slane %v11875_v1, %v13779_v3 }
 0x459   : > { %v4489_v44 = vrot.slane %v11875_v1, %v13780_v8  ;;  %v7101_v24 = vcombine.low %v4461_v49, %v4465_v42  ;;  %v3725_v22 = vrot.slane %v3222_v9, %v10958_v25  ;;  %v3729_v31 = vrot.slane %v3222_v9, %v10961_v57 }
 0x45a   : > { %v3733_v10 = vrot.slane %v3222_v9, %v13775_v41  ;;  %v7102_v33 = vcombine.low %v4469_v40, %v4473_v50  ;;  %v12204_v43 = vpop.xlane.xlu1 %2908  ;;  %8556 = vperm.xlu1 %9237, %v11902_v23   ;;  %v3737_v61 = vrot.slane %v3222_v9, %v13776_v6  ;;  %v3741_v54 = vrot.slane %v3222_v9, %v13777_v55 }
 0x45b   : > { %8667 = vperm.xlu0 %9236, %v11996_v45   ;;  %v3745_v1 = vrot.slane %v3222_v9, %v13778_v30  ;;  %v7043_v48 = vrot.slane %v7035_v5, %v11130_v35  ;;  %v7050_v18 = vrot.slane %v7036_v58, %v11130_v35  ;;  %v3749_v52 = vrot.slane %v3222_v9, %v13779_v3 }
 0x45c   : > { %v3753_v59 = vrot.slane %v3222_v9, %v13780_v8  ;;  %v5974_v49 = vcombine.low %v3725_v22, %v3729_v31  ;;  %v5975_v42 = vcombine.low %v3733_v10, %v3737_v61  ;;  %v7103_v13 = vcombine.low %v4477_v0, %v4481_v51  ;;  %v12232_v61 = vpop.xlane.xlu0 %2953 }
 0x45d   : > { %v5976_v23 = vcombine.low %v3741_v54, %v3745_v1  ;;  %v7104_v11 = vcombine.low %v4485_v7, %v4489_v44  ;;  %v7111_v40 = vrot.slane %v7101_v24, %v11130_v35  ;;  %v7118_v50 = vrot.slane %v7102_v33, %v11130_v35 }
 0x45e   : > { %v5977_v45 = vcombine.low %v3749_v52, %v3753_v59  ;;  %v2915_v63 = vpop.xlane.xlu1 %2914  ;;  %8574 = vperm.xlu1 %9237, %v12004_v26   ;;  %v5984_v2 = vrot.slane %v5974_v49, %v11130_v35  ;;  %v5991_v9 = vrot.slane %v5975_v42, %v11130_v35  ;;  %v7125_v51 = vrot.slane %v7103_v13, %v11130_v35 }
 0x45f   : > { %8673 = vperm.xlu0 %9236, %v12086_v29   ;;  %v5998_v5 = vrot.slane %v5976_v23, %v11130_v35  ;;  %v3224_v58 = vmax.f32 %v12143_v17, %v2915_v63  ;;  %v7132_v7 = vrot.slane %v7104_v11, %v11130_v35  ;;  %v6757_v44 = vcombine.low %v6749_v47, %v6756_v28 }
 0x460   : > { %v6005_v0 = vrot.slane %v5977_v45, %v11130_v35  ;;  %v7541_v24 = vcombine.low %v7533_v20, %v7540_v56  ;;  %v6006_v22 = vcombine.low %v5984_v2, %v5991_v9  ;;  %v12226_v26 = vcombine.low %v7111_v40, %v7118_v50 }
 0x461   : > { %v12228_v31 = vcombine.low %v7125_v51, %v7132_v7  ;;  %v3789_v10 = vrot.slane %v3224_v58, %v10958_v25  ;;  %v3793_v33 = vrot.slane %v3224_v58, %v10961_v57  ;;  %v7051_v47 = vcombine.low %v7043_v48, %v7050_v18 }
 0x462   : > { %v6007_v29 = vcombine.low %v5998_v5, %v6005_v0  ;;  %v12234_v17 = vpop.xlane.xlu1 %2920  ;;  %8580 = vperm.xlu1 %9237, %v12006_v12   ;;  %v3797_v28 = vrot.slane %v3224_v58, %v13775_v41  ;;  %v4653_v20 = vrot.slane %v11896_v46, %v10958_v25  ;;  %v6014_v56 = vrot.slane %v6006_v22, %v11130_v35  ;;  %v2960_v5 = vpop.xlane.xlu0 %2959 }
 0x463   : > { %8691 = vperm.xlu0 %9236, %v12102_v37   ;;  %v7141_v54 = vrot.slane %v12226_v26, %v11130_v35  ;;  %v3801_v1 = vrot.slane %v3224_v58, %v13776_v6  ;;  %v4657_v52 = vrot.slane %v11896_v46, %v10961_v57  ;;  %v3805_v12 = vrot.slane %v3224_v58, %v13777_v55 }
 0x464   : > { %v3809_v37 = vrot.slane %v3224_v58, %v13778_v30  ;;  %v3813_v48 = vrot.slane %v3224_v58, %v13779_v3  ;;  %v3817_v18 = vrot.slane %v3224_v58, %v13780_v8  ;;  %v6021_v59 = vrot.slane %v6007_v29, %v11130_v35 }
 0x465   : > { %v7148_v49 = vrot.slane %v12228_v31, %v11130_v35  ;;  %v6072_v42 = vcombine.low %v3789_v10, %v3793_v33  ;;  %v6073_v23 = vcombine.low %v3797_v28, %v3801_v1  ;;  %v4661_v40 = vrot.slane %v11896_v46, %v13775_v41 }
 0x466   : > { %v2951_v13 = vpop.xlane.xlu1 %2950  ;;  %8598 = vperm.xlu1 %9237, %v12093_v14   ;;  %v6074_v45 = vcombine.low %v3805_v12, %v3809_v37  ;;  %v6075_v11 = vcombine.low %v3813_v48, %v3817_v18  ;;  %v4665_v9 = vrot.slane %v11896_v46, %v13776_v6  ;;  %v4673_v0 = vrot.slane %v11896_v46, %v13778_v30  ;;  %v12284_v18 = vpop.xlane.xlu0 %2965 }
 0x467   : > { %8649 = vperm.xlu0 %9236, %v12166_v36   ;;  %v3230_v50 = vmax.f32 %v2948_v16, %v2951_v13  ;;  %v6082_v63 = vrot.slane %v6072_v42, %v11130_v35  ;;  %v6089_v2 = vrot.slane %v6073_v23, %v11130_v35  ;;  %v4669_v36 = vrot.slane %v11896_v46, %v13777_v55 }
 0x468   : > { %v6096_v58 = vrot.slane %v6074_v45, %v11130_v35  ;;  %v6103_v14 = vrot.slane %v6075_v11, %v11130_v35  ;;  %v4677_v16 = vrot.slane %v11896_v46, %v13779_v3  ;;  %v4681_v7 = vrot.slane %v11896_v46, %v13780_v8 }
 0x469   : > { %v6104_v51 = vcombine.low %v6082_v63, %v6089_v2  ;;  %v7395_v22 = vcombine.low %v4653_v20, %v4657_v52  ;;  %v7396_v31 = vcombine.low %v4661_v40, %v4665_v9  ;;  %v7397_v10 = vcombine.low %v4669_v36, %v4673_v0 }
 0x46a   : > { %v12272_v26 = vpop.xlane.xlu1 %2956  ;;  %8604 = vperm.xlu1 %9237, %v6757_v44   ;;  %v6105_v29 = vcombine.low %v6096_v58, %v6103_v14  ;;  %v6022_v33 = vcombine.low %v6014_v56, %v6021_v59  ;;  %v7398_v1 = vcombine.low %v4677_v16, %v4681_v7  ;;  %v3981_v20 = vrot.slane %v3230_v50, %v10958_v25 }
 0x46b   : > { %8652 = vperm.xlu0 %9236, %v7541_v24   ;;  %v6112_v28 = vrot.slane %v6104_v51, %v11130_v35  ;;  %v7405_v12 = vrot.slane %v7395_v22, %v11130_v35  ;;  %v7412_v48 = vrot.slane %v7396_v31, %v11130_v35  ;;  %v7419_v46 = vrot.slane %v7397_v10, %v11130_v35 }
 0x46c   : > { %v6119_v37 = vrot.slane %v6105_v29, %v11130_v35  ;;  %v7426_v44 = vrot.slane %v7398_v1, %v11130_v35  ;;  %v3985_v24 = vrot.slane %v3230_v50, %v10961_v57  ;;  %v3989_v52 = vrot.slane %v3230_v50, %v13775_v41 }
 0x46d   : > { %v3993_v56 = vrot.slane %v3230_v50, %v13776_v6  ;;  %v7149_v42 = vcombine.low %v7141_v54, %v7148_v49  ;;  %v7427_v23 = vcombine.low %v7405_v12, %v7412_v48  ;;  %v3997_v13 = vrot.slane %v3230_v50, %v13777_v55  ;;  %v13849_v54 = vld [vmem:[#allocation17_spill] sm:$0xff] }
 0x46e   : > { %v2963_v59 = vpop.xlane.xlu1 %2962  ;;  %8622 = vperm.xlu1 %9237, %v7051_v47   ;;  %v6120_v45 = vcombine.low %v6112_v28, %v6119_v37  ;;  %v7428_v11 = vcombine.low %v7419_v46, %v7426_v44  ;;  %v4001_v40 = vrot.slane %v3230_v50, %v13778_v30  ;;  %v4005_v63 = vrot.slane %v3230_v50, %v13779_v3  ;;  %v13850_v44 = vld [vmem:[#allocation31_spill] sm:$0xff] }
 0x46f   : > { %8559 = vperm.xlu0 %9236, %v6022_v33   ;;  %v7435_v2 = vrot.slane %v7427_v23, %v11130_v35  ;;  %v4009_v9 = vrot.slane %v3230_v50, %v13780_v8  ;;  %v6366_v58 = vcombine.low %v3981_v20, %v3985_v24  ;;  %v6367_v14 = vcombine.low %v3989_v52, %v3993_v56  ;;  %v12303_v33 = vpop.xlane.xlu0 %2995 }
 0x470   : > { %v7442_v36 = vrot.slane %v7428_v11, %v11130_v35  ;;  %v6368_v47 = vcombine.low %v3997_v13, %v4001_v40  ;;  %v4909_v49 = vrot.slane %v13849_v54, %v10958_v25  ;;  %v4913_v0 = vrot.slane %v13849_v54, %v10961_v57 }
 0x471   : > { %v6369_v16 = vcombine.low %v4005_v63, %v4009_v9  ;;  %v6376_v7 = vrot.slane %v6366_v58, %v11130_v35  ;;  %v6383_v50 = vrot.slane %v6367_v14, %v11130_v35  ;;  %v3232_v22 = vmax.f32 %v2960_v5, %v2963_v59 }
 0x472   : > { %v12296_v51 = vpop.xlane.xlu1 %2968  ;;  %8628 = vperm.xlu1 %9237, %v7149_v42   ;;  %v7443_v29 = vcombine.low %v7435_v2, %v7442_v36  ;;  %v6390_v31 = vrot.slane %v6368_v47, %v11130_v35  ;;  %v4917_v10 = vrot.slane %v13849_v54, %v13775_v41  ;;  %v4921_v12 = vrot.slane %v13849_v54, %v13776_v6 }
 0x473   : > { %8565 = vperm.xlu0 %9236, %v6120_v45   ;;  %v6397_v28 = vrot.slane %v6369_v16, %v11130_v35  ;;  %v6398_v1 = vcombine.low %v6376_v7, %v6383_v50  ;;  %v4925_v37 = vrot.slane %v13849_v54, %v13777_v55  ;;  %v4929_v5 = vrot.slane %v13849_v54, %v13778_v30  ;;  %v12331_v47 = vpop.xlane.xlu0 %3001  ;;  %v13851_v50 = vld [vmem:[#allocation12_spill] sm:$0xff] }
 0x474   : > { %v4933_v48 = vrot.slane %v13849_v54, %v13779_v3  ;;  %v4937_v46 = vrot.slane %v13849_v54, %v13780_v8  ;;  %v7787_v20 = vcombine.low %v4909_v49, %v4913_v0  ;;  %v12318_v24 = vmax.f32 %v13850_v44, %v12083_v53 }
 0x475   : > { %v6399_v56 = vcombine.low %v6390_v31, %v6397_v28  ;;  %v6406_v59 = vrot.slane %v6398_v1, %v11130_v35  ;;  %v7788_v42 = vcombine.low %v4917_v10, %v4921_v12  ;;  %v7789_v23 = vcombine.low %v4925_v37, %v4929_v5 }
 0x476   : > { %v2999_v52 = vpop.xlane.xlu1 %2998  ;;  %8646 = vperm.xlu1 %9237, %v7443_v29   ;;  %v7790_v13 = vcombine.low %v4933_v48, %v4937_v46  ;;  %v7797_v45 = vrot.slane %v7787_v20, %v11130_v35  ;;  %v4045_v11 = vrot.slane %v3232_v22, %v10958_v25  ;;  %v4049_v2 = vrot.slane %v3232_v22, %v10961_v57 }
 0x477   : > { %v6413_v40 = vrot.slane %v6399_v56, %v11130_v35  ;;  %v7804_v63 = vrot.slane %v7788_v42, %v11130_v35  ;;  %v4053_v53 = vrot.slane %v3232_v22, %v13775_v41  ;;  %v7811_v9 = vrot.slane %v7789_v23, %v11130_v35 }
 0x478   : > { %v7818_v58 = vrot.slane %v7790_v13, %v11130_v35  ;;  %v4057_v14 = vrot.slane %v3232_v22, %v13776_v6  ;;  %v4061_v36 = vrot.slane %v3232_v22, %v13777_v55  ;;  %v4065_v16 = vrot.slane %v3232_v22, %v13778_v30 }
 0x479   : > { %v6414_v54 = vcombine.low %v6406_v59, %v6413_v40  ;;  %v7819_v0 = vcombine.low %v7797_v45, %v7804_v63  ;;  %v4069_v7 = vrot.slane %v3232_v22, %v13779_v3  ;;  %v12339_v29 = vmax.f32 %v13851_v50, %v12110_v39  ;;  %v12364_v40 = vpop.xlane.xlu0 %3007 }
 0x47a   : > { %v12333_v49 = vpop.xlane.xlu1 %3004  ;;  %v7820_v31 = vcombine.low %v7811_v9, %v7818_v58  ;;  %v4073_v10 = vrot.slane %v3232_v22, %v13780_v8  ;;  %v6464_v28 = vcombine.low %v4045_v11, %v4049_v2  ;;  %v6465_v12 = vcombine.low %v4053_v53, %v4057_v14 }
 0x47b   : > { %8583 = vperm.xlu0 %9236, %v6414_v54   ;;  %v7827_v1 = vrot.slane %v7819_v0, %v11130_v35  ;;  %v6466_v37 = vcombine.low %v4061_v36, %v4065_v16  ;;  %v4973_v5 = vrot.slane %v11993_v62, %v10958_v25  ;;  %v4977_v39 = vrot.slane %v11993_v62, %v10961_v57 }
 0x47c   : > { %v7834_v48 = vrot.slane %v7820_v31, %v11130_v35  ;;  %v6467_v46 = vcombine.low %v4069_v7, %v4073_v10  ;;  %v6474_v20 = vrot.slane %v6464_v28, %v11130_v35  ;;  %v6481_v44 = vrot.slane %v6465_v12, %v11130_v35 }
 0x47d   : > { %v6488_v22 = vrot.slane %v6466_v37, %v11130_v35  ;;  %v4981_v59 = vrot.slane %v11993_v62, %v13775_v41  ;;  %v4985_v42 = vrot.slane %v11993_v62, %v13776_v6  ;;  %v12359_v23 = vmax.f32 %v12013_v60, %v12131_v15 }
 0x47e   : > { %v12351_v56 = vpop.xlane.xlu1 %3010  ;;  %v7835_v13 = vcombine.low %v7827_v1, %v7834_v48  ;;  %v6495_v45 = vrot.slane %v6467_v46, %v11130_v35  ;;  %v4989_v11 = vrot.slane %v11993_v62, %v13777_v55  ;;  %v6496_v63 = vcombine.low %v6474_v20, %v6481_v44  ;;  %v12393_v46 = vpop.xlane.xlu0 %3013 }
 0x47f   : > { %v4993_v2 = vrot.slane %v11993_v62, %v13778_v30  ;;  %v4997_v53 = vrot.slane %v11993_v62, %v13779_v3  ;;  %v5001_v9 = vrot.slane %v11993_v62, %v13780_v8  ;;  %v7885_v15 = vcombine.low %v4973_v5, %v4977_v39 }
 0x480   : > { %8670 = vperm.xlu1 %9237, %v7835_v13   ;;  %v6497_v60 = vcombine.low %v6488_v22, %v6495_v45  ;;  %v7886_v58 = vcombine.low %v4981_v59, %v4985_v42  ;;  %v5165_v14 = vrot.slane %v12054_v27, %v10958_v25  ;;  %v6504_v36 = vrot.slane %v6496_v63, %v11130_v35 }
 0x481   : > { %v7887_v54 = vcombine.low %v4989_v11, %v4993_v2  ;;  %v7888_v0 = vcombine.low %v4997_v53, %v5001_v9  ;;  %v5169_v7 = vrot.slane %v12054_v27, %v10961_v57  ;;  %v3238_v50 = vmax.f32 %v12303_v33, %v2999_v52 }
 0x482   : > { %v12375_v16 = vpop.xlane.xlu1 %3016  ;;  %v6511_v62 = vrot.slane %v6497_v60, %v11130_v35  ;;  %v7895_v31 = vrot.slane %v7885_v15, %v11130_v35  ;;  %v7902_v10 = vrot.slane %v7886_v58, %v11130_v35  ;;  %v5173_v12 = vrot.slane %v12054_v27, %v13775_v41 }
 0x483   : > { %v7909_v28 = vrot.slane %v7887_v54, %v11130_v35  ;;  %v7916_v1 = vrot.slane %v7888_v0, %v11130_v35  ;;  %v5177_v37 = vrot.slane %v12054_v27, %v13776_v6  ;;  %v5181_v33 = vrot.slane %v12054_v27, %v13777_v55 }
 0x484   : > { %v6512_v5 = vcombine.low %v6504_v36, %v6511_v62  ;;  %v7917_v48 = vcombine.low %v7895_v31, %v7902_v10  ;;  %v5185_v52 = vrot.slane %v12054_v27, %v13778_v30  ;;  %v5189_v39 = vrot.slane %v12054_v27, %v13779_v3 }
 0x485   : > { %v7918_v20 = vcombine.low %v7909_v28, %v7916_v1  ;;  %v5193_v44 = vrot.slane %v12054_v27, %v13780_v8  ;;  %v8179_v22 = vcombine.low %v5165_v14, %v5169_v7  ;;  %v8180_v13 = vcombine.low %v5173_v12, %v5177_v37  ;;  %v12421_v12 = vpop.xlane.xlu0 %3043 }
 0x486   : > { %v12399_v59 = vpop.xlane.xlu1 %3046  ;;  %8589 = vperm.xlu0 %9236, %v6512_v5   ;;  %v7925_v42 = vrot.slane %v7917_v48, %v11130_v35  ;;  %v8181_v45 = vcombine.low %v5181_v33, %v5185_v52  ;;  %v4237_v11 = vrot.slane %v3238_v50, %v10958_v25  ;;  %v4241_v9 = vrot.slane %v3238_v50, %v10961_v57 }
 0x487   : > { %v7932_v63 = vrot.slane %v7918_v20, %v11130_v35  ;;  %v8182_v2 = vcombine.low %v5189_v39, %v5193_v44  ;;  %v8189_v53 = vrot.slane %v8179_v22, %v11130_v35  ;;  %v8196_v60 = vrot.slane %v8180_v13, %v11130_v35 }
 0x488   : > { %v8203_v27 = vrot.slane %v8181_v45, %v11130_v35  ;;  %v4245_v15 = vrot.slane %v3238_v50, %v13775_v41  ;;  %v4249_v58 = vrot.slane %v3238_v50, %v13776_v6  ;;  %v4253_v54 = vrot.slane %v3238_v50, %v13777_v55 }
 0x489   : > { %v7933_v14 = vcombine.low %v7925_v42, %v7932_v63  ;;  %v8210_v36 = vrot.slane %v8182_v2, %v11130_v35  ;;  %v4257_v0 = vrot.slane %v3238_v50, %v13778_v30  ;;  %v8211_v62 = vcombine.low %v8189_v53, %v8196_v60 }
 0x48a   : > { %v12413_v7 = vpop.xlane.xlu1 %3052  ;;  %v4261_v31 = vrot.slane %v3238_v50, %v13779_v3  ;;  %v4265_v10 = vrot.slane %v3238_v50, %v13780_v8  ;;  %v6758_v28 = vcombine.low %v4237_v11, %v4241_v9  ;;  %v12419_v1 = vmax.f32 %v12040_v38, %v12158_v4 }
 0x48b   : > { %8676 = vperm.xlu1 %9237, %v7933_v14   ;;  %v8212_v37 = vcombine.low %v8203_v27, %v8210_v36  ;;  %v6759_v5 = vcombine.low %v4245_v15, %v4249_v58  ;;  %v6760_v48 = vcombine.low %v4253_v54, %v4257_v0  ;;  %v8219_v33 = vrot.slane %v8211_v62, %v11130_v35  ;;  %v12447_v14 = vpop.xlane.xlu0 %3049 }
 0x48c   : > { %v6761_v52 = vcombine.low %v4261_v31, %v4265_v10  ;;  %v6768_v20 = vrot.slane %v6758_v28, %v11130_v35  ;;  %v5197_v39 = vrot.slane %v12091_v34, %v10958_v25  ;;  %v5201_v4 = vrot.slane %v12091_v34, %v10961_v57 }
 0x48d   : > { %v8226_v50 = vrot.slane %v8212_v37, %v11130_v35  ;;  %v6775_v44 = vrot.slane %v6759_v5, %v11130_v35  ;;  %v6782_v38 = vrot.slane %v6760_v48, %v11130_v35  ;;  %v5205_v13 = vrot.slane %v12091_v34, %v13775_v41 }
 0x48e   : > { %v12432_v22 = vpop.xlane.xlu1 %3058  ;;  %v6789_v42 = vrot.slane %v6761_v52, %v11130_v35  ;;  %v5209_v45 = vrot.slane %v12091_v34, %v13776_v6  ;;  %v5213_v11 = vrot.slane %v12091_v34, %v13777_v55  ;;  %v5217_v53 = vrot.slane %v12091_v34, %v13778_v30 }
 0x48f   : > { %v8227_v63 = vcombine.low %v8219_v33, %v8226_v50  ;;  %v6790_v2 = vcombine.low %v6768_v20, %v6775_v44  ;;  %v5221_v9 = vrot.slane %v12091_v34, %v13779_v3  ;;  %v5225_v27 = vrot.slane %v12091_v34, %v13780_v8 }
 0x490   : > { %v6791_v60 = vcombine.low %v6782_v38, %v6789_v42  ;;  %v8228_v15 = vcombine.low %v5197_v39, %v5201_v4  ;;  %v8229_v58 = vcombine.low %v5205_v13, %v5209_v45  ;;  %v3240_v36 = vmax.f32 %v12364_v40, %v12351_v56 }
 0x491   : > { %8694 = vperm.xlu1 %9237, %v8227_v63   ;;  %v6798_v54 = vrot.slane %v6790_v2, %v11130_v35  ;;  %v8230_v0 = vcombine.low %v5213_v11, %v5217_v53  ;;  %v5229_v62 = vrot.slane %v12096_v21, %v10958_v25  ;;  %v8231_v28 = vcombine.low %v5221_v9, %v5225_v27  ;;  %v12479_v2 = vpop.xlane.xlu0 %3055 }
 0x492   : > { %v12454_v31 = vpop.xlane.xlu1 %3064  ;;  %v6805_v10 = vrot.slane %v6791_v60, %v11130_v35  ;;  %v8238_v34 = vrot.slane %v8228_v15, %v11130_v35  ;;  %v8245_v37 = vrot.slane %v8229_v58, %v11130_v35  ;;  %v5233_v56 = vrot.slane %v12096_v21, %v10961_v57 }
 0x493   : > { %v8252_v5 = vrot.slane %v8230_v0, %v11130_v35  ;;  %v5237_v40 = vrot.slane %v12096_v21, %v13775_v41  ;;  %v5241_v48 = vrot.slane %v12096_v21, %v13776_v6  ;;  %v8259_v52 = vrot.slane %v8231_v28, %v11130_v35 }
 0x494   : > { %v6806_v33 = vcombine.low %v6798_v54, %v6805_v10  ;;  %v8260_v20 = vcombine.low %v8238_v34, %v8245_v37  ;;  %v5245_v39 = vrot.slane %v12096_v21, %v13777_v55  ;;  %v5249_v50 = vrot.slane %v12096_v21, %v13778_v30 }
 0x495   : > { %v5253_v44 = vrot.slane %v12096_v21, %v13779_v3  ;;  %v5257_v38 = vrot.slane %v12096_v21, %v13780_v8  ;;  %v8277_v4 = vcombine.low %v5229_v62, %v5233_v56  ;;  %v8261_v13 = vcombine.low %v8252_v5, %v8259_v52 }
 0x496   : > { %v12475_v42 = vpop.xlane.xlu1 %3094  ;;  %8607 = vperm.xlu0 %9236, %v6806_v33   ;;  %v8268_v45 = vrot.slane %v8260_v20, %v11130_v35  ;;  %v8278_v11 = vcombine.low %v5237_v40, %v5241_v48  ;;  %v4301_v63 = vrot.slane %v3240_v36, %v10958_v25  ;;  %v8279_v53 = vcombine.low %v5245_v39, %v5249_v50 }
 0x497   : > { %v8280_v9 = vcombine.low %v5253_v44, %v5257_v38  ;;  %v8287_v60 = vrot.slane %v8277_v4, %v11130_v35  ;;  %v4305_v27 = vrot.slane %v3240_v36, %v10961_v57  ;;  %v8275_v21 = vrot.slane %v8261_v13, %v11130_v35  ;;  %v12502_v4 = vpop.xlane.xlu0 %3061 }
 0x498   : > { %v8294_v15 = vrot.slane %v8278_v11, %v11130_v35  ;;  %v4309_v58 = vrot.slane %v3240_v36, %v13775_v41  ;;  %v4313_v54 = vrot.slane %v3240_v36, %v13776_v6  ;;  %v8301_v0 = vrot.slane %v8279_v53, %v11130_v35 }
 0x499   : > { %v8308_v62 = vrot.slane %v8280_v9, %v11130_v35  ;;  %v4317_v10 = vrot.slane %v3240_v36, %v13777_v55  ;;  %v4321_v28 = vrot.slane %v3240_v36, %v13778_v30  ;;  %v8276_v37 = vcombine.low %v8268_v45, %v8275_v21 }
 0x49a   : > { %v12491_v34 = vpop.xlane.xlu1 %3100  ;;  %v8309_v5 = vcombine.low %v8287_v60, %v8294_v15  ;;  %v4325_v56 = vrot.slane %v3240_v36, %v13779_v3  ;;  %v4329_v40 = vrot.slane %v3240_v36, %v13780_v8  ;;  %v6856_v33 = vcombine.low %v4301_v63, %v4305_v27 }
 0x49b   : > { %v8310_v48 = vcombine.low %v8301_v0, %v8308_v62  ;;  %v6857_v52 = vcombine.low %v4309_v58, %v4313_v54  ;;  %v6858_v20 = vcombine.low %v4317_v10, %v4321_v28  ;;  %v12497_v39 = vmax.f32 %v12108_v32, %v12204_v43  ;;  %8697 = vperm.xlu1 %9237, %v8276_v37  }
 0x49c   : > { %v8317_v50 = vrot.slane %v8309_v5, %v11130_v35  ;;  %v6859_v44 = vcombine.low %v4325_v56, %v4329_v40  ;;  %v3469_v38 = vrot.slane %v12318_v24, %v10958_v25  ;;  %v6866_v36 = vrot.slane %v6856_v33, %v11130_v35 }
 0x49d   : > { %v8324_v13 = vrot.slane %v8310_v48, %v11130_v35  ;;  %v6873_v45 = vrot.slane %v6857_v52, %v11130_v35  ;;  %v6880_v11 = vrot.slane %v6858_v20, %v11130_v35  ;;  %v3473_v43 = vrot.slane %v12318_v24, %v10961_v57 }
 0x49e   : > { %v12508_v63 = vpop.xlane.xlu1 %3106  ;;  %v6887_v32 = vrot.slane %v6859_v44, %v11130_v35  ;;  %v3477_v53 = vrot.slane %v12318_v24, %v13775_v41  ;;  %v3481_v9 = vrot.slane %v12318_v24, %v13776_v6  ;;  %v3485_v21 = vrot.slane %v12318_v24, %v13777_v55 }
 0x49f   : > { %v8325_v60 = vcombine.low %v8317_v50, %v8324_v13  ;;  %v6888_v27 = vcombine.low %v6866_v36, %v6873_v45  ;;  %v3489_v15 = vrot.slane %v12318_v24, %v13778_v30  ;;  %v3493_v54 = vrot.slane %v12318_v24, %v13779_v3 }
 0x4a0   : > { %v6889_v58 = vcombine.low %v6880_v11, %v6887_v32  ;;  %v3497_v0 = vrot.slane %v12318_v24, %v13780_v8  ;;  %v5582_v62 = vcombine.low %v3469_v38, %v3473_v43  ;;  %v3246_v10 = vmax.f32 %v12421_v12, %v12399_v59  ;;  %v12534_v24 = vpop.xlane.xlu0 %3091 }
 0x4a1   : > { %8700 = vperm.xlu1 %9237, %v8325_v60   ;;  %v6896_v28 = vrot.slane %v6888_v27, %v11130_v35  ;;  %v5583_v37 = vcombine.low %v3477_v53, %v3481_v9  ;;  %v5584_v5 = vcombine.low %v3485_v21, %v3489_v15  ;;  %v3501_v52 = vrot.slane %v12339_v29, %v10958_v25 }
 0x4a2   : > { %v12528_v56 = vpop.xlane.xlu1 %3112  ;;  %v6903_v40 = vrot.slane %v6889_v58, %v11130_v35  ;;  %v5585_v48 = vcombine.low %v3493_v54, %v3497_v0  ;;  %v5592_v33 = vrot.slane %v5582_v62, %v11130_v35  ;;  %v3505_v12 = vrot.slane %v12339_v29, %v10961_v57 }
 0x4a3   : > { %v5599_v20 = vrot.slane %v5583_v37, %v11130_v35  ;;  %v5606_v59 = vrot.slane %v5584_v5, %v11130_v35  ;;  %v3509_v50 = vrot.slane %v12339_v29, %v13775_v41  ;;  %v3513_v13 = vrot.slane %v12339_v29, %v13776_v6 }
 0x4a4   : > { %v6904_v44 = vcombine.low %v6896_v28, %v6903_v40  ;;  %v5613_v38 = vrot.slane %v5585_v48, %v11130_v35  ;;  %v3517_v36 = vrot.slane %v12339_v29, %v13777_v55  ;;  %v3521_v11 = vrot.slane %v12339_v29, %v13778_v30  ;;  %v12562_v5 = vpop.xlane.xlu0 %3097 }
 0x4a5   : > { %v5614_v45 = vcombine.low %v5592_v33, %v5599_v20  ;;  %v3525_v32 = vrot.slane %v12339_v29, %v13779_v3  ;;  %v3529_v43 = vrot.slane %v12339_v29, %v13780_v8  ;;  %v5631_v60 = vcombine.low %v3501_v52, %v3505_v12 }
 0x4a6   : > { %v12553_v53 = vpop.xlane.xlu1 %3142  ;;  %8613 = vperm.xlu0 %9236, %v6904_v44   ;;  %v5615_v9 = vcombine.low %v5606_v59, %v5613_v38  ;;  %v5632_v27 = vcombine.low %v3509_v50, %v3513_v13  ;;  %v4493_v21 = vrot.slane %v3246_v10, %v10958_v25  ;;  %v5633_v58 = vcombine.low %v3517_v36, %v3521_v11 }
 0x4a7   : > { %v5622_v15 = vrot.slane %v5614_v45, %v11130_v35  ;;  %v5634_v54 = vcombine.low %v3525_v32, %v3529_v43  ;;  %v4497_v0 = vrot.slane %v3246_v10, %v10961_v57  ;;  %v5641_v28 = vrot.slane %v5631_v60, %v11130_v35 }
 0x4a8   : > { %v5629_v62 = vrot.slane %v5615_v9, %v11130_v35  ;;  %v5648_v29 = vrot.slane %v5632_v27, %v11130_v35  ;;  %v4501_v37 = vrot.slane %v3246_v10, %v13775_v41  ;;  %v5655_v40 = vrot.slane %v5633_v58, %v11130_v35 }
 0x4a9   : > { %v5662_v48 = vrot.slane %v5634_v54, %v11130_v35  ;;  %v4505_v33 = vrot.slane %v3246_v10, %v13776_v6  ;;  %v4509_v52 = vrot.slane %v3246_v10, %v13777_v55  ;;  %v4513_v50 = vrot.slane %v3246_v10, %v13778_v30 }
 0x4aa   : > { %v12568_v20 = vpop.xlane.xlu1 %3148  ;;  %v5630_v59 = vcombine.low %v5622_v15, %v5629_v62  ;;  %v5663_v12 = vcombine.low %v5641_v28, %v5648_v29  ;;  %v4517_v44 = vrot.slane %v3246_v10, %v13779_v3  ;;  %v4521_v13 = vrot.slane %v3246_v10, %v13780_v8 }
 0x4ab   : > { %v5664_v38 = vcombine.low %v5655_v40, %v5662_v48  ;;  %v7150_v36 = vcombine.low %v4493_v21, %v4497_v0  ;;  %v7151_v45 = vcombine.low %v4501_v37, %v4505_v33  ;;  %v12575_v11 = vmax.f32 %v12182_v19, %v12234_v17  ;;  %v12592_v0 = vpop.xlane.xlu0 %3103 }
 0x4ac   : > { %8535 = vperm.xlu1 %9237, %v5630_v59   ;;  %v5671_v32 = vrot.slane %v5663_v12, %v11130_v35  ;;  %v7152_v43 = vcombine.low %v4509_v52, %v4513_v50  ;;  %v3533_v9 = vrot.slane %v12359_v23, %v10958_v25  ;;  %v7153_v27 = vcombine.low %v4517_v44, %v4521_v13 }
 0x4ad   : > { %v5678_v60 = vrot.slane %v5664_v38, %v11130_v35  ;;  %v7160_v15 = vrot.slane %v7150_v36, %v11130_v35  ;;  %v7167_v10 = vrot.slane %v7151_v45, %v11130_v35  ;;  %v3537_v19 = vrot.slane %v12359_v23, %v10961_v57 }
 0x4ae   : > { %v12583_v21 = vpop.xlane.xlu1 %3154  ;;  %v7174_v58 = vrot.slane %v7152_v43, %v11130_v35  ;;  %v3541_v17 = vrot.slane %v12359_v23, %v13775_v41  ;;  %v3545_v54 = vrot.slane %v12359_v23, %v13776_v6  ;;  %v7181_v28 = vrot.slane %v7153_v27, %v11130_v35 }
 0x4af   : > { %v5679_v62 = vcombine.low %v5671_v32, %v5678_v60  ;;  %v7182_v29 = vcombine.low %v7160_v15, %v7167_v10  ;;  %v3549_v37 = vrot.slane %v12359_v23, %v13777_v55  ;;  %v3553_v40 = vrot.slane %v12359_v23, %v13778_v30  ;;  %v12623_v10 = vpop.xlane.xlu0 %3109 }
 0x4b0   : > { %v3557_v48 = vrot.slane %v12359_v23, %v13779_v3  ;;  %v3561_v33 = vrot.slane %v12359_v23, %v13780_v8  ;;  %v5680_v52 = vcombine.low %v3533_v9, %v3537_v19  ;;  %v3248_v59 = vmax.f32 %v12479_v2, %v12432_v22 }
 0x4b1   : > { %8538 = vperm.xlu1 %9237, %v5679_v62   ;;  %v7183_v12 = vcombine.low %v7174_v58, %v7181_v28  ;;  %v7190_v50 = vrot.slane %v7182_v29, %v11130_v35  ;;  %v5681_v44 = vcombine.low %v3541_v17, %v3545_v54  ;;  %v5682_v13 = vcombine.low %v3549_v37, %v3553_v40 }
 0x4b2   : > { %v12606_v38 = vpop.xlane.xlu1 %3160  ;;  %v5683_v36 = vcombine.low %v3557_v48, %v3561_v33  ;;  %v5690_v45 = vrot.slane %v5680_v52, %v11130_v35  ;;  %v3565_v32 = vrot.slane %v12419_v1, %v10958_v25  ;;  %v3569_v22 = vrot.slane %v12419_v1, %v10961_v57 }
 0x4b3   : > { %v7197_v23 = vrot.slane %v7183_v12, %v11130_v35  ;;  %v5697_v43 = vrot.slane %v5681_v44, %v11130_v35  ;;  %v3573_v2 = vrot.slane %v12419_v1, %v13775_v41  ;;  %v5704_v9 = vrot.slane %v5682_v13, %v11130_v35 }
 0x4b4   : > { %v5711_v60 = vrot.slane %v5683_v36, %v11130_v35  ;;  %v3577_v27 = vrot.slane %v12419_v1, %v13776_v6  ;;  %v3581_v15 = vrot.slane %v12419_v1, %v13777_v55  ;;  %v3585_v17 = vrot.slane %v12419_v1, %v13778_v30 }
 0x4b5   : > { %v7198_v58 = vcombine.low %v7190_v50, %v7197_v23  ;;  %v5712_v19 = vcombine.low %v5690_v45, %v5697_v43  ;;  %v3589_v54 = vrot.slane %v12419_v1, %v13779_v3  ;;  %v3593_v29 = vrot.slane %v12419_v1, %v13780_v8 }
 0x4b6   : > { %v12629_v62 = vpop.xlane.xlu1 %3190  ;;  %v5713_v28 = vcombine.low %v5704_v9, %v5711_v60  ;;  %v5729_v37 = vcombine.low %v3565_v32, %v3569_v22  ;;  %v5730_v40 = vcombine.low %v3573_v2, %v3577_v27  ;;  %v5731_v33 = vcombine.low %v3581_v15, %v3585_v17  ;;  %v12647_v27 = vpop.xlane.xlu0 %3139 }
 0x4b7   : > { %8631 = vperm.xlu0 %9236, %v7198_v58   ;;  %v5720_v48 = vrot.slane %v5712_v19, %v11130_v35  ;;  %v4557_v52 = vrot.slane %v3248_v59, %v10958_v25  ;;  %v4561_v12 = vrot.slane %v3248_v59, %v10961_v57  ;;  %v5732_v44 = vcombine.low %v3589_v54, %v3593_v29 }
 0x4b8   : > { %v5727_v50 = vrot.slane %v5713_v28, %v11130_v35  ;;  %v5739_v13 = vrot.slane %v5729_v37, %v11130_v35  ;;  %v5746_v36 = vrot.slane %v5730_v40, %v11130_v35  ;;  %v5753_v45 = vrot.slane %v5731_v33, %v11130_v35 }
 0x4b9   : > { %v4565_v1 = vrot.slane %v3248_v59, %v13775_v41  ;;  %v4569_v32 = vrot.slane %v3248_v59, %v13776_v6  ;;  %v4573_v23 = vrot.slane %v3248_v59, %v13777_v55  ;;  %v5760_v2 = vrot.slane %v5732_v44, %v11130_v35 }
 0x4ba   : > { %v12643_v43 = vpop.xlane.xlu1 %3196  ;;  %v5728_v22 = vcombine.low %v5720_v48, %v5727_v50  ;;  %v5761_v9 = vcombine.low %v5739_v13, %v5746_v36  ;;  %v4577_v60 = vrot.slane %v3248_v59, %v13778_v30  ;;  %v4581_v15 = vrot.slane %v3248_v59, %v13779_v3 }
 0x4bb   : > { %v4585_v58 = vrot.slane %v3248_v59, %v13780_v8  ;;  %v7248_v19 = vcombine.low %v4557_v52, %v4561_v12  ;;  %v7249_v17 = vcombine.low %v4565_v1, %v4569_v32  ;;  %v12653_v54 = vmax.f32 %v12232_v61, %v12272_v26 }
 0x4bc   : > { %8541 = vperm.xlu1 %9237, %v5728_v22   ;;  %v5762_v28 = vcombine.low %v5753_v45, %v5760_v2  ;;  %v5769_v29 = vrot.slane %v5761_v9, %v11130_v35  ;;  %v7250_v37 = vcombine.low %v4573_v23, %v4577_v60  ;;  %v3757_v50 = vrot.slane %v12497_v39, %v10958_v25  ;;  %v12679_v2 = vpop.xlane.xlu0 %3145 }
 0x4bd   : > { %v7251_v40 = vcombine.low %v4581_v15, %v4585_v58  ;;  %v7258_v48 = vrot.slane %v7248_v19, %v11130_v35  ;;  %v7265_v33 = vrot.slane %v7249_v17, %v11130_v35  ;;  %v3761_v26 = vrot.slane %v12497_v39, %v10961_v57 }
 0x4be   : > { %v12660_v59 = vpop.xlane.xlu1 %3202  ;;  %v5776_v52 = vrot.slane %v5762_v28, %v11130_v35  ;;  %v7272_v61 = vrot.slane %v7250_v37, %v11130_v35  ;;  %v3765_v12 = vrot.slane %v12497_v39, %v13775_v41  ;;  %v3769_v36 = vrot.slane %v12497_v39, %v13776_v6 }
 0x4bf   : > { %v7279_v44 = vrot.slane %v7251_v40, %v11130_v35  ;;  %v7280_v13 = vcombine.low %v7258_v48, %v7265_v33  ;;  %v3773_v45 = vrot.slane %v12497_v39, %v13777_v55  ;;  %v3777_v32 = vrot.slane %v12497_v39, %v13778_v30 }
 0x4c0   : > { %v5777_v1 = vcombine.low %v5769_v29, %v5776_v52  ;;  %v3781_v23 = vrot.slane %v12497_v39, %v13779_v3  ;;  %v3785_v22 = vrot.slane %v12497_v39, %v13780_v8  ;;  %v6023_v15 = vcombine.low %v3757_v50, %v3761_v26 }
 0x4c1   : > { %v7281_v9 = vcombine.low %v7272_v61, %v7279_v44  ;;  %v7288_v60 = vrot.slane %v7280_v13, %v11130_v35  ;;  %v6024_v58 = vcombine.low %v3765_v12, %v3769_v36  ;;  %v6025_v19 = vcombine.low %v3773_v45, %v3777_v32 }
 0x4c2   : > { %8544 = vperm.xlu1 %9237, %v5777_v1   ;;  %v6026_v17 = vcombine.low %v3781_v23, %v3785_v22  ;;  %v12684_v28 = vmax.f32 %v12623_v10, %v12528_v56  ;;  %v3821_v29 = vrot.slane %v12575_v11, %v10958_v25  ;;  %v12688_v37 = vpop.xlane.xlu1 %3208  ;;  %v6033_v40 = vrot.slane %v6023_v15, %v11130_v35  ;;  %v12711_v23 = vpop.xlane.xlu0 %3151 }
 0x4c3   : > { %v7295_v39 = vrot.slane %v7281_v9, %v11130_v35  ;;  %v6040_v48 = vrot.slane %v6024_v58, %v11130_v35  ;;  %v3825_v33 = vrot.slane %v12575_v11, %v10961_v57  ;;  %v6047_v50 = vrot.slane %v6025_v19, %v11130_v35 }
 0x4c4   : > { %v6054_v52 = vrot.slane %v6026_v17, %v11130_v35  ;;  %v3829_v56 = vrot.slane %v12575_v11, %v13775_v41  ;;  %v3833_v10 = vrot.slane %v12575_v11, %v13776_v6  ;;  %v3837_v12 = vrot.slane %v12575_v11, %v13777_v55 }
 0x4c5   : > { %v7296_v61 = vcombine.low %v7288_v60, %v7295_v39  ;;  %v6055_v26 = vcombine.low %v6033_v40, %v6040_v48  ;;  %v3841_v44 = vrot.slane %v12575_v11, %v13778_v30  ;;  %v3845_v36 = vrot.slane %v12575_v11, %v13779_v3 }
 0x4c6   : > { %v6056_v13 = vcombine.low %v6047_v50, %v6054_v52  ;;  %v3849_v45 = vrot.slane %v12575_v11, %v13780_v8  ;;  %v6121_v1 = vcombine.low %v3821_v29, %v3825_v33  ;;  %v3233_v32 = vmax.f32 %v12284_v18, %v12296_v51  ;;  %v12718_v11 = vpop.permute.xlu1 %8526 }
 0x4c7   : > { %8637 = vperm.xlu0 %9236, %v7296_v61   ;;  %v6063_v22 = vrot.slane %v6055_v26, %v11130_v35  ;;  %v6122_v9 = vcombine.low %v3829_v56, %v3833_v10  ;;  %v6123_v60 = vcombine.low %v3837_v12, %v3841_v44  ;;  %v4013_v17 = vrot.slane %v12653_v54, %v10958_v25 }
 0x4c8   : > { %v6070_v15 = vrot.slane %v6056_v13, %v11130_v35  ;;  %v6124_v58 = vcombine.low %v3845_v36, %v3849_v45  ;;  %v6131_v19 = vrot.slane %v6121_v1, %v11130_v35  ;;  %v4017_v51 = vrot.slane %v12653_v54, %v10961_v57  ;;  %v12739_v36 = vpop.xlane.xlu0 %3157 }
 0x4c9   : > { %v6138_v29 = vrot.slane %v6122_v9, %v11130_v35  ;;  %v6145_v18 = vrot.slane %v6123_v60, %v11130_v35  ;;  %v4021_v39 = vrot.slane %v12653_v54, %v13775_v41  ;;  %v4025_v33 = vrot.slane %v12653_v54, %v13776_v6 }
 0x4ca   : > { %v6071_v40 = vcombine.low %v6063_v22, %v6070_v15  ;;  %v6152_v48 = vrot.slane %v6124_v58, %v11130_v35  ;;  %v4029_v50 = vrot.slane %v12653_v54, %v13777_v55  ;;  %v4033_v56 = vrot.slane %v12653_v54, %v13778_v30 }
 0x4cb   : > { %v6153_v52 = vcombine.low %v6131_v19, %v6138_v29  ;;  %v4037_v10 = vrot.slane %v12653_v54, %v13779_v3  ;;  %v4041_v61 = vrot.slane %v12653_v54, %v13780_v8  ;;  %v3239_v26 = vmax.f32 %v12331_v47, %v12333_v49  ;;  %v12747_v49 = vpop.permute.xlu1 %8529 }
 0x4cc   : > { %8562 = vperm.xlu1 %9237, %v6071_v40   ;;  %v6154_v12 = vcombine.low %v6145_v18, %v6152_v48  ;;  %v6415_v44 = vcombine.low %v4013_v17, %v4017_v51  ;;  %v6416_v13 = vcombine.low %v4021_v39, %v4025_v33  ;;  %v6417_v1 = vcombine.low %v4029_v50, %v4033_v56 }
 0x4cd   : > { %v6161_v45 = vrot.slane %v6153_v52, %v11130_v35  ;;  %v6418_v22 = vcombine.low %v4037_v10, %v4041_v61  ;;  %v4077_v9 = vrot.slane %v3233_v32, %v10958_v25  ;;  %v4081_v47 = vrot.slane %v3233_v32, %v10961_v57 }
 0x4ce   : > { %v6168_v60 = vrot.slane %v6154_v12, %v11130_v35  ;;  %v6425_v15 = vrot.slane %v6415_v44, %v11130_v35  ;;  %v6432_v54 = vrot.slane %v6416_v13, %v11130_v35  ;;  %v6439_v58 = vrot.slane %v6417_v1, %v11130_v35  ;;  %v12758_v12 = vpop.xlane.xlu0 %3187 }
 0x4cf   : > { %v6446_v19 = vrot.slane %v6418_v22, %v11130_v35  ;;  %v4085_v17 = vrot.slane %v3233_v32, %v13775_v41  ;;  %v4089_v29 = vrot.slane %v3233_v32, %v13776_v6  ;;  %v4093_v39 = vrot.slane %v3233_v32, %v13777_v55 }
 0x4d0   : > { %v6169_v18 = vcombine.low %v6161_v45, %v6168_v60  ;;  %v6447_v51 = vcombine.low %v6425_v15, %v6432_v54  ;;  %v4097_v40 = vrot.slane %v3233_v32, %v13778_v30  ;;  %v4101_v33 = vrot.slane %v3233_v32, %v13779_v3  ;;  %v12767_v60 = vpop.permute.xlu1 %8532 }
 0x4d1   : > { %v6448_v48 = vcombine.low %v6439_v58, %v6446_v19  ;;  %v4105_v50 = vrot.slane %v3233_v32, %v13780_v8  ;;  %v6513_v52 = vcombine.low %v4077_v9, %v4081_v47  ;;  %v6514_v10 = vcombine.low %v4085_v17, %v4089_v29 }
 0x4d2   : > { %8568 = vperm.xlu1 %9237, %v6169_v18   ;;  %v6455_v56 = vrot.slane %v6447_v51, %v11130_v35  ;;  %v6515_v61 = vcombine.low %v4093_v39, %v4097_v40  ;;  %v3241_v1 = vmax.f32 %v12393_v46, %v12375_v16  ;;  %v4269_v9 = vrot.slane %v3239_v26, %v10958_v25 }
 0x4d3   : > { %v6462_v44 = vrot.slane %v6448_v48, %v11130_v35  ;;  %v6516_v13 = vcombine.low %v4101_v33, %v4105_v50  ;;  %v6523_v45 = vrot.slane %v6513_v52, %v11130_v35  ;;  %v6530_v22 = vrot.slane %v6514_v10, %v11130_v35  ;;  %v12782_v52 = vpop.xlane.xlu0 %3193 }
 0x4d4   : > { %v6537_v32 = vrot.slane %v6515_v61, %v11130_v35  ;;  %v4273_v47 = vrot.slane %v3239_v26, %v10961_v57  ;;  %v4277_v58 = vrot.slane %v3239_v26, %v13775_v41  ;;  %v4281_v17 = vrot.slane %v3239_v26, %v13776_v6 }
 0x4d5   : > { %v6463_v15 = vcombine.low %v6455_v56, %v6462_v44  ;;  %v6544_v54 = vrot.slane %v6516_v13, %v11130_v35  ;;  %v6545_v19 = vcombine.low %v6523_v45, %v6530_v22  ;;  %v4285_v16 = vrot.slane %v3239_v26, %v13777_v55  ;;  %v12791_v22 = vpop.permute.xlu1 %8550 }
 0x4d6   : > { %v4289_v46 = vrot.slane %v3239_v26, %v13778_v30  ;;  %v4293_v18 = vrot.slane %v3239_v26, %v13779_v3  ;;  %v4297_v51 = vrot.slane %v3239_v26, %v13780_v8  ;;  %v6807_v39 = vcombine.low %v4269_v9, %v4273_v47 }
 0x4d7   : > { %8586 = vperm.xlu1 %9237, %v6463_v15   ;;  %v6546_v29 = vcombine.low %v6537_v32, %v6544_v54  ;;  %v6553_v40 = vrot.slane %v6545_v19, %v11130_v35  ;;  %v6808_v48 = vcombine.low %v4277_v58, %v4281_v17  ;;  %v12780_v50 = vmax.f32 %v12447_v14, %v12413_v7 }
 0x4d8   : > { %v6809_v33 = vcombine.low %v4285_v16, %v4289_v46  ;;  %v6810_v10 = vcombine.low %v4293_v18, %v4297_v51  ;;  %v6817_v61 = vrot.slane %v6807_v39, %v11130_v35  ;;  %v3262_v44 = vmax.f32 %v12647_v27, %v12553_v53  ;;  %v12803_v51 = vpop.xlane.xlu0 %3199 }
 0x4d9   : > { %v6560_v56 = vrot.slane %v6546_v29, %v11130_v35  ;;  %v6824_v26 = vrot.slane %v6808_v48, %v11130_v35  ;;  %v4333_v45 = vrot.slane %v3241_v1, %v10958_v25  ;;  %v4337_v32 = vrot.slane %v3241_v1, %v10961_v57 }
 0x4da   : > { %v6831_v13 = vrot.slane %v6809_v33, %v11130_v35  ;;  %v6838_v14 = vrot.slane %v6810_v10, %v11130_v35  ;;  %v4341_v9 = vrot.slane %v3241_v1, %v13775_v41  ;;  %v4345_v54 = vrot.slane %v3241_v1, %v13776_v6 }
 0x4db   : > { %v6561_v7 = vcombine.low %v6553_v40, %v6560_v56  ;;  %v6839_v15 = vcombine.low %v6817_v61, %v6824_v26  ;;  %v4349_v53 = vrot.slane %v3241_v1, %v13777_v55  ;;  %v4353_v27 = vrot.slane %v3241_v1, %v13778_v30  ;;  %v12812_v26 = vpop.permute.xlu1 %8556 }
 0x4dc   : > { %v6840_v47 = vcombine.low %v6831_v13, %v6838_v14  ;;  %v4357_v58 = vrot.slane %v3241_v1, %v13779_v3  ;;  %v4361_v19 = vrot.slane %v3241_v1, %v13780_v8  ;;  %v6905_v17 = vcombine.low %v4333_v45, %v4337_v32 }
 0x4dd   : > { %8592 = vperm.xlu1 %9237, %v6561_v7   ;;  %v6847_v16 = vrot.slane %v6839_v15, %v11130_v35  ;;  %v6906_v46 = vcombine.low %v4341_v9, %v4345_v54  ;;  %v6907_v29 = vcombine.low %v4349_v53, %v4353_v27  ;;  %v5005_v18 = vrot.slane %v3262_v44, %v10958_v25 }
 0x4de   : > { %v6854_v39 = vrot.slane %v6840_v47, %v11130_v35  ;;  %v6908_v40 = vcombine.low %v4357_v58, %v4361_v19  ;;  %v6915_v48 = vrot.slane %v6905_v17, %v11130_v35  ;;  %v5009_v33 = vrot.slane %v3262_v44, %v10961_v57 }
 0x4df   : > { %v6922_v56 = vrot.slane %v6906_v46, %v11130_v35  ;;  %v6929_v1 = vrot.slane %v6907_v29, %v11130_v35  ;;  %v5013_v10 = vrot.slane %v3262_v44, %v13775_v41  ;;  %v5017_v61 = vrot.slane %v3262_v44, %v13776_v6  ;;  %v12823_v46 = vpop.xlane.xlu0 %3205 }
 0x4e0   : > { %v6855_v13 = vcombine.low %v6847_v16, %v6854_v39  ;;  %v6936_v45 = vrot.slane %v6908_v40, %v11130_v35  ;;  %v5021_v7 = vrot.slane %v3262_v44, %v13777_v55  ;;  %v5025_v14 = vrot.slane %v3262_v44, %v13778_v30 }
 0x4e1   : > { %v6937_v32 = vcombine.low %v6915_v48, %v6922_v56  ;;  %v5029_v9 = vrot.slane %v3262_v44, %v13779_v3  ;;  %v5033_v15 = vrot.slane %v3262_v44, %v13780_v8  ;;  %v7934_v54 = vcombine.low %v5005_v18, %v5009_v33 }
 0x4e2   : > { %8610 = vperm.xlu1 %9237, %v6855_v13   ;;  %v6938_v53 = vcombine.low %v6929_v1, %v6936_v45  ;;  %v7935_v27 = vcombine.low %v5013_v10, %v5017_v61  ;;  %v7936_v47 = vcombine.low %v5021_v7, %v5025_v14  ;;  %v3249_v16 = vmax.f32 %v12502_v4, %v12454_v31  ;;  %v12835_v31 = vpop.permute.xlu1 %8574 }
 0x4e3   : > { %v6945_v58 = vrot.slane %v6937_v32, %v11130_v35  ;;  %v7937_v19 = vcombine.low %v5029_v9, %v5033_v15  ;;  %v7944_v17 = vrot.slane %v7934_v54, %v11130_v35  ;;  %v4525_v40 = vrot.slane %v12780_v50, %v10958_v25  ;;  %v12851_v32 = vpop.permute.xlu0 %8523 }
 0x4e4   : > { %v6952_v29 = vrot.slane %v6938_v53, %v11130_v35  ;;  %v7951_v39 = vrot.slane %v7935_v27, %v11130_v35  ;;  %v7958_v44 = vrot.slane %v7936_v47, %v11130_v35  ;;  %v4529_v48 = vrot.slane %v12780_v50, %v10961_v57 }
 0x4e5   : > { %v7965_v18 = vrot.slane %v7937_v19, %v11130_v35  ;;  %v4533_v33 = vrot.slane %v12780_v50, %v13775_v41  ;;  %v4537_v1 = vrot.slane %v12780_v50, %v13776_v6  ;;  %v4541_v10 = vrot.slane %v12780_v50, %v13777_v55 }
 0x4e6   : > { %v6953_v4 = vcombine.low %v6945_v58, %v6952_v29  ;;  %v7966_v56 = vcombine.low %v7944_v17, %v7951_v39  ;;  %v4545_v13 = vrot.slane %v12780_v50, %v13778_v30  ;;  %v4549_v45 = vrot.slane %v12780_v50, %v13779_v3 }
 0x4e7   : > { %v7967_v61 = vcombine.low %v7958_v44, %v7965_v18  ;;  %v4553_v7 = vrot.slane %v12780_v50, %v13780_v8  ;;  %v12849_v14 = vmax.f32 %v12679_v2, %v12568_v20  ;;  %v7199_v15 = vcombine.low %v4525_v40, %v4529_v48 }
 0x4e8   : > { %8616 = vperm.xlu1 %9237, %v6953_v4   ;;  %v7974_v9 = vrot.slane %v7966_v56, %v11130_v35  ;;  %v7200_v54 = vcombine.low %v4533_v33, %v4537_v1  ;;  %v3264_v53 = vmax.f32 %v12711_v23, %v12583_v21  ;;  %v7201_v47 = vcombine.low %v4541_v10, %v4545_v13  ;;  %v12864_v21 = vpop.permute.xlu1 %8580  ;;  %v12871_v10 = vpop.permute.xlu0 %8547 }
 0x4e9   : > { %v7981_v27 = vrot.slane %v7967_v61, %v11130_v35  ;;  %v7202_v58 = vcombine.low %v4549_v45, %v4553_v7  ;;  %v7209_v50 = vrot.slane %v7199_v15, %v11130_v35  ;;  %v4589_v20 = vrot.slane %v3249_v16, %v10958_v25 }
 0x4ea   : > { %v7216_v19 = vrot.slane %v7200_v54, %v11130_v35  ;;  %v4593_v2 = vrot.slane %v3249_v16, %v10961_v57  ;;  %v7223_v29 = vrot.slane %v7201_v47, %v11130_v35  ;;  %v4597_v44 = vrot.slane %v3249_v16, %v13775_v41 }
 0x4eb   : > { %v7982_v17 = vcombine.low %v7974_v9, %v7981_v27  ;;  %v7230_v39 = vrot.slane %v7202_v58, %v11130_v35  ;;  %v4601_v18 = vrot.slane %v3249_v16, %v13776_v6  ;;  %v4605_v40 = vrot.slane %v3249_v16, %v13777_v55 }
 0x4ec   : > { %v7231_v23 = vcombine.low %v7209_v50, %v7216_v19  ;;  %v4609_v48 = vrot.slane %v3249_v16, %v13778_v30  ;;  %v4613_v4 = vrot.slane %v3249_v16, %v13779_v3  ;;  %v4617_v56 = vrot.slane %v3249_v16, %v13780_v8 }
 0x4ed   : > { %8679 = vperm.xlu0 %9236, %v7982_v17   ;;  %v7232_v33 = vcombine.low %v7223_v29, %v7230_v39  ;;  %v7297_v1 = vcombine.low %v4589_v20, %v4593_v2  ;;  %v7298_v13 = vcombine.low %v4597_v44, %v4601_v18  ;;  %v5069_v7 = vrot.slane %v3264_v53, %v10958_v25  ;;  %v12885_v29 = vpop.permute.xlu1 %8598 }
 0x4ee   : > { %v7239_v61 = vrot.slane %v7231_v23, %v11130_v35  ;;  %v7299_v45 = vcombine.low %v4605_v40, %v4609_v48  ;;  %v7300_v15 = vcombine.low %v4613_v4, %v4617_v56  ;;  %v5073_v27 = vrot.slane %v3264_v53, %v10961_v57  ;;  %v12889_v4 = vpop.permute.xlu0 %8553 }
 0x4ef   : > { %v7246_v9 = vrot.slane %v7232_v33, %v11130_v35  ;;  %v7307_v54 = vrot.slane %v7297_v1, %v11130_v35  ;;  %v7314_v47 = vrot.slane %v7298_v13, %v11130_v35  ;;  %v5077_v58 = vrot.slane %v3264_v53, %v13775_v41 }
 0x4f0   : > { %v7321_v16 = vrot.slane %v7299_v45, %v11130_v35  ;;  %v5081_v50 = vrot.slane %v3264_v53, %v13776_v6  ;;  %v7328_v20 = vrot.slane %v7300_v15, %v11130_v35  ;;  %v5085_v2 = vrot.slane %v3264_v53, %v13777_v55 }
 0x4f1   : > { %v7247_v19 = vcombine.low %v7239_v61, %v7246_v9  ;;  %v5089_v17 = vrot.slane %v3264_v53, %v13778_v30  ;;  %v7329_v39 = vcombine.low %v7307_v54, %v7314_v47  ;;  %v5093_v44 = vrot.slane %v3264_v53, %v13779_v3 }
 0x4f2   : > { %v5097_v23 = vrot.slane %v3264_v53, %v13780_v8  ;;  %v8032_v18 = vcombine.low %v5069_v7, %v5073_v27  ;;  %v7330_v40 = vcombine.low %v7321_v16, %v7328_v20  ;;  %v8033_v48 = vcombine.low %v5077_v58, %v5081_v50  ;;  %v12911_v58 = vpop.permute.xlu1 %8604 }
 0x4f3   : > { %8634 = vperm.xlu1 %9237, %v7247_v19   ;;  %v8034_v33 = vcombine.low %v5085_v2, %v5089_v17  ;;  %v7337_v56 = vrot.slane %v7329_v39, %v11130_v35  ;;  %v3254_v13 = vmax.f32 %v12534_v24, %v12475_v42  ;;  %v5037_v15 = vrot.slane %v12849_v14, %v10958_v25 }
 0x4f4   : > { %v8035_v1 = vcombine.low %v5093_v44, %v5097_v23  ;;  %v8042_v61 = vrot.slane %v8032_v18, %v11130_v35  ;;  %v7344_v45 = vrot.slane %v7330_v40, %v11130_v35  ;;  %v8049_v9 = vrot.slane %v8033_v48, %v11130_v35  ;;  %v12922_v44 = vpop.permute.xlu0 %8571 }
 0x4f5   : > { %v8056_v53 = vrot.slane %v8034_v33, %v11130_v35  ;;  %v5041_v54 = vrot.slane %v12849_v14, %v10961_v57  ;;  %v5045_v27 = vrot.slane %v12849_v14, %v13775_v41  ;;  %v12907_v42 = vmax.f32 %v12739_v36, %v12606_v38 }
 0x4f6   : > { %v8063_v7 = vrot.slane %v8035_v1, %v11130_v35  ;;  %v7345_v24 = vcombine.low %v7337_v56, %v7344_v45  ;;  %v8064_v47 = vcombine.low %v8042_v61, %v8049_v9  ;;  %v5049_v16 = vrot.slane %v12849_v14, %v13776_v6 }
 0x4f7   : > { %v5053_v19 = vrot.slane %v12849_v14, %v13777_v55  ;;  %v5057_v20 = vrot.slane %v12849_v14, %v13778_v30  ;;  %v5061_v2 = vrot.slane %v12849_v14, %v13779_v3  ;;  %v5065_v36 = vrot.slane %v12849_v14, %v13780_v8 }
 0x4f8   : > { %v8065_v50 = vcombine.low %v8056_v53, %v8063_v7  ;;  %8640 = vperm.xlu1 %9237, %v7345_v24   ;;  %v8072_v38 = vrot.slane %v8064_v47, %v11130_v35  ;;  %v7983_v17 = vcombine.low %v5037_v15, %v5041_v54  ;;  %v7984_v39 = vcombine.low %v5045_v27, %v5049_v16  ;;  %v12936_v24 = vpop.permute.xlu1 %8622 }
 0x4f9   : > { %v7985_v18 = vcombine.low %v5053_v19, %v5057_v20  ;;  %v4749_v40 = vrot.slane %v3254_v13, %v10958_v25  ;;  %v4753_v48 = vrot.slane %v3254_v13, %v10961_v57  ;;  %v7986_v33 = vcombine.low %v5061_v2, %v5065_v36 }
 0x4fa   : > { %v8079_v23 = vrot.slane %v8065_v50, %v11130_v35  ;;  %v7993_v56 = vrot.slane %v7983_v17, %v11130_v35  ;;  %v8000_v1 = vrot.slane %v7984_v39, %v11130_v35  ;;  %v4757_v61 = vrot.slane %v3254_v13, %v13775_v41  ;;  %v12946_v17 = vpop.permute.xlu0 %8577 }
 0x4fb   : > { %v8007_v14 = vrot.slane %v7985_v18, %v11130_v35  ;;  %v4761_v9 = vrot.slane %v3254_v13, %v13776_v6  ;;  %v4765_v53 = vrot.slane %v3254_v13, %v13777_v55  ;;  %v8014_v7 = vrot.slane %v7986_v33, %v11130_v35 }
 0x4fc   : > { %v8080_v45 = vcombine.low %v8072_v38, %v8079_v23  ;;  %v8015_v15 = vcombine.low %v7993_v56, %v8000_v1  ;;  %v4769_v54 = vrot.slane %v3254_v13, %v13778_v30  ;;  %v4773_v27 = vrot.slane %v3254_v13, %v13779_v3 }
 0x4fd   : > { %v3255_v47 = vmax.f32 %v12562_v5, %v12491_v34  ;;  %v4777_v16 = vrot.slane %v3254_v13, %v13780_v8  ;;  %v7542_v50 = vcombine.low %v4749_v40, %v4753_v48  ;;  %v7543_v19 = vcombine.low %v4757_v61, %v4761_v9  ;;  %v12969_v9 = vpop.permute.xlu1 %8628 }
 0x4fe   : > { %8685 = vperm.xlu0 %9236, %v8080_v45   ;;  %v12943_v20 = vmax.f32 %v12758_v12, %v12629_v62  ;;  %v8016_v2 = vcombine.low %v8007_v14, %v8014_v7  ;;  %v8023_v38 = vrot.slane %v8015_v15, %v11130_v35  ;;  %v7544_v36 = vcombine.low %v4765_v53, %v4769_v54 }
 0x4ff   : > { %v7545_v39 = vcombine.low %v4773_v27, %v4777_v16  ;;  %v7552_v23 = vrot.slane %v7542_v50, %v11130_v35  ;;  %v7559_v34 = vrot.slane %v7543_v19, %v11130_v35  ;;  %v5101_v5 = vrot.slane %v12907_v42, %v10958_v25 }
 0x500   : > { %v8030_v13 = vrot.slane %v8016_v2, %v11130_v35  ;;  %v7566_v18 = vrot.slane %v7544_v36, %v11130_v35  ;;  %v5105_v62 = vrot.slane %v12907_v42, %v10961_v57  ;;  %v5109_v12 = vrot.slane %v12907_v42, %v13775_v41 }
 0x501   : > { %v7573_v40 = vrot.slane %v7545_v39, %v11130_v35  ;;  %v7574_v48 = vcombine.low %v7552_v23, %v7559_v34  ;;  %v5113_v33 = vrot.slane %v12907_v42, %v13776_v6  ;;  %v5117_v56 = vrot.slane %v12907_v42, %v13777_v55 }
 0x502   : > { %v8031_v1 = vcombine.low %v8023_v38, %v8030_v13  ;;  %v5121_v61 = vrot.slane %v12907_v42, %v13778_v30  ;;  %v5125_v45 = vrot.slane %v12907_v42, %v13779_v3  ;;  %v5129_v14 = vrot.slane %v12907_v42, %v13780_v8  ;;  %v12975_v38 = vpop.permute.xlu0 %8595 }
 0x503   : > { %v7575_v53 = vcombine.low %v7566_v18, %v7573_v40  ;;  %v7582_v7 = vrot.slane %v7574_v48, %v11130_v35  ;;  %v8081_v15 = vcombine.low %v5101_v5, %v5105_v62  ;;  %v8082_v54 = vcombine.low %v5109_v12, %v5113_v33 }
 0x504   : > { %8682 = vperm.xlu1 %9237, %v8031_v1   ;;  %v8083_v27 = vcombine.low %v5117_v56, %v5121_v61  ;;  %v8084_v16 = vcombine.low %v5125_v45, %v5129_v14  ;;  %v4781_v50 = vrot.slane %v3255_v47, %v10958_v25  ;;  %v4785_v19 = vrot.slane %v3255_v47, %v10961_v57  ;;  %v12987_v61 = vpop.permute.xlu1 %8646 }
 0x505   : > { %v7589_v2 = vrot.slane %v7575_v53, %v11130_v35  ;;  %v8091_v42 = vrot.slane %v8081_v15, %v11130_v35  ;;  %v8098_v36 = vrot.slane %v8082_v54, %v11130_v35  ;;  %v4789_v39 = vrot.slane %v3255_v47, %v13775_v41 }
 0x506   : > { %v8105_v23 = vrot.slane %v8083_v27, %v11130_v35  ;;  %v8112_v34 = vrot.slane %v8084_v16, %v11130_v35  ;;  %v4793_v5 = vrot.slane %v3255_v47, %v13776_v6  ;;  %v4797_v13 = vrot.slane %v3255_v47, %v13777_v55  ;;  %v12996_v16 = vpop.permute.xlu0 %8601 }
 0x507   : > { %v7590_v18 = vcombine.low %v7582_v7, %v7589_v2  ;;  %v8113_v62 = vcombine.low %v8091_v42, %v8098_v36  ;;  %v4801_v12 = vrot.slane %v3255_v47, %v13778_v30  ;;  %v4805_v40 = vrot.slane %v3255_v47, %v13779_v3 }
 0x508   : > { %v8114_v48 = vcombine.low %v8105_v23, %v8112_v34  ;;  %v4809_v33 = vrot.slane %v3255_v47, %v13780_v8  ;;  %v7591_v56 = vcombine.low %v4781_v50, %v4785_v19  ;;  %v7592_v1 = vcombine.low %v4789_v39, %v4793_v5 }
 0x509   : > { %8655 = vperm.xlu0 %9236, %v7590_v18   ;;  %v8121_v45 = vrot.slane %v8113_v62, %v11130_v35  ;;  %v7593_v14 = vcombine.low %v4797_v13, %v4801_v12  ;;  %v3256_v27 = vmax.f32 %v12592_v0, %v12508_v63  ;;  %v5261_v50 = vrot.slane %v12943_v20, %v10958_v25  ;;  %v13014_v18 = vpop.permute.xlu1 %8670 }
 0x50a   : > { %v8128_v53 = vrot.slane %v8114_v48, %v11130_v35  ;;  %v7594_v15 = vcombine.low %v4805_v40, %v4809_v33  ;;  %v7601_v7 = vrot.slane %v7591_v56, %v11130_v35  ;;  %v7608_v54 = vrot.slane %v7592_v1, %v11130_v35 }
 0x50b   : > { %v7615_v47 = vrot.slane %v7593_v14, %v11130_v35  ;;  %v5265_v36 = vrot.slane %v12943_v20, %v10961_v57  ;;  %v5269_v39 = vrot.slane %v12943_v20, %v13775_v41  ;;  %v5273_v63 = vrot.slane %v12943_v20, %v13776_v6 }
 0x50c   : > { %v8129_v19 = vcombine.low %v8121_v45, %v8128_v53  ;;  %v7622_v2 = vrot.slane %v7594_v15, %v11130_v35  ;;  %v7623_v42 = vcombine.low %v7601_v7, %v7608_v54  ;;  %v5277_v0 = vrot.slane %v12943_v20, %v13777_v55 }
 0x50d   : > { %v5281_v5 = vrot.slane %v12943_v20, %v13778_v30  ;;  %v5285_v13 = vrot.slane %v12943_v20, %v13779_v3  ;;  %v3271_v62 = vmax.f32 %v12782_v52, %v12643_v43  ;;  %v5289_v12 = vrot.slane %v12943_v20, %v13780_v8  ;;  %v13026_v43 = vpop.permute.xlu0 %8619 }
 0x50e   : > { %8688 = vperm.xlu1 %9237, %v8129_v19   ;;  %v7624_v23 = vcombine.low %v7615_v47, %v7622_v2  ;;  %v7631_v34 = vrot.slane %v7623_v42, %v11130_v35  ;;  %v8326_v40 = vcombine.low %v5261_v50, %v5265_v36  ;;  %v8327_v48 = vcombine.low %v5269_v39, %v5273_v63 }
 0x50f   : > { %v8328_v56 = vcombine.low %v5277_v0, %v5281_v5  ;;  %v4813_v1 = vrot.slane %v3256_v27, %v10958_v25  ;;  %v4817_v45 = vrot.slane %v3256_v27, %v10961_v57  ;;  %v8329_v14 = vcombine.low %v5285_v13, %v5289_v12  ;;  %v13035_v0 = vpop.permute.xlu1 %8676 }
 0x510   : > { %v7638_v33 = vrot.slane %v7624_v23, %v11130_v35  ;;  %v8336_v53 = vrot.slane %v8326_v40, %v11130_v35  ;;  %v8343_v15 = vrot.slane %v8327_v48, %v11130_v35  ;;  %v4821_v7 = vrot.slane %v3256_v27, %v13775_v41 }
 0x511   : > { %v8350_v20 = vrot.slane %v8328_v56, %v11130_v35  ;;  %v4825_v54 = vrot.slane %v3256_v27, %v13776_v6  ;;  %v4829_v47 = vrot.slane %v3256_v27, %v13777_v55  ;;  %v8357_v50 = vrot.slane %v8329_v14, %v11130_v35 }
 0x512   : > { %v7639_v52 = vcombine.low %v7631_v34, %v7638_v33  ;;  %v8358_v19 = vcombine.low %v8336_v53, %v8343_v15  ;;  %v4833_v2 = vrot.slane %v3256_v27, %v13778_v30  ;;  %v4837_v42 = vrot.slane %v3256_v27, %v13779_v3 }
 0x513   : > { %v4841_v36 = vrot.slane %v3256_v27, %v13780_v8  ;;  %v7640_v39 = vcombine.low %v4813_v1, %v4817_v45  ;;  %v7641_v63 = vcombine.low %v4821_v7, %v4825_v54  ;;  %v8359_v23 = vcombine.low %v8350_v20, %v8357_v50  ;;  %v13044_v1 = vpop.permute.xlu0 %8625 }
 0x514   : > { %8658 = vperm.xlu0 %9236, %v7639_v52   ;;  %v8366_v34 = vrot.slane %v8358_v19, %v11130_v35  ;;  %v7642_v5 = vcombine.low %v4829_v47, %v4833_v2  ;;  %v5293_v56 = vrot.slane %v3271_v62, %v10958_v25  ;;  %v5297_v27 = vrot.slane %v3271_v62, %v10961_v57 }
 0x515   : > { %v7643_v13 = vcombine.low %v4837_v42, %v4841_v36  ;;  %v7650_v12 = vrot.slane %v7640_v39, %v11130_v35  ;;  %v7657_v40 = vrot.slane %v7641_v63, %v11130_v35  ;;  %v8373_v48 = vrot.slane %v8359_v23, %v11130_v35 }
 0x516   : > { %v7664_v33 = vrot.slane %v7642_v5, %v11130_v35  ;;  %v13048_v45 = vmax.f32 %v12803_v51, %v12660_v59  ;;  %v5301_v15 = vrot.slane %v3271_v62, %v13775_v41  ;;  %v5305_v52 = vrot.slane %v3271_v62, %v13776_v6  ;;  %v13058_v51 = vpop.permute.xlu1 %8694 }
 0x517   : > { %v7671_v14 = vrot.slane %v7643_v13, %v11130_v35  ;;  %v7672_v53 = vcombine.low %v7650_v12, %v7657_v40  ;;  %v8374_v7 = vcombine.low %v8366_v34, %v8373_v48  ;;  %v5309_v20 = vrot.slane %v3271_v62, %v13777_v55  ;;  %v13072_v48 = vpop.permute.xlu0 %8643 }
 0x518   : > { %v5313_v54 = vrot.slane %v3271_v62, %v13778_v30  ;;  %v5317_v19 = vrot.slane %v3271_v62, %v13779_v3  ;;  %v5321_v59 = vrot.slane %v3271_v62, %v13780_v8  ;;  %v8375_v2 = vcombine.low %v5293_v56, %v5297_v27 }
 0x519   : > { %v7673_v47 = vcombine.low %v7664_v33, %v7671_v14  ;;  %v7680_v50 = vrot.slane %v7672_v53, %v11130_v35  ;;  %8703 = vperm.xlu1 %9237, %v8374_v7   ;;  %v8376_v42 = vcombine.low %v5301_v15, %v5305_v52  ;;  %v4845_v39 = vrot.slane %v12684_v28, %v10958_v25 }
 0x51a   : > { %v8377_v36 = vcombine.low %v5309_v20, %v5313_v54  ;;  %v8378_v23 = vcombine.low %v5317_v19, %v5321_v59  ;;  %v4849_v34 = vrot.slane %v12684_v28, %v10961_v57  ;;  %v4853_v5 = vrot.slane %v12684_v28, %v13775_v41 }
 0x51b   : > { %v7687_v63 = vrot.slane %v7673_v47, %v11130_v35  ;;  %v8385_v62 = vrot.slane %v8375_v2, %v11130_v35  ;;  %v8392_v13 = vrot.slane %v8376_v42, %v11130_v35  ;;  %v4857_v40 = vrot.slane %v12684_v28, %v13776_v6 }
 0x51c   : > { %v8399_v12 = vrot.slane %v8377_v36, %v11130_v35  ;;  %v8406_v56 = vrot.slane %v8378_v23, %v11130_v35  ;;  %v4861_v27 = vrot.slane %v12684_v28, %v13777_v55  ;;  %v4865_v14 = vrot.slane %v12684_v28, %v13778_v30 }
 0x51d   : > { %v7688_v33 = vcombine.low %v7680_v50, %v7687_v63  ;;  %v8407_v53 = vcombine.low %v8385_v62, %v8392_v13  ;;  %v4869_v15 = vrot.slane %v12684_v28, %v13779_v3  ;;  %v4873_v7 = vrot.slane %v12684_v28, %v13780_v8  ;;  %v13083_v50 = vpop.permute.xlu1 %8697  ;;  %v13098_v62 = vpop.permute.xlu0 %8667 }
 0x51e   : > { %v7689_v52 = vcombine.low %v4845_v39, %v4849_v34  ;;  %v8408_v20 = vcombine.low %v8399_v12, %v8406_v56  ;;  %v7690_v54 = vcombine.low %v4853_v5, %v4857_v40  ;;  %v7691_v47 = vcombine.low %v4861_v27, %v4865_v14 }
 0x51f   : > { %8661 = vperm.xlu0 %9236, %v7688_v33   ;;  %v8415_v19 = vrot.slane %v8407_v53, %v11130_v35  ;;  %v7692_v59 = vcombine.low %v4869_v15, %v4873_v7  ;;  %v13852_v23 = vlaneseq  ;;  %v5325_v34 = vrot.slane %v13048_v45, %v10958_v25 }
 0x520   : > { %v7699_v2 = vrot.slane %v7689_v52, %v11130_v35  ;;  %v8422_v42 = vrot.slane %v8408_v20, %v11130_v35  ;;  %v7706_v36 = vrot.slane %v7690_v54, %v11130_v35  ;;  %v7713_v63 = vrot.slane %v7691_v47, %v11130_v35 }
 0x521   : > { %v13091_v28 = vand.u32 127, %v13852_v23  ;;  %v7720_v39 = vrot.slane %v7692_v59, %v11130_v35  ;;  %v5329_v5 = vrot.slane %v13048_v45, %v10961_v57  ;;  %v5333_v40 = vrot.slane %v13048_v45, %v13775_v41  ;;  %v13115_v54 = vpop.permute.xlu1 %8700 }
 0x522   : > { %v8423_v13 = vcombine.low %v8415_v19, %v8422_v42  ;;  %v7721_v12 = vcombine.low %v7699_v2, %v7706_v36  ;;  %v5337_v33 = vrot.slane %v13048_v45, %v13776_v6  ;;  %v3273_v56 = vmax.f32 %v12823_v46, %v12688_v37 }
 0x523   : > { %v7722_v27 = vcombine.low %v7713_v63, %v7720_v39  ;;  %v5341_v14 = vrot.slane %v13048_v45, %v13777_v55  ;;  %v5345_v53 = vrot.slane %v13048_v45, %v13778_v30  ;;  %v5349_v7 = vrot.slane %v13048_v45, %v13779_v3 }
 0x524   : > { %8706 = vperm.xlu1 %9237, %v8423_v13   ;;  %v7729_v15 = vrot.slane %v7721_v12, %v11130_v35  ;;  %v5353_v52 = vrot.slane %v13048_v45, %v13780_v8  ;;  %v8424_v20 = vcombine.low %v5325_v34, %v5329_v5  ;;  %v8425_v46 = vcombine.low %v5333_v40, %v5337_v33  ;;  %v8674_v45 = vpop.permute.xlu0 %8673 }
 0x525   : > { %v7736_v37 = vrot.slane %v7722_v27, %v11130_v35  ;;  %v8426_v47 = vcombine.low %v5341_v14, %v5345_v53  ;;  %v8727_v19 = vadd.s32 4294967280, %v13091_v28  ;;  %v5357_v39 = vrot.slane %v3273_v56, %v10958_v25  ;;  %v13853_v53 = vld [vmem:[#allocation2_spill] sm:$0xff] }
 0x526   : > { %v8427_v59 = vcombine.low %v5349_v7, %v5353_v52  ;;  %v8434_v2 = vrot.slane %v8424_v20, %v11130_v35  ;;  %v8441_v36 = vrot.slane %v8425_v46, %v11130_v35  ;;  %v8720_v34 = vadd.s32 4294967288, %v13091_v28 }
 0x527   : > { %v7737_v42 = vcombine.low %v7729_v15, %v7736_v37  ;;  %v8448_v63 = vrot.slane %v8426_v47, %v11130_v35  ;;  %v5361_v13 = vrot.slane %v3273_v56, %v10961_v57  ;;  %v5365_v12 = vrot.slane %v3273_v56, %v13775_v41  ;;  %v13135_v20 = vpop.permute.xlu1 %8535 }
 0x528   : > { %v8455_v5 = vrot.slane %v8427_v59, %v11130_v35  ;;  %v8456_v40 = vcombine.low %v8434_v2, %v8441_v36  ;;  %v5369_v33 = vrot.slane %v3273_v56, %v13776_v6  ;;  %v5373_v27 = vrot.slane %v3273_v56, %v13777_v55 }
 0x529   : > { %8664 = vperm.xlu0 %9236, %v7737_v42   ;;  %v5377_v14 = vrot.slane %v3273_v56, %v13778_v30  ;;  %v13131_v15 = vsub.s32 %v8727_v19, %v13853_v53  ;;  %v5381_v7 = vrot.slane %v3273_v56, %v13779_v3  ;;  %v5385_v52 = vrot.slane %v3273_v56, %v13780_v8  ;;  %v13149_v19 = vpop.permute.xlu0 %8691 }
 0x52a   : > { %v8457_v25 = vcombine.low %v8448_v63, %v8455_v5  ;;  %v8464_v57 = vrot.slane %v8456_v40, %v11130_v35  ;;  %v8473_v41 = vcombine.low %v5357_v39, %v5361_v13  ;;  %v8474_v37 = vcombine.low %v5365_v12, %v5369_v33 }
 0x52b   : > { %v8475_v46 = vcombine.low %v5373_v27, %v5377_v14  ;;  %v13140_v6 = vsub.s32 %v13091_v28, %v13853_v53  ;;  %v13143_v55 = vsub.s32 %v8720_v34, %v13853_v53  ;;  %v8476_v47 = vcombine.low %v5381_v7, %v5385_v52 }
 0x52c   : > { %v8471_v30 = vrot.slane %v8457_v25, %v11130_v35  ;;  %v8483_v3 = vrot.slane %v8473_v41, %v11130_v35  ;;  %v8490_v8 = vrot.slane %v8474_v37, %v11130_v35  ;;  %v8837_v63 = vrot.slane %v12946_v17, %v13131_v15  ;;  %v8539_v12 = vpop.permute.xlu1 %8538 }
 0x52d   : > { %v8497_v56 = vrot.slane %v8475_v46, %v11130_v35  ;;  %v8828_v59 = vrot.slane %v12922_v44, %v13140_v6  ;;  %v8504_v42 = vrot.slane %v8476_v47, %v11130_v35  ;;  %v8832_v36 = vrot.slane %v12835_v31, %v13143_v55  ;;  %v13165_v33 = vpop.permute.xlu0 %8649 }
 0x52e   : > { %v8472_v2 = vcombine.low %v8464_v57, %v8471_v30  ;;  %v8505_v39 = vcombine.low %v8483_v3, %v8490_v8  ;;  %v8734_v34 = vadd.s32 4294967272, %v13091_v28  ;;  %v8986_v14 = vrot.slane %v13098_v62, %v13140_v6 }
 0x52f   : > { %v8506_v5 = vcombine.low %v8497_v56, %v8504_v42  ;;  %v8833_v13 = vsel %vm8725_vm3, %v8832_v36, %v8828_v59  ;;  %v8741_v25 = vadd.s32 4294967264, %v13091_v28  ;;  %v8990_v7 = vrot.slane %v13014_v18, %v13143_v55 }
 0x530   : > { %8709 = vperm.xlu1 %9237, %v8472_v2   ;;  %v8513_v44 = vrot.slane %v8505_v39, %v11130_v35  ;;  %v13162_v40 = vsel %vm8732_vm4, %v8837_v63, %v8833_v13  ;;  %v13168_v17 = vsub.s32 %v8734_v34, %v13853_v53  ;;  %v8995_v52 = vrot.slane %v8674_v45, %v13131_v15 }
 0x531   : > { %v8520_v31 = vrot.slane %v8506_v5, %v11130_v35  ;;  %v8724_v37 = vrot.slane %v12718_v11, %v13143_v55  ;;  %v8991_v46 = vsel %vm8725_vm3, %v8990_v7, %v8986_v14  ;;  %v8755_v30 = vadd.s32 4294967248, %v13091_v28  ;;  %v13190_v3 = vpop.permute.xlu0 %8652 }
 0x532   : > { %v9000_v57 = vrot.slane %v13035_v0, %v13168_v17  ;;  %v8769_v62 = vadd.s32 4294967232, %v13091_v28  ;;  %v8731_v47 = vrot.slane %v12747_v49, %v13131_v15  ;;  %v8996_v18 = vsel %vm8732_vm4, %v8995_v52, %v8991_v46 }
 0x533   : > { %v8521_v27 = vcombine.low %v8513_v44, %v8520_v31  ;;  %v8719_v45 = vrot.slane %v12851_v32, %v13140_v6  ;;  %v8738_v0 = vrot.slane %v12767_v60, %v13168_v17  ;;  %v13193_v11 = vsub.s32 %v8741_v25, %v13853_v53 }
 0x534   : > { %v13196_v8 = vsel %vm8739_vm5, %v9000_v57, %v8996_v18  ;;  %v8783_v56 = vadd.s32 4294967216, %v13091_v28  ;;  %v8776_v49 = vadd.s32 4294967224, %v13091_v28  ;;  %v8748_v59 = vadd.s32 4294967256, %v13091_v28 }
 0x535   : > { %8712 = vperm.xlu1 %9237, %v8521_v27   ;;  %v8726_v2 = vsel %vm8725_vm3, %v8724_v37, %v8719_v45  ;;  %v13203_v32 = vsub.s32 %v8755_v30, %v13853_v53  ;;  %v8745_v60 = vrot.slane %v13135_v20, %v13193_v11  ;;  %v8762_v42 = vadd.s32 4294967240, %v13091_v28  ;;  %v8560_v14 = vpop.permute.xlu0 %8559 }
 0x536   : > { %v13209_v36 = vsub.s32 %v8769_v62, %v13853_v53  ;;  %v8733_v63 = vsel %vm8732_vm4, %v8731_v47, %v8726_v2  ;;  %v13213_v39 = vsub.s32 %v8748_v59, %v13853_v53  ;;  %v13221_v20 = vsub.s32 %v8776_v49, %v13853_v53 }
 0x537   : > { %v8542_v41 = vpop.permute.xlu1 %8541  ;;  %v8740_v5 = vsel %vm8739_vm5, %v8738_v0, %v8733_v63  ;;  %v13218_v44 = vsub.s32 %v8762_v42, %v13853_v53  ;;  %v13225_v27 = vsub.s32 %v8783_v56, %v13853_v53  ;;  %v8790_v56 = vadd.s32 4294967208, %v13091_v28 }
 0x538   : > { %v8759_v13 = vrot.slane %v8542_v41, %v13203_v32  ;;  %v8752_v31 = vrot.slane %v8539_v12, %v13213_v39  ;;  %v8747_v25 = vsel %vm8746_vm7, %v8745_v60, %v8740_v5  ;;  %v8773_v57 = vrot.slane %v12871_v10, %v13209_v36 }
 0x539   : > { %v8780_v12 = vrot.slane %v12791_v22, %v13221_v20  ;;  %v8787_v46 = vrot.slane %v12889_v4, %v13225_v27  ;;  %v8566_v18 = vpop.permute.xlu0 %8565  ;;  %v8842_v22 = vrot.slane %v12864_v21, %v13168_v17  ;;  %v8797_v2 = vadd.s32 4294967200, %v13091_v28 }
 0x53a   : > { %v8754_v52 = vsel %vm8753_vm6, %v8752_v31, %v8747_v25  ;;  %v13248_v60 = vsub.s32 %v8790_v56, %v13853_v53  ;;  %v8804_v5 = vadd.s32 4294967192, %v13091_v28  ;;  %vm9089_vm2 = vcmp.lt.s32.totalorder %v13852_v23, 512 }
 0x53b   : > { %v8761_v41 = vsel %vm8760_vm8, %v8759_v13, %v8754_v52  ;;  %v8843_v42 = vsel %vm8739_vm5, %v8842_v22, %v13162_v40  ;;  %v13256_v13 = vsub.s32 %v8797_v2, %v13853_v53  ;;  %v8811_v52 = vadd.s32 4294967184, %v13091_v28 }
 0x53c   : > { %v8882_v56 = vrot.slane %v12911_v58, %v13248_v60 }
 0x53d   : > { %v8545_v34 = vpop.permute.xlu1 %8544  ;;  %v8584_v0 = vpop.permute.xlu0 %8583  ;;  %v13281_v22 = vsub.s32 %v8811_v52, %v13853_v53 }
 0x53e   : > { %v8766_v7 = vrot.slane %v8545_v34, %v13218_v44  ;;  %v8847_v49 = vrot.slane %v8584_v0, %v13193_v11  ;;  %v8877_v0 = vrot.slane %v12996_v16, %v13225_v27 }
 0x540   : > { %v8768_v37 = vsel %vm8767_vm9, %v8766_v7, %v8761_v41  ;;  %v8848_v34 = vsel %vm8746_vm7, %v8847_v49, %v8843_v42  ;;  %v8794_v7 = vrot.slane %v12812_v26, %v13248_v60  ;;  %v8872_v41 = vrot.slane %v12885_v29, %v13221_v20 }
 0x541   : > { %v8775_v30 = vsel %vm8774_vm10, %v8773_v57, %v8768_v37  ;;  %v8590_v63 = vpop.permute.xlu0 %8589  ;;  %v8867_v57 = vrot.slane %v12975_v38, %v13209_v36  ;;  %v8818_v26 = vadd.s32 4294967176, %v13091_v28  ;;  %v8801_v38 = vrot.slane %v8560_v14, %v13256_v13 }
 0x542   : > { %v8782_v47 = vsel %vm8781_vm11, %v8780_v12, %v8775_v30  ;;  %v8857_v31 = vrot.slane %v8590_v63, %v13203_v32 }
 0x543   : > { %v8789_v10 = vsel %vm8788_vm12, %v8787_v46, %v8782_v47  ;;  %v13269_v46 = vsub.s32 %v8804_v5, %v13853_v53  ;;  %v13289_v2 = vsub.s32 %v8818_v26, %v13853_v53  ;;  %v8916_v26 = vrot.slane %v13044_v1, %v13131_v15 }
 0x544   : > { %v8796_v30 = vsel %vm8795_vm13, %v8794_v7, %v8789_v10  ;;  %v8946_v1 = vrot.slane %v13072_v48, %v13209_v36 }
 0x545   : > { %v8608_v37 = vpop.permute.xlu0 %8607  ;;  %v8803_v28 = vsel %vm8802_vm14, %v8801_v38, %v8796_v30  ;;  %v8921_v30 = vrot.slane %v12969_v9, %v13168_v17 }
 0x546   : > { %v8887_v10 = vrot.slane %v8608_v37, %v13256_v13 }
 0x547   : > { %v8563_v62 = vpop.permute.xlu1 %8562 }
 0x548   : > { %v8808_v14 = vrot.slane %v8563_v62, %v13269_v46 }
 0x54d   : > { %v8569_v45 = vpop.permute.xlu1 %8568 }
 0x54e   : > { %v8822_v62 = vrot.slane %v8569_v45, %v13289_v2  ;;  %v8911_v45 = vrot.slane %v12936_v24, %v13143_v55 }
 0x552   : > { %v8587_v59 = vpop.permute.xlu1 %8586 }
 0x553   : > { %v8852_v4 = vrot.slane %v8587_v59, %v13213_v39 }
 0x555   : > { %v8853_v21 = vsel %vm8753_vm6, %v8852_v4, %v8848_v34  ;;  %v8614_v4 = vpop.permute.xlu0 %8613  ;;  %v8810_v34 = vsel %vm8809_vm15, %v8808_v14, %v8803_v28 }
 0x556   : > { %v8858_v12 = vsel %vm8760_vm8, %v8857_v31, %v8853_v21  ;;  %v8815_v21 = vrot.slane %v8566_v18, %v13281_v22  ;;  %v8897_v31 = vrot.slane %v8614_v4, %v13281_v22 }
 0x558   : > { %v8593_v25 = vpop.permute.xlu1 %8592  ;;  %v8817_v53 = vsel %vm8816_vm0, %v8815_v21, %v8810_v34  ;;  %v9025_v21 = vrot.slane %v13149_v19, %v13209_v36 }
 0x559   : > { %v8862_v40 = vrot.slane %v8593_v25, %v13218_v44 }
 0x55b   : > { %v8863_v47 = vsel %vm8767_vm9, %v8862_v40, %v8858_v12  ;;  %v13303_v40 = vsel %vm8823_vm1, %v8822_v62, %v8817_v53  ;;  %v8632_v12 = vpop.permute.xlu0 %8631 }
 0x55c   : > { %v8868_v29 = vsel %vm8774_vm10, %v8867_v57, %v8863_v47  ;;  %v8926_v47 = vrot.slane %v8632_v12, %v13193_v11 }
 0x55d   : > { %v8873_v49 = vsel %vm8781_vm11, %v8872_v41, %v8868_v29  ;;  %v8611_v59 = vpop.permute.xlu1 %8610  ;;  %v8907_v41 = vrot.slane %v13026_v43, %v13140_v6 }
 0x55e   : > { %v8878_v16 = vsel %vm8788_vm12, %v8877_v0, %v8873_v49  ;;  %v8892_v42 = vrot.slane %v8611_v59, %v13269_v46  ;;  %v8951_v49 = vrot.slane %v12987_v61, %v13221_v20 }
 0x55f   : > { %v8883_v58 = vsel %vm8795_vm13, %v8882_v56, %v8878_v16  ;;  %v8912_v37 = vsel %vm8725_vm3, %v8911_v45, %v8907_v41  ;;  %v8638_v55 = vpop.permute.xlu0 %8637 }
 0x560   : > { %v8888_v63 = vsel %vm8802_vm14, %v8887_v10, %v8883_v58  ;;  %v8917_v29 = vsel %vm8732_vm4, %v8916_v26, %v8912_v37  ;;  %v8936_v56 = vrot.slane %v8638_v55, %v13203_v32 }
 0x561   : > { %v8893_v5 = vsel %vm8809_vm15, %v8892_v42, %v8888_v63  ;;  %v8922_v24 = vsel %vm8739_vm5, %v8921_v30, %v8917_v29 }
 0x562   : > { %v8898_v7 = vsel %vm8816_vm0, %v8897_v31, %v8893_v5  ;;  %v8927_v43 = vsel %vm8746_vm7, %v8926_v47, %v8922_v24 }
 0x563   : > { %v8617_v25 = vpop.permute.xlu1 %8616 }
 0x564   : > { %v8902_v52 = vrot.slane %v8617_v25, %v13289_v2 }
 0x566   : > { %v13306_v57 = vsel %vm8823_vm1, %v8902_v52, %v8898_v7  ;;  %v8956_v52 = vrot.slane %v13165_v33, %v13225_v27 }
 0x567   : > { %v9062_v18 = vcombine.low %v13303_v40, %v13306_v57 }
 0x568   : > { %v8680_v16 = vpop.permute.xlu0 %8679 }
 0x569   : > { %v9005_v14 = vrot.slane %v8680_v16, %v13193_v11  ;;  %v9030_v11 = vrot.slane %v13058_v51, %v13221_v20 }
 0x56b   : > { %v9006_v48 = vsel %vm8746_vm7, %v9005_v14, %v13196_v8  ;;  %v9035_v8 = vrot.slane %v13083_v50, %v13225_v27 }
 0x56e   : > { %v8635_v0 = vpop.permute.xlu1 %8634 }
 0x56f   : > { %v8931_v38 = vrot.slane %v8635_v0, %v13213_v39 }
 0x571   : > { %v8932_v6 = vsel %vm8753_vm6, %v8931_v38, %v8927_v43 }
 0x572   : > { %v8937_v15 = vsel %vm8760_vm8, %v8936_v56, %v8932_v6  ;;  %v9070_v56 = vrot.slane %v9062_v18, %v11130_v35 }
 0x573   : > { %v8641_v9 = vpop.permute.xlu1 %8640 }
 0x574   : > { %v8941_v17 = vrot.slane %v8641_v9, %v13218_v44 }
 0x576   : > { %v8942_v10 = vsel %vm8767_vm9, %v8941_v17, %v8937_v15 }
 0x577   : > { %v8947_v28 = vsel %vm8774_vm10, %v8946_v1, %v8942_v10 }
 0x578   : > { %v8952_v59 = vsel %vm8781_vm11, %v8951_v49, %v8947_v28 }
 0x579   : > { %v8686_v42 = vpop.permute.xlu0 %8685  ;;  %v8957_v50 = vsel %vm8788_vm12, %v8956_v52, %v8952_v59 }
 0x57a   : > { %v9015_v61 = vrot.slane %v8686_v42, %v13203_v32  ;;  %v9040_v32 = vrot.slane %v13115_v54, %v13248_v60  ;;  %v8961_v54 = vrot.slane %v13190_v3, %v13248_v60 }
 0x57c   : > { %v8962_v30 = vsel %vm8795_vm13, %v8961_v54, %v8957_v50 }
 0x57f   : > { %v8683_v4 = vpop.permute.xlu1 %8682 }
 0x580   : > { %v9010_v58 = vrot.slane %v8683_v4, %v13213_v39 }
 0x582   : > { %v9011_v63 = vsel %vm8753_vm6, %v9010_v58, %v9006_v48 }
 0x583   : > { %v9016_v31 = vsel %vm8760_vm8, %v9015_v61, %v9011_v63 }
 0x584   : > { %v8656_v36 = vpop.permute.xlu0 %8655 }
 0x585   : > { %v8966_v41 = vrot.slane %v8656_v36, %v13256_v13 }
 0x587   : > { %v8967_v3 = vsel %vm8802_vm14, %v8966_v41, %v8962_v30 }
 0x589   : > { %v8689_v34 = vpop.permute.xlu1 %8688 }
 0x58a   : > { %v9020_v5 = vrot.slane %v8689_v34, %v13218_v44 }
 0x58c   : > { %v9021_v39 = vsel %vm8767_vm9, %v9020_v5, %v9016_v31 }
 0x58d   : > { %v9026_v62 = vsel %vm8774_vm10, %v9025_v21, %v9021_v39 }
 0x58e   : > { %v9031_v44 = vsel %vm8781_vm11, %v9030_v11, %v9026_v62 }
 0x58f   : > { %v9036_v53 = vsel %vm8788_vm12, %v9035_v8, %v9031_v44  ;;  %v8659_v7 = vpop.permute.xlu0 %8658 }
 0x590   : > { %v9041_v19 = vsel %vm8795_vm13, %v9040_v32, %v9036_v53  ;;  %v8971_v26 = vrot.slane %v8659_v7, %v13269_v46 }
 0x594   : > { %v8704_v25 = vpop.permute.xlu1 %8703 }
 0x595   : > { %v9045_v12 = vrot.slane %v8704_v25, %v13256_v13  ;;  %v8972_v13 = vsel %vm8809_vm15, %v8971_v26, %v8967_v3 }
 0x597   : > { %v9046_v60 = vsel %vm8802_vm14, %v9045_v12, %v9041_v19 }
 0x59a   : > { %v8662_v20 = vpop.permute.xlu0 %8661 }
 0x59b   : > { %v8976_v33 = vrot.slane %v8662_v20, %v13281_v22 }
 0x59d   : > { %v8977_v55 = vsel %vm8816_vm0, %v8976_v33, %v8972_v13 }
 0x59f   : > { %v8707_v51 = vpop.permute.xlu1 %8706 }
 0x5a0   : > { %v9050_v47 = vrot.slane %v8707_v51, %v13269_v46 }
 0x5a2   : > { %v9051_v29 = vsel %vm8809_vm15, %v9050_v47, %v9046_v60 }
 0x5a4   : > { %v8665_v37 = vpop.permute.xlu0 %8664 }
 0x5a5   : > { %v8981_v0 = vrot.slane %v8665_v37, %v13289_v2 }
 0x5a7   : > { %v8982_v43 = vsel %vm8823_vm1, %v8981_v0, %v8977_v55 }
 0x5ab   : > { %v8710_v45 = vpop.permute.xlu1 %8709 }
 0x5ac   : > { %v9055_v27 = vrot.slane %v8710_v45, %v13281_v22 }
 0x5ae   : > { %v9056_v46 = vsel %vm8816_vm0, %v9055_v27, %v9051_v29 }
 0x5b0   : > { %v8713_v38 = vpop.permute.xlu1 %8712 }
 0x5b1   : > { %v9060_v24 = vrot.slane %v8713_v38, %v13289_v2 }
 0x5b3   : > { %v9061_v22 = vsel %vm8823_vm1, %v9060_v24, %v9056_v46 }
 0x5b4   : > { %v9063_v6 = vcombine.low %v8982_v43, %v9061_v22 }
 0x5b6   : > { %v9077_v9 = vrot.slane %v9063_v6, %v11130_v35 }
 0x5b8   : > { %v9078_v17 = vcombine.low %v9070_v56, %v9077_v9 }
 0x5ba   : > { %v9085_v2 = vrot.slane %v9078_v17, %v11130_v35 }
 0x5bc   : > { %9091 = vst.msk [vmem:[%s141_s6] sm:$0xf] %vm9089_vm2, %v9085_v2 }
 0x5bd PF: > { %s12_s9 = sadd.s32 1, %s9247_s9  }
 0x5be   : > { %p9_p4 = scmp.ge.s32.totalorder %s12_s9, 4  }
 0x5c0   :  { %11 = sbr.rel (!%p9_p4) target bundleno = 1 (0x1), region = 58 }

</bundles_post_ra>
